<compile_context>
chip_gen: v7x
topology: tpu7x:2x2x1
jax: 0.10.0
libtpu: 0.0.40
codegen_flags: <defaults>
</compile_context>

<pallas_src>
import jax
import jax.numpy as jnp
from jax.experimental import pallas as pl
from jax.experimental.pallas import tpu as pltpu


def _round_up(x, m):
    return (x + m - 1) // m * m


def _pick_row_tile(H, W, requested=None):
    """Largest TH <= requested (or an auto target) with H % TH == 0 and a lane-dense
    output tile (TH*W % 128 == 0, or TH == H so the block is the full axis)."""
    cand = requested if requested is not None else max(1, 2048 // max(W, 1))
    cand = min(cand, H)
    for th in range(cand, 0, -1):
        if H % th == 0 and (th == H or (th * W) % 128 == 0):
            return th
    return H


def _vmem_limit_bytes():
    """Generation-aware VMEM budget: ~60% of per-core capacity, capped at 96 MiB."""
    cap = 128 * 1024 * 1024
    try:
        info = pltpu.get_tpu_info()
        cap = int(getattr(info, "vmem_capacity_bytes", cap)) or cap
    except Exception:
        pass
    return max(16 * 1024 * 1024, min(int(cap * 0.6), 96 * 1024 * 1024))


# --------------------- Kernel: conv3x3 (9 accumulating dots) + bias + stats ---------
def conv_bias_stats_kernel(x_ref, w_ref, b_ref, y_ref, stats_ref):
    # x_ref:     (1, 1, TH+2, W+2, Cin)  bf16 padded input row tile (halo included)
    # w_ref:     (9, Cout_p, Cin)        bf16 per-tap weights (grid-invariant)
    # b_ref:     (Cout_p, 1)             f32 bias (grid-invariant)
    # y_ref:     (1, Cout_p, TH*W)       bf16 conv+bias output, channel-major,
    #                                    spatial on lanes (lane-dense)
    # stats_ref: (1, 1, Cout_p, 2)       f32 per-(n,tile) [sum, sumsq] of the
    #                                    PRE-BIAS conv output
    th = x_ref.shape[2] - 2
    w = x_ref.shape[3] - 2
    cin = x_ref.shape[4]

    # 9 accumulating MXU dots on shifted views; f32 accumulator held by the compiler
    # (no im2col scratch, no misaligned tap stores).  Each dot contracts the last dims
    # of both operands (A @ B.T pattern) so the result comes out channel-major.
    acc = None
    for kh in range(3):
        for kw in range(3):
            xv = x_ref[0, 0, kh:kh + th, kw:kw + w, :].reshape(th * w, cin)
            part = jax.lax.dot_general(
                w_ref[kh * 3 + kw], xv,
                dimension_numbers=(((1,), (1,)), ((), ())),
                preferred_element_type=jnp.float32)            # (Cout_p, th*w)
            acc = part if acc is None else acc + part

    # Per-(n, tile) stats of the pre-bias conv output (single concatenated store).
    s = jnp.sum(acc, axis=1, keepdims=True)                    # (Cout_p, 1)
    sq = jnp.sum(acc * acc, axis=1, keepdims=True)             # (Cout_p, 1)
    stats_ref[0, 0] = jnp.concatenate([s, sq], axis=1)         # (Cout_p, 2)

    # Conv + bias, stored channel-major (spatial lane-dense).
    # NOTE: y is bf16 by design; the BN stats come from the f32 accumulator, so the
    # normalized output carries the bf16 rounding of y (systematic, sub-1% effect).
    y_ref[...] = (acc + b_ref[...])[None].astype(y_ref.dtype)


# ----------------------------- Wrapper ----------------------------------------------
def cbr_forward(x_nchw, w_oihw, bias, gamma, beta, eps=1e-5, row_tile=None):
    N, Cin, H, W = x_nchw.shape
    Cout = w_oihw.shape[0]
    Cout_p = _round_up(Cout, 128)                    # lane-dense channel dim

    TH = _pick_row_tile(H, W, row_tile)
    num_t = H // TH

    # NCHW -> NHWC, bf16 operands for the MXU; pad + build overlapping row tiles
    # (each tile carries its 1-row halo).
    x = jnp.transpose(x_nchw, (0, 2, 3, 1)).astype(jnp.bfloat16)
    xp = jnp.pad(x, ((0, 0), (1, 1), (1, 1), (0, 0)))
    if num_t == 1:
        x_tiles = xp[:, None]                                       # (N,1,H+2,W+2,Cin)
    else:
        ridx = jnp.arange(num_t)[:, None] * TH + jnp.arange(TH + 2)[None, :]
        x_tiles = xp[:, ridx]                                       # (N,num_t,TH+2,W+2,Cin)
    # TODO(synk): replace this wrapper-side padded/overlapping-tile copy with in-kernel
    # halo handling (pl.ANY input + manual make_async_copy with clamped row offsets) to
    # remove the extra HBM pass over x.

    # OIHW -> (9, Cout, Cin) per-tap weight matrices (channel-major lhs), pad Cout.
    w9 = jnp.transpose(w_oihw, (2, 3, 0, 1)).reshape(9, Cout, Cin)
    w9 = jnp.pad(w9, ((0, 0), (0, Cout_p - Cout), (0, 0))).astype(jnp.bfloat16)
    b_p = jnp.pad(bias.astype(jnp.float32), (0, Cout_p - Cout)).reshape(Cout_p, 1)

    flops = 2 * N * H * W * 9 * Cin * Cout_p
    bytes_accessed = (x_tiles.size * 2 + w9.size * 2 + b_p.size * 4
                      + N * Cout_p * H * W * 2 + N * num_t * Cout_p * 2 * 4)

    def build(single_buffer_consts):
        def const_spec(shape):
            idx = lambda n, t: (0,) * len(shape)
            if single_buffer_consts:
                # grid-invariant block: no need for a second pipeline buffer
                return pl.BlockSpec(shape, idx, pipeline_mode=pl.Buffered(1))
            return pl.BlockSpec(shape, idx)

        return pl.pallas_call(
            conv_bias_stats_kernel,
            out_shape=(jax.ShapeDtypeStruct((N, Cout_p, H * W), jnp.bfloat16),
                       jax.ShapeDtypeStruct((N, num_t, Cout_p, 2), jnp.float32)),
            grid_spec=pltpu.PrefetchScalarGridSpec(
                num_scalar_prefetch=0,
                grid=(N, num_t),
                in_specs=[
                    pl.BlockSpec((1, 1, TH + 2, W + 2, Cin),
                                 lambda n, t: (n, t, 0, 0, 0)),
                    const_spec((9, Cout_p, Cin)),
                    const_spec((Cout_p, 1)),
                ],
                out_specs=(
                    pl.BlockSpec((1, Cout_p, TH * W), lambda n, t: (n, 0, t)),
                    pl.BlockSpec((1, 1, Cout_p, 2), lambda n, t: (n, t, 0, 0)),
                ),
            ),
            compiler_params=pltpu.CompilerParams(
                dimension_semantics=("parallel", "parallel"),
                vmem_limit_bytes=_vmem_limit_bytes(),
            ),
            cost_estimate=pl.CostEstimate(flops=flops, transcendentals=0,
                                          bytes_accessed=bytes_accessed),
        )

    try:
        y, stats = build(True)(x_tiles, w9, b_p)
    except Exception:
        # Fallback if single-buffered constant blocks are rejected by this JAX version.
        y, stats = build(False)(x_tiles, w9, b_p)

    # BatchNorm2d training-mode batch stats (biased, over N*H*W per channel) + ReLU.
    # Stats were accumulated WITHOUT the bias (avoids E[y^2]-E[y]^2 cancellation for
    # large biases); add the bias back into the mean here.  Epilogue is memory-bound
    # elementwise work on already channel-major y -> XLA fuses it, no transpose.
    cnt = jnp.float32(N * H * W)
    tot = jnp.sum(stats, axis=(0, 1))                         # (Cout_p, 2)
    mean_c = tot[:Cout, 0] / cnt
    var = jnp.maximum(tot[:Cout, 1] / cnt - mean_c * mean_c, 0.0)
    mean = mean_c + bias.astype(jnp.float32)
    scale = gamma.astype(jnp.float32) * jax.lax.rsqrt(var + eps)
    shift = beta.astype(jnp.float32) - mean * scale

    yf = y[:, :Cout, :].astype(jnp.float32)                   # (N, Cout, H*W), NCHW-major
    out = jnp.maximum(yf * scale[None, :, None] + shift[None, :, None], 0.0)
    return out.reshape(N, Cout, H, W)


# ----------------------------- Pure-JAX reference (sanity check) --------------------
def ref_cbr(x, w, b, gamma, beta, eps=1e-5):
    conv = jax.lax.conv_general_dilated(
        x, w, window_strides=(1, 1), padding=((1, 1), (1, 1)),
        dimension_numbers=("NCHW", "OIHW", "NCHW"),
        precision=jax.lax.Precision.HIGHEST)
    y = conv + b[None, :, None, None]
    mean = jnp.mean(y, axis=(0, 2, 3))
    var = jnp.var(y, axis=(0, 2, 3))
    yb = y.astype(jnp.bfloat16).astype(jnp.float32)      # kernel stores y in bf16
    yhat = (yb - mean[None, :, None, None]) * jax.lax.rsqrt(var[None, :, None, None] + eps)
    return jnp.maximum(yhat * gamma[None, :, None, None] + beta[None, :, None, None], 0.0)


if __name__ == "__main__":
    key = jax.random.PRNGKey(0)
    k_x, k_w, k_b, k_g, k_be = jax.random.split(key, 5)

    N, Cin, H, W = 2, 4, 16, 16
    Cout = 8

    x = jax.random.normal(k_x, (N, Cin, H, W), jnp.float32)
    w = jax.random.normal(k_w, (Cout, Cin, 3, 3), jnp.float32) * 0.1
    b = jax.random.normal(k_b, (Cout,), jnp.float32) * 0.1
    gamma = 1.0 + 0.1 * jax.random.normal(k_g, (Cout,), jnp.float32)
    beta = 0.1 * jax.random.normal(k_be, (Cout,), jnp.float32)

    # row_tile=8 -> grid (N, 2): exercises the spatial tiling path.
    out = cbr_forward(x, w, b, gamma, beta, row_tile=8)
    out = jax.block_until_ready(out)
    assert out.shape == (N, Cout, H, W)

    # Reference computed with the same bf16 rounding of x/w (MXU operands) and of the
    # stored y that the kernel uses; stats come from the f32 conv in both paths.
    xb = x.astype(jnp.bfloat16).astype(jnp.float32)
    wb = w.astype(jnp.bfloat16).astype(jnp.float32)
    ref = ref_cbr(xb, wb, b, gamma, beta)
    err = float(jnp.max(jnp.abs(out - ref)))
    assert err < 2e-2, f"mismatch vs reference: {err}"

    print("KERNEL_OK")
</pallas_src>

<mosaic_0001>
module attributes {stable_mosaic.version = 11 : i64} {
  func.func @conv_bias_stats_kernel(%arg0: i32, %arg1: i32, %arg2: memref<1x1x10x18x4xbf16, #tpu.memory_space<vmem>>, %arg3: memref<9x128x4xbf16, #tpu.memory_space<vmem>>, %arg4: memref<128x1xf32, #tpu.memory_space<vmem>>, %arg5: memref<1x128x128xbf16, #tpu.memory_space<vmem>>, %arg6: memref<1x1x128x2xf32, #tpu.memory_space<vmem>>) attributes {dimension_semantics = [#tpu.dimension_semantics<parallel>, #tpu.dimension_semantics<parallel>], iteration_bounds = array<i64: 2, 2>, scalar_prefetch = 0 : i64, scratch_operands = 0 : i64, tpu.core_type = #tpu.core_type<tc>, window_params = [{transform_indices = @transform_0, window_bounds = array<i64: 1, 1, 10, 18, 4>}, {pipeline_mode = #tpu.pipeline_mode<synchronous>, transform_indices = @transform_1, window_bounds = array<i64: 9, 128, 4>}, {pipeline_mode = #tpu.pipeline_mode<synchronous>, transform_indices = @transform_2, window_bounds = array<i64: 128, 1>}, {transform_indices = @transform_3, window_bounds = array<i64: 1, 128, 128>}, {transform_indices = @transform_4, window_bounds = array<i64: 1, 1, 128, 2>}]} {
    %c0 = arith.constant 0 : index
    %c0_0 = arith.constant 0 : index
    %c0_1 = arith.constant 0 : index
    %c0_2 = arith.constant 0 : index
    %c0_3 = arith.constant 0 : index
    %0 = vector.load %arg2[%c0, %c0_0, %c0_1, %c0_2, %c0_3] : memref<1x1x10x18x4xbf16, #tpu.memory_space<vmem>>, vector<1x1x8x16x4xbf16>
    %1 = vector.shape_cast %0 : vector<1x1x8x16x4xbf16> to vector<8x16x4xbf16>
    %2 = vector.shape_cast %1 : vector<8x16x4xbf16> to vector<128x4xbf16>
    %c0_4 = arith.constant 0 : index
    %c0_5 = arith.constant 0 : index
    %c0_6 = arith.constant 0 : index
    %3 = vector.load %arg3[%c0_4, %c0_5, %c0_6] : memref<9x128x4xbf16, #tpu.memory_space<vmem>>, vector<1x128x4xbf16>
    %4 = vector.shape_cast %3 : vector<1x128x4xbf16> to vector<128x4xbf16>
    %cst = arith.constant dense<0.000000e+00> : vector<128x128xf32>
    %5 = tpu.matmul %4, %2, %cst {dimension_numbers = #tpu.dot_dimension_numbers<[1], [1], [0], [0], [0, 0, 1, 0], [], []>} : vector<128x4xbf16>, vector<128x4xbf16>, vector<128x128xf32> -> vector<128x128xf32>
    %c0_7 = arith.constant 0 : index
    %c0_8 = arith.constant 0 : index
    %c0_9 = arith.constant 0 : index
    %c1 = arith.constant 1 : index
    %c0_10 = arith.constant 0 : index
    %6 = vector.load %arg2[%c0_7, %c0_8, %c0_9, %c1, %c0_10] : memref<1x1x10x18x4xbf16, #tpu.memory_space<vmem>>, vector<1x1x8x16x4xbf16>
    %7 = vector.shape_cast %6 : vector<1x1x8x16x4xbf16> to vector<8x16x4xbf16>
    %8 = vector.shape_cast %7 : vector<8x16x4xbf16> to vector<128x4xbf16>
    %c1_11 = arith.constant 1 : index
    %c0_12 = arith.constant 0 : index
    %c0_13 = arith.constant 0 : index
    %9 = vector.load %arg3[%c1_11, %c0_12, %c0_13] : memref<9x128x4xbf16, #tpu.memory_space<vmem>>, vector<1x128x4xbf16>
    %10 = vector.shape_cast %9 : vector<1x128x4xbf16> to vector<128x4xbf16>
    %cst_14 = arith.constant dense<0.000000e+00> : vector<128x128xf32>
    %11 = tpu.matmul %10, %8, %cst_14 {dimension_numbers = #tpu.dot_dimension_numbers<[1], [1], [0], [0], [0, 0, 1, 0], [], []>} : vector<128x4xbf16>, vector<128x4xbf16>, vector<128x128xf32> -> vector<128x128xf32>
    %12 = arith.addf %5, %11 : vector<128x128xf32>
    %c0_15 = arith.constant 0 : index
    %c0_16 = arith.constant 0 : index
    %c0_17 = arith.constant 0 : index
    %c2 = arith.constant 2 : index
    %c0_18 = arith.constant 0 : index
    %13 = vector.load %arg2[%c0_15, %c0_16, %c0_17, %c2, %c0_18] : memref<1x1x10x18x4xbf16, #tpu.memory_space<vmem>>, vector<1x1x8x16x4xbf16>
    %14 = vector.shape_cast %13 : vector<1x1x8x16x4xbf16> to vector<8x16x4xbf16>
    %15 = vector.shape_cast %14 : vector<8x16x4xbf16> to vector<128x4xbf16>
    %c2_19 = arith.constant 2 : index
    %c0_20 = arith.constant 0 : index
    %c0_21 = arith.constant 0 : index
    %16 = vector.load %arg3[%c2_19, %c0_20, %c0_21] : memref<9x128x4xbf16, #tpu.memory_space<vmem>>, vector<1x128x4xbf16>
    %17 = vector.shape_cast %16 : vector<1x128x4xbf16> to vector<128x4xbf16>
    %cst_22 = arith.constant dense<0.000000e+00> : vector<128x128xf32>
    %18 = tpu.matmul %17, %15, %cst_22 {dimension_numbers = #tpu.dot_dimension_numbers<[1], [1], [0], [0], [0, 0, 1, 0], [], []>} : vector<128x4xbf16>, vector<128x4xbf16>, vector<128x128xf32> -> vector<128x128xf32>
    %19 = arith.addf %12, %18 : vector<128x128xf32>
    %c0_23 = arith.constant 0 : index
    %c0_24 = arith.constant 0 : index
    %c1_25 = arith.constant 1 : index
    %c0_26 = arith.constant 0 : index
    %c0_27 = arith.constant 0 : index
    %20 = vector.load %arg2[%c0_23, %c0_24, %c1_25, %c0_26, %c0_27] : memref<1x1x10x18x4xbf16, #tpu.memory_space<vmem>>, vector<1x1x8x16x4xbf16>
    %21 = vector.shape_cast %20 : vector<1x1x8x16x4xbf16> to vector<8x16x4xbf16>
    %22 = vector.shape_cast %21 : vector<8x16x4xbf16> to vector<128x4xbf16>
    %c3 = arith.constant 3 : index
    %c0_28 = arith.constant 0 : index
    %c0_29 = arith.constant 0 : index
    %23 = vector.load %arg3[%c3, %c0_28, %c0_29] : memref<9x128x4xbf16, #tpu.memory_space<vmem>>, vector<1x128x4xbf16>
    %24 = vector.shape_cast %23 : vector<1x128x4xbf16> to vector<128x4xbf16>
    %cst_30 = arith.constant dense<0.000000e+00> : vector<128x128xf32>
    %25 = tpu.matmul %24, %22, %cst_30 {dimension_numbers = #tpu.dot_dimension_numbers<[1], [1], [0], [0], [0, 0, 1, 0], [], []>} : vector<128x4xbf16>, vector<128x4xbf16>, vector<128x128xf32> -> vector<128x128xf32>
    %26 = arith.addf %19, %25 : vector<128x128xf32>
    %c0_31 = arith.constant 0 : index
    %c0_32 = arith.constant 0 : index
    %c1_33 = arith.constant 1 : index
    %c1_34 = arith.constant 1 : index
    %c0_35 = arith.constant 0 : index
    %27 = vector.load %arg2[%c0_31, %c0_32, %c1_33, %c1_34, %c0_35] : memref<1x1x10x18x4xbf16, #tpu.memory_space<vmem>>, vector<1x1x8x16x4xbf16>
    %28 = vector.shape_cast %27 : vector<1x1x8x16x4xbf16> to vector<8x16x4xbf16>
    %29 = vector.shape_cast %28 : vector<8x16x4xbf16> to vector<128x4xbf16>
    %c4 = arith.constant 4 : index
    %c0_36 = arith.constant 0 : index
    %c0_37 = arith.constant 0 : index
    %30 = vector.load %arg3[%c4, %c0_36, %c0_37] : memref<9x128x4xbf16, #tpu.memory_space<vmem>>, vector<1x128x4xbf16>
    %31 = vector.shape_cast %30 : vector<1x128x4xbf16> to vector<128x4xbf16>
    %cst_38 = arith.constant dense<0.000000e+00> : vector<128x128xf32>
    %32 = tpu.matmul %31, %29, %cst_38 {dimension_numbers = #tpu.dot_dimension_numbers<[1], [1], [0], [0], [0, 0, 1, 0], [], []>} : vector<128x4xbf16>, vector<128x4xbf16>, vector<128x128xf32> -> vector<128x128xf32>
    %33 = arith.addf %26, %32 : vector<128x128xf32>
    %c0_39 = arith.constant 0 : index
    %c0_40 = arith.constant 0 : index
    %c1_41 = arith.constant 1 : index
    %c2_42 = arith.constant 2 : index
    %c0_43 = arith.constant 0 : index
    %34 = vector.load %arg2[%c0_39, %c0_40, %c1_41, %c2_42, %c0_43] : memref<1x1x10x18x4xbf16, #tpu.memory_space<vmem>>, vector<1x1x8x16x4xbf16>
    %35 = vector.shape_cast %34 : vector<1x1x8x16x4xbf16> to vector<8x16x4xbf16>
    %36 = vector.shape_cast %35 : vector<8x16x4xbf16> to vector<128x4xbf16>
    %c5 = arith.constant 5 : index
    %c0_44 = arith.constant 0 : index
    %c0_45 = arith.constant 0 : index
    %37 = vector.load %arg3[%c5, %c0_44, %c0_45] : memref<9x128x4xbf16, #tpu.memory_space<vmem>>, vector<1x128x4xbf16>
    %38 = vector.shape_cast %37 : vector<1x128x4xbf16> to vector<128x4xbf16>
    %cst_46 = arith.constant dense<0.000000e+00> : vector<128x128xf32>
    %39 = tpu.matmul %38, %36, %cst_46 {dimension_numbers = #tpu.dot_dimension_numbers<[1], [1], [0], [0], [0, 0, 1, 0], [], []>} : vector<128x4xbf16>, vector<128x4xbf16>, vector<128x128xf32> -> vector<128x128xf32>
    %40 = arith.addf %33, %39 : vector<128x128xf32>
    %c0_47 = arith.constant 0 : index
    %c0_48 = arith.constant 0 : index
    %c2_49 = arith.constant 2 : index
    %c0_50 = arith.constant 0 : index
    %c0_51 = arith.constant 0 : index
    %41 = vector.load %arg2[%c0_47, %c0_48, %c2_49, %c0_50, %c0_51] : memref<1x1x10x18x4xbf16, #tpu.memory_space<vmem>>, vector<1x1x8x16x4xbf16>
    %42 = vector.shape_cast %41 : vector<1x1x8x16x4xbf16> to vector<8x16x4xbf16>
    %43 = vector.shape_cast %42 : vector<8x16x4xbf16> to vector<128x4xbf16>
    %c6 = arith.constant 6 : index
    %c0_52 = arith.constant 0 : index
    %c0_53 = arith.constant 0 : index
    %44 = vector.load %arg3[%c6, %c0_52, %c0_53] : memref<9x128x4xbf16, #tpu.memory_space<vmem>>, vector<1x128x4xbf16>
    %45 = vector.shape_cast %44 : vector<1x128x4xbf16> to vector<128x4xbf16>
    %cst_54 = arith.constant dense<0.000000e+00> : vector<128x128xf32>
    %46 = tpu.matmul %45, %43, %cst_54 {dimension_numbers = #tpu.dot_dimension_numbers<[1], [1], [0], [0], [0, 0, 1, 0], [], []>} : vector<128x4xbf16>, vector<128x4xbf16>, vector<128x128xf32> -> vector<128x128xf32>
    %47 = arith.addf %40, %46 : vector<128x128xf32>
    %c0_55 = arith.constant 0 : index
    %c0_56 = arith.constant 0 : index
    %c2_57 = arith.constant 2 : index
    %c1_58 = arith.constant 1 : index
    %c0_59 = arith.constant 0 : index
    %48 = vector.load %arg2[%c0_55, %c0_56, %c2_57, %c1_58, %c0_59] : memref<1x1x10x18x4xbf16, #tpu.memory_space<vmem>>, vector<1x1x8x16x4xbf16>
    %49 = vector.shape_cast %48 : vector<1x1x8x16x4xbf16> to vector<8x16x4xbf16>
    %50 = vector.shape_cast %49 : vector<8x16x4xbf16> to vector<128x4xbf16>
    %c7 = arith.constant 7 : index
    %c0_60 = arith.constant 0 : index
    %c0_61 = arith.constant 0 : index
    %51 = vector.load %arg3[%c7, %c0_60, %c0_61] : memref<9x128x4xbf16, #tpu.memory_space<vmem>>, vector<1x128x4xbf16>
    %52 = vector.shape_cast %51 : vector<1x128x4xbf16> to vector<128x4xbf16>
    %cst_62 = arith.constant dense<0.000000e+00> : vector<128x128xf32>
    %53 = tpu.matmul %52, %50, %cst_62 {dimension_numbers = #tpu.dot_dimension_numbers<[1], [1], [0], [0], [0, 0, 1, 0], [], []>} : vector<128x4xbf16>, vector<128x4xbf16>, vector<128x128xf32> -> vector<128x128xf32>
    %54 = arith.addf %47, %53 : vector<128x128xf32>
    %c0_63 = arith.constant 0 : index
    %c0_64 = arith.constant 0 : index
    %c2_65 = arith.constant 2 : index
    %c2_66 = arith.constant 2 : index
    %c0_67 = arith.constant 0 : index
    %55 = vector.load %arg2[%c0_63, %c0_64, %c2_65, %c2_66, %c0_67] : memref<1x1x10x18x4xbf16, #tpu.memory_space<vmem>>, vector<1x1x8x16x4xbf16>
    %56 = vector.shape_cast %55 : vector<1x1x8x16x4xbf16> to vector<8x16x4xbf16>
    %57 = vector.shape_cast %56 : vector<8x16x4xbf16> to vector<128x4xbf16>
    %c8 = arith.constant 8 : index
    %c0_68 = arith.constant 0 : index
    %c0_69 = arith.constant 0 : index
    %58 = vector.load %arg3[%c8, %c0_68, %c0_69] : memref<9x128x4xbf16, #tpu.memory_space<vmem>>, vector<1x128x4xbf16>
    %59 = vector.shape_cast %58 : vector<1x128x4xbf16> to vector<128x4xbf16>
    %cst_70 = arith.constant dense<0.000000e+00> : vector<128x128xf32>
    %60 = tpu.matmul %59, %57, %cst_70 {dimension_numbers = #tpu.dot_dimension_numbers<[1], [1], [0], [0], [0, 0, 1, 0], [], []>} : vector<128x4xbf16>, vector<128x4xbf16>, vector<128x128xf32> -> vector<128x128xf32>
    %61 = arith.addf %54, %60 : vector<128x128xf32>
    %cst_71 = arith.constant dense<0.000000e+00> : vector<128xf32>
    %62 = vector.multi_reduction <add>, %61, %cst_71 [1] : vector<128x128xf32> to vector<128xf32>
    %63 = vector.shape_cast %62 : vector<128xf32> to vector<128x1xf32>
    %64 = arith.mulf %61, %61 : vector<128x128xf32>
    %cst_72 = arith.constant dense<0.000000e+00> : vector<128xf32>
    %65 = vector.multi_reduction <add>, %64, %cst_72 [1] : vector<128x128xf32> to vector<128xf32>
    %66 = vector.shape_cast %65 : vector<128xf32> to vector<128x1xf32>
    %67 = tpu.concatenate %63, %66 in 1 : vector<128x1xf32>, vector<128x1xf32> -> vector<128x2xf32>
    %c0_73 = arith.constant 0 : index
    %c0_74 = arith.constant 0 : index
    %c0_75 = arith.constant 0 : index
    %c0_76 = arith.constant 0 : index
    %68 = vector.load %arg6[%c0_73, %c0_74, %c0_75, %c0_76] : memref<1x1x128x2xf32, #tpu.memory_space<vmem>>, vector<1x1x128x2xf32>
    %69 = vector.shape_cast %68 : vector<1x1x128x2xf32> to vector<128x2xf32>
    %70 = vector.shape_cast %67 : vector<128x2xf32> to vector<1x1x128x2xf32>
    tpu.vector_store %arg6[%c0_73, %c0_74, %c0_75, %c0_76], %70 {strides = array<i32>} : memref<1x1x128x2xf32, #tpu.memory_space<vmem>>, vector<1x1x128x2xf32>,
    %c0_77 = arith.constant 0 : index
    %c0_78 = arith.constant 0 : index
    %71 = vector.load %arg4[%c0_77, %c0_78] : memref<128x1xf32, #tpu.memory_space<vmem>>, vector<128x1xf32>
    %72 = vector.broadcast %71 : vector<128x1xf32> to vector<128x128xf32>
    %73 = arith.addf %61, %72 : vector<128x128xf32>
    %74 = vector.shape_cast %73 : vector<128x128xf32> to vector<1x128x128xf32>
    %75 = arith.truncf %74 : vector<1x128x128xf32> to vector<1x128x128xbf16>
    %c0_79 = arith.constant 0 : index
    %c0_80 = arith.constant 0 : index
    %c0_81 = arith.constant 0 : index
    %76 = vector.load %arg5[%c0_79, %c0_80, %c0_81] : memref<1x128x128xbf16, #tpu.memory_space<vmem>>, vector<1x128x128xbf16>
    tpu.vector_store %arg5[%c0_79, %c0_80, %c0_81], %75 {strides = array<i32>} : memref<1x128x128xbf16, #tpu.memory_space<vmem>>, vector<1x128x128xbf16>,
    return
  }
  func.func @transform_0(%arg0: i32, %arg1: i32) -> (i32, i32, i32, i32, i32) {
    %c0_i32 = arith.constant 0 : i32
    %c0_i32_0 = arith.constant 0 : i32
    %c0_i32_1 = arith.constant 0 : i32
    %c0_i32_2 = arith.constant 0 : i32
    return %arg0, %arg1, %c0_i32, %c0_i32_0, %c0_i32_1 : i32, i32, i32, i32, i32
  }
  func.func @transform_1(%arg0: i32, %arg1: i32) -> (i32, i32, i32) {
    %c0_i32 = arith.constant 0 : i32
    %c0_i32_0 = arith.constant 0 : i32
    %c0_i32_1 = arith.constant 0 : i32
    %c0_i32_2 = arith.constant 0 : i32
    return %c0_i32, %c0_i32_0, %c0_i32_1 : i32, i32, i32
  }
  func.func @transform_2(%arg0: i32, %arg1: i32) -> (i32, i32) {
    %c0_i32 = arith.constant 0 : i32
    %c0_i32_0 = arith.constant 0 : i32
    %c0_i32_1 = arith.constant 0 : i32
    return %c0_i32, %c0_i32_0 : i32, i32
  }
  func.func @transform_3(%arg0: i32, %arg1: i32) -> (i32, i32, i32) {
    %c0_i32 = arith.constant 0 : i32
    %c0_i32_0 = arith.constant 0 : i32
    return %arg0, %c0_i32, %arg1 : i32, i32, i32
  }
  func.func @transform_4(%arg0: i32, %arg1: i32) -> (i32, i32, i32, i32) {
    %c0_i32 = arith.constant 0 : i32
    %c0_i32_0 = arith.constant 0 : i32
    %c0_i32_1 = arith.constant 0 : i32
    return %arg0, %arg1, %c0_i32, %c0_i32_0 : i32, i32, i32, i32
  }
}

module attributes {stable_mosaic.version = 11 : i64} {
  func.func @conv_bias_stats_kernel(%arg0: i32, %arg1: i32, %arg2: memref<1x1x10x18x4xbf16, #tpu.memory_space<vmem>>, %arg3: memref<9x128x4xbf16, #tpu.memory_space<vmem>>, %arg4: memref<128x1xf32, #tpu.memory_space<vmem>>, %arg5: memref<1x128x128xbf16, #tpu.memory_space<vmem>>, %arg6: memref<1x1x128x2xf32, #tpu.memory_space<vmem>>) attributes {dimension_semantics = [#tpu.dimension_semantics<parallel>, #tpu.dimension_semantics<parallel>], iteration_bounds = array<i64: 2, 2>, scalar_prefetch = 0 : i64, scratch_operands = 0 : i64, tpu.core_type = #tpu.core_type<tc>, window_params = [{transform_indices = @transform_0, window_bounds = array<i64: 1, 1, 10, 18, 4>}, {pipeline_mode = #tpu.pipeline_mode<synchronous>, transform_indices = @transform_1, window_bounds = array<i64: 9, 128, 4>}, {pipeline_mode = #tpu.pipeline_mode<synchronous>, transform_indices = @transform_2, window_bounds = array<i64: 128, 1>}, {transform_indices = @transform_3, window_bounds = array<i64: 1, 128, 128>}, {transform_indices = @transform_4, window_bounds = array<i64: 1, 1, 128, 2>}]} {
    %c0 = arith.constant 0 : index
    %c0_0 = arith.constant 0 : index
    %c0_1 = arith.constant 0 : index
    %c0_2 = arith.constant 0 : index
    %c0_3 = arith.constant 0 : index
    %0 = vector.load %arg2[%c0, %c0_0, %c0_1, %c0_2, %c0_3] : memref<1x1x10x18x4xbf16, #tpu.memory_space<vmem>>, vector<1x1x8x16x4xbf16>
    %1 = vector.shape_cast %0 : vector<1x1x8x16x4xbf16> to vector<8x16x4xbf16>
    %2 = vector.shape_cast %1 : vector<8x16x4xbf16> to vector<128x4xbf16>
    %c0_4 = arith.constant 0 : index
    %c0_5 = arith.constant 0 : index
    %c0_6 = arith.constant 0 : index
    %3 = vector.load %arg3[%c0_4, %c0_5, %c0_6] : memref<9x128x4xbf16, #tpu.memory_space<vmem>>, vector<1x128x4xbf16>
    %4 = vector.shape_cast %3 : vector<1x128x4xbf16> to vector<128x4xbf16>
    %cst = arith.constant dense<0.000000e+00> : vector<128x128xf32>
    %5 = tpu.matmul %4, %2, %cst {dimension_numbers = #tpu.dot_dimension_numbers<[1], [1], [0], [0], [0, 0, 1, 0], [], []>} : vector<128x4xbf16>, vector<128x4xbf16>, vector<128x128xf32> -> vector<128x128xf32>
    %c0_7 = arith.constant 0 : index
    %c0_8 = arith.constant 0 : index
    %c0_9 = arith.constant 0 : index
    %c1 = arith.constant 1 : index
    %c0_10 = arith.constant 0 : index
    %6 = vector.load %arg2[%c0_7, %c0_8, %c0_9, %c1, %c0_10] : memref<1x1x10x18x4xbf16, #tpu.memory_space<vmem>>, vector<1x1x8x16x4xbf16>
    %7 = vector.shape_cast %6 : vector<1x1x8x16x4xbf16> to vector<8x16x4xbf16>
    %8 = vector.shape_cast %7 : vector<8x16x4xbf16> to vector<128x4xbf16>
    %c1_11 = arith.constant 1 : index
    %c0_12 = arith.constant 0 : index
    %c0_13 = arith.constant 0 : index
    %9 = vector.load %arg3[%c1_11, %c0_12, %c0_13] : memref<9x128x4xbf16, #tpu.memory_space<vmem>>, vector<1x128x4xbf16>
    %10 = vector.shape_cast %9 : vector<1x128x4xbf16> to vector<128x4xbf16>
    %cst_14 = arith.constant dense<0.000000e+00> : vector<128x128xf32>
    %11 = tpu.matmul %10, %8, %cst_14 {dimension_numbers = #tpu.dot_dimension_numbers<[1], [1], [0], [0], [0, 0, 1, 0], [], []>} : vector<128x4xbf16>, vector<128x4xbf16>, vector<128x128xf32> -> vector<128x128xf32>
    %12 = arith.addf %5, %11 : vector<128x128xf32>
    %c0_15 = arith.constant 0 : index
    %c0_16 = arith.constant 0 : index
    %c0_17 = arith.constant 0 : index
    %c2 = arith.constant 2 : index
    %c0_18 = arith.constant 0 : index
    %13 = vector.load %arg2[%c0_15, %c0_16, %c0_17, %c2, %c0_18] : memref<1x1x10x18x4xbf16, #tpu.memory_space<vmem>>, vector<1x1x8x16x4xbf16>
    %14 = vector.shape_cast %13 : vector<1x1x8x16x4xbf16> to vector<8x16x4xbf16>
    %15 = vector.shape_cast %14 : vector<8x16x4xbf16> to vector<128x4xbf16>
    %c2_19 = arith.constant 2 : index
    %c0_20 = arith.constant 0 : index
    %c0_21 = arith.constant 0 : index
    %16 = vector.load %arg3[%c2_19, %c0_20, %c0_21] : memref<9x128x4xbf16, #tpu.memory_space<vmem>>, vector<1x128x4xbf16>
    %17 = vector.shape_cast %16 : vector<1x128x4xbf16> to vector<128x4xbf16>
    %cst_22 = arith.constant dense<0.000000e+00> : vector<128x128xf32>
    %18 = tpu.matmul %17, %15, %cst_22 {dimension_numbers = #tpu.dot_dimension_numbers<[1], [1], [0], [0], [0, 0, 1, 0], [], []>} : vector<128x4xbf16>, vector<128x4xbf16>, vector<128x128xf32> -> vector<128x128xf32>
    %19 = arith.addf %12, %18 : vector<128x128xf32>
    %c0_23 = arith.constant 0 : index
    %c0_24 = arith.constant 0 : index
    %c1_25 = arith.constant 1 : index
    %c0_26 = arith.constant 0 : index
    %c0_27 = arith.constant 0 : index
    %20 = vector.load %arg2[%c0_23, %c0_24, %c1_25, %c0_26, %c0_27] : memref<1x1x10x18x4xbf16, #tpu.memory_space<vmem>>, vector<1x1x8x16x4xbf16>
    %21 = vector.shape_cast %20 : vector<1x1x8x16x4xbf16> to vector<8x16x4xbf16>
    %22 = vector.shape_cast %21 : vector<8x16x4xbf16> to vector<128x4xbf16>
    %c3 = arith.constant 3 : index
    %c0_28 = arith.constant 0 : index
    %c0_29 = arith.constant 0 : index
    %23 = vector.load %arg3[%c3, %c0_28, %c0_29] : memref<9x128x4xbf16, #tpu.memory_space<vmem>>, vector<1x128x4xbf16>
    %24 = vector.shape_cast %23 : vector<1x128x4xbf16> to vector<128x4xbf16>
    %cst_30 = arith.constant dense<0.000000e+00> : vector<128x128xf32>
    %25 = tpu.matmul %24, %22, %cst_30 {dimension_numbers = #tpu.dot_dimension_numbers<[1], [1], [0], [0], [0, 0, 1, 0], [], []>} : vector<128x4xbf16>, vector<128x4xbf16>, vector<128x128xf32> -> vector<128x128xf32>
    %26 = arith.addf %19, %25 : vector<128x128xf32>
    %c0_31 = arith.constant 0 : index
    %c0_32 = arith.constant 0 : index
    %c1_33 = arith.constant 1 : index
    %c1_34 = arith.constant 1 : index
    %c0_35 = arith.constant 0 : index
    %27 = vector.load %arg2[%c0_31, %c0_32, %c1_33, %c1_34, %c0_35] : memref<1x1x10x18x4xbf16, #tpu.memory_space<vmem>>, vector<1x1x8x16x4xbf16>
    %28 = vector.shape_cast %27 : vector<1x1x8x16x4xbf16> to vector<8x16x4xbf16>
    %29 = vector.shape_cast %28 : vector<8x16x4xbf16> to vector<128x4xbf16>
    %c4 = arith.constant 4 : index
    %c0_36 = arith.constant 0 : index
    %c0_37 = arith.constant 0 : index
    %30 = vector.load %arg3[%c4, %c0_36, %c0_37] : memref<9x128x4xbf16, #tpu.memory_space<vmem>>, vector<1x128x4xbf16>
    %31 = vector.shape_cast %30 : vector<1x128x4xbf16> to vector<128x4xbf16>
    %cst_38 = arith.constant dense<0.000000e+00> : vector<128x128xf32>
    %32 = tpu.matmul %31, %29, %cst_38 {dimension_numbers = #tpu.dot_dimension_numbers<[1], [1], [0], [0], [0, 0, 1, 0], [], []>} : vector<128x4xbf16>, vector<128x4xbf16>, vector<128x128xf32> -> vector<128x128xf32>
    %33 = arith.addf %26, %32 : vector<128x128xf32>
    %c0_39 = arith.constant 0 : index
    %c0_40 = arith.constant 0 : index
    %c1_41 = arith.constant 1 : index
    %c2_42 = arith.constant 2 : index
    %c0_43 = arith.constant 0 : index
    %34 = vector.load %arg2[%c0_39, %c0_40, %c1_41, %c2_42, %c0_43] : memref<1x1x10x18x4xbf16, #tpu.memory_space<vmem>>, vector<1x1x8x16x4xbf16>
    %35 = vector.shape_cast %34 : vector<1x1x8x16x4xbf16> to vector<8x16x4xbf16>
    %36 = vector.shape_cast %35 : vector<8x16x4xbf16> to vector<128x4xbf16>
    %c5 = arith.constant 5 : index
    %c0_44 = arith.constant 0 : index
    %c0_45 = arith.constant 0 : index
    %37 = vector.load %arg3[%c5, %c0_44, %c0_45] : memref<9x128x4xbf16, #tpu.memory_space<vmem>>, vector<1x128x4xbf16>
    %38 = vector.shape_cast %37 : vector<1x128x4xbf16> to vector<128x4xbf16>
    %cst_46 = arith.constant dense<0.000000e+00> : vector<128x128xf32>
    %39 = tpu.matmul %38, %36, %cst_46 {dimension_numbers = #tpu.dot_dimension_numbers<[1], [1], [0], [0], [0, 0, 1, 0], [], []>} : vector<128x4xbf16>, vector<128x4xbf16>, vector<128x128xf32> -> vector<128x128xf32>
    %40 = arith.addf %33, %39 : vector<128x128xf32>
    %c0_47 = arith.constant 0 : index
    %c0_48 = arith.constant 0 : index
    %c2_49 = arith.constant 2 : index
    %c0_50 = arith.constant 0 : index
    %c0_51 = arith.constant 0 : index
    %41 = vector.load %arg2[%c0_47, %c0_48, %c2_49, %c0_50, %c0_51] : memref<1x1x10x18x4xbf16, #tpu.memory_space<vmem>>, vector<1x1x8x16x4xbf16>
    %42 = vector.shape_cast %41 : vector<1x1x8x16x4xbf16> to vector<8x16x4xbf16>
    %43 = vector.shape_cast %42 : vector<8x16x4xbf16> to vector<128x4xbf16>
    %c6 = arith.constant 6 : index
    %c0_52 = arith.constant 0 : index
    %c0_53 = arith.constant 0 : index
    %44 = vector.load %arg3[%c6, %c0_52, %c0_53] : memref<9x128x4xbf16, #tpu.memory_space<vmem>>, vector<1x128x4xbf16>
    %45 = vector.shape_cast %44 : vector<1x128x4xbf16> to vector<128x4xbf16>
    %cst_54 = arith.constant dense<0.000000e+00> : vector<128x128xf32>
    %46 = tpu.matmul %45, %43, %cst_54 {dimension_numbers = #tpu.dot_dimension_numbers<[1], [1], [0], [0], [0, 0, 1, 0], [], []>} : vector<128x4xbf16>, vector<128x4xbf16>, vector<128x128xf32> -> vector<128x128xf32>
    %47 = arith.addf %40, %46 : vector<128x128xf32>
    %c0_55 = arith.constant 0 : index
    %c0_56 = arith.constant 0 : index
    %c2_57 = arith.constant 2 : index
    %c1_58 = arith.constant 1 : index
    %c0_59 = arith.constant 0 : index
    %48 = vector.load %arg2[%c0_55, %c0_56, %c2_57, %c1_58, %c0_59] : memref<1x1x10x18x4xbf16, #tpu.memory_space<vmem>>, vector<1x1x8x16x4xbf16>
    %49 = vector.shape_cast %48 : vector<1x1x8x16x4xbf16> to vector<8x16x4xbf16>
    %50 = vector.shape_cast %49 : vector<8x16x4xbf16> to vector<128x4xbf16>
    %c7 = arith.constant 7 : index
    %c0_60 = arith.constant 0 : index
    %c0_61 = arith.constant 0 : index
    %51 = vector.load %arg3[%c7, %c0_60, %c0_61] : memref<9x128x4xbf16, #tpu.memory_space<vmem>>, vector<1x128x4xbf16>
    %52 = vector.shape_cast %51 : vector<1x128x4xbf16> to vector<128x4xbf16>
    %cst_62 = arith.constant dense<0.000000e+00> : vector<128x128xf32>
    %53 = tpu.matmul %52, %50, %cst_62 {dimension_numbers = #tpu.dot_dimension_numbers<[1], [1], [0], [0], [0, 0, 1, 0], [], []>} : vector<128x4xbf16>, vector<128x4xbf16>, vector<128x128xf32> -> vector<128x128xf32>
    %54 = arith.addf %47, %53 : vector<128x128xf32>
    %c0_63 = arith.constant 0 : index
    %c0_64 = arith.constant 0 : index
    %c2_65 = arith.constant 2 : index
    %c2_66 = arith.constant 2 : index
    %c0_67 = arith.constant 0 : index
    %55 = vector.load %arg2[%c0_63, %c0_64, %c2_65, %c2_66, %c0_67] : memref<1x1x10x18x4xbf16, #tpu.memory_space<vmem>>, vector<1x1x8x16x4xbf16>
    %56 = vector.shape_cast %55 : vector<1x1x8x16x4xbf16> to vector<8x16x4xbf16>
    %57 = vector.shape_cast %56 : vector<8x16x4xbf16> to vector<128x4xbf16>
    %c8 = arith.constant 8 : index
    %c0_68 = arith.constant 0 : index
    %c0_69 = arith.constant 0 : index
    %58 = vector.load %arg3[%c8, %c0_68, %c0_69] : memref<9x128x4xbf16, #tpu.memory_space<vmem>>, vector<1x128x4xbf16>
    %59 = vector.shape_cast %58 : vector<1x128x4xbf16> to vector<128x4xbf16>
    %cst_70 = arith.constant dense<0.000000e+00> : vector<128x128xf32>
    %60 = tpu.matmul %59, %57, %cst_70 {dimension_numbers = #tpu.dot_dimension_numbers<[1], [1], [0], [0], [0, 0, 1, 0], [], []>} : vector<128x4xbf16>, vector<128x4xbf16>, vector<128x128xf32> -> vector<128x128xf32>
    %61 = arith.addf %54, %60 : vector<128x128xf32>
    %cst_71 = arith.constant dense<0.000000e+00> : vector<128xf32>
    %62 = vector.multi_reduction <add>, %61, %cst_71 [1] : vector<128x128xf32> to vector<128xf32>
    %63 = vector.shape_cast %62 : vector<128xf32> to vector<128x1xf32>
    %64 = arith.mulf %61, %61 : vector<128x128xf32>
    %cst_72 = arith.constant dense<0.000000e+00> : vector<128xf32>
    %65 = vector.multi_reduction <add>, %64, %cst_72 [1] : vector<128x128xf32> to vector<128xf32>
    %66 = vector.shape_cast %65 : vector<128xf32> to vector<128x1xf32>
    %67 = tpu.concatenate %63, %66 in 1 : vector<128x1xf32>, vector<128x1xf32> -> vector<128x2xf32>
    %c0_73 = arith.constant 0 : index
    %c0_74 = arith.constant 0 : index
    %c0_75 = arith.constant 0 : index
    %c0_76 = arith.constant 0 : index
    %68 = vector.load %arg6[%c0_73, %c0_74, %c0_75, %c0_76] : memref<1x1x128x2xf32, #tpu.memory_space<vmem>>, vector<1x1x128x2xf32>
    %69 = vector.shape_cast %68 : vector<1x1x128x2xf32> to vector<128x2xf32>
    %70 = vector.shape_cast %67 : vector<128x2xf32> to vector<1x1x128x2xf32>
    tpu.vector_store %arg6[%c0_73, %c0_74, %c0_75, %c0_76], %70 {strides = array<i32>} : memref<1x1x128x2xf32, #tpu.memory_space<vmem>>, vector<1x1x128x2xf32>,
    %c0_77 = arith.constant 0 : index
    %c0_78 = arith.constant 0 : index
    %71 = vector.load %arg4[%c0_77, %c0_78] : memref<128x1xf32, #tpu.memory_space<vmem>>, vector<128x1xf32>
    %72 = vector.broadcast %71 : vector<128x1xf32> to vector<128x128xf32>
    %73 = arith.addf %61, %72 : vector<128x128xf32>
    %74 = vector.shape_cast %73 : vector<128x128xf32> to vector<1x128x128xf32>
    %75 = arith.truncf %74 : vector<1x128x128xf32> to vector<1x128x128xbf16>
    %c0_79 = arith.constant 0 : index
    %c0_80 = arith.constant 0 : index
    %c0_81 = arith.constant 0 : index
    %76 = vector.load %arg5[%c0_79, %c0_80, %c0_81] : memref<1x128x128xbf16, #tpu.memory_space<vmem>>, vector<1x128x128xbf16>
    tpu.vector_store %arg5[%c0_79, %c0_80, %c0_81], %75 {strides = array<i32>} : memref<1x128x128xbf16, #tpu.memory_space<vmem>>, vector<1x128x128xbf16>,
    return
  }
  func.func @transform_0(%arg0: i32, %arg1: i32) -> (i32, i32, i32, i32, i32) {
    %c0_i32 = arith.constant 0 : i32
    %c0_i32_0 = arith.constant 0 : i32
    %c0_i32_1 = arith.constant 0 : i32
    %c0_i32_2 = arith.constant 0 : i32
    return %arg0, %arg1, %c0_i32, %c0_i32_0, %c0_i32_1 : i32, i32, i32, i32, i32
  }
  func.func @transform_1(%arg0: i32, %arg1: i32) -> (i32, i32, i32) {
    %c0_i32 = arith.constant 0 : i32
    %c0_i32_0 = arith.constant 0 : i32
    %c0_i32_1 = arith.constant 0 : i32
    %c0_i32_2 = arith.constant 0 : i32
    return %c0_i32, %c0_i32_0, %c0_i32_1 : i32, i32, i32
  }
  func.func @transform_2(%arg0: i32, %arg1: i32) -> (i32, i32) {
    %c0_i32 = arith.constant 0 : i32
    %c0_i32_0 = arith.constant 0 : i32
    %c0_i32_1 = arith.constant 0 : i32
    return %c0_i32, %c0_i32_0 : i32, i32
  }
  func.func @transform_3(%arg0: i32, %arg1: i32) -> (i32, i32, i32) {
    %c0_i32 = arith.constant 0 : i32
    %c0_i32_0 = arith.constant 0 : i32
    return %arg0, %c0_i32, %arg1 : i32, i32, i32
  }
  func.func @transform_4(%arg0: i32, %arg1: i32) -> (i32, i32, i32, i32) {
    %c0_i32 = arith.constant 0 : i32
    %c0_i32_0 = arith.constant 0 : i32
    %c0_i32_1 = arith.constant 0 : i32
    return %arg0, %arg1, %c0_i32, %c0_i32_0 : i32, i32, i32, i32
  }
}

</mosaic_0001>

<bundles_post_ra>
// kernel: tpu_custom_call.1
= control target key start
LH: loop header
LB: loop body
LE: loop exit
PB: predicated region body
PF: predicated region fallthrough
CT: control target
= control target key end

     0   :  { %s6796_s0 = inlined_call_operand.hbm [shape: bf16[2,2,10,18,4], index: 0, kind: input, shape index: {}]   ;;  %s6797_s1 = inlined_call_operand.hbm [shape: bf16[9,128,4], index: 1, kind: input, shape index: {}]   ;;  %s6798_s2 = inlined_call_operand.hbm [shape: f32[128,1], index: 2, kind: input, shape index: {}]   ;;  %s6799_s3 = inlined_call_operand.hbm [shape: bf16[2,128,256], index: 3, kind: output, shape index: {0}]   ;;  %s6800_s4 = inlined_call_operand.hbm [shape: f32[2,2,128,2], index: 4, kind: output, shape index: {1}]  }
   0x1   :  { %6811 = sst [smem:[#allocation19_spill]] %s6797_s1 }
   0x2   :  { %6812 = sst [smem:[#allocation20_spill]] %s6798_s2 }
   0x3   :  { %10 = vsyncpa [#allocation3], 0 }
   0x4   :  { %12 = vsyncpa [#allocation3 + $0x1], 0 }
   0x5   :  { %13 = vsyncpa [#allocation6], 0 }
   0x6   :  { %14 = vsyncpa [#allocation4], 0 }
   0x7   :  { %16 = vsyncpa [#allocation4 + $0x1], 0 }
   0x8   :  { %17 = vsyncpa [#allocation10], 0 }
   0x9   :  { %19 = vsyncpa [#allocation10 + $0x1], 0  ;;  %s5478_s15 = smov 0   ;;  %s5480_s16 = smov 0  }
   0xa   :  { %s5482_s17 = smov 0   ;;  %s5484_s18 = smov 0  }
   0xb   :  { %s5486_s19 = smov 0   ;;  %s5488_s20 = smov 0  }
   0xc   :  { %s5490_s21 = smov 0   ;;  %s5492_s22 = smov 0  }
   0xd LB: > { %6813 = sst [smem:[#allocation15_spill]] %s5429_s20  ;;  %s3902_s23 = sadd.s32 4294967295, %s5437_s22   ;;  %s5437_s22 = sphi %s5492_s22, %s25_s22   ;;  %s5433_s21 = sphi %s5490_s21, %s6850_s21   ;;  %s5429_s20 = sphi %s5488_s20, %s6844_s20   ;;  %s5425_s19 = sphi %s5486_s19, %s6849_s19   ;;  %s5421_s18 = sphi %s5484_s18, %s6843_s18   ;;  %s5417_s17 = sphi %s5482_s17, %s6848_s17   ;;  %s5413_s16 = sphi %s5480_s16, %s6847_s16   ;;  %s5409_s15 = sphi %s5478_s15, %s6846_s15  }
   0xe   : > { %s3903_s24 = sadd.s32 4294967294, %s5437_s22   ;;  %p59_p0 = scmp.ne.s32.totalorder %s5413_s16, %s5409_s15 }
   0xf   : > { %p5522_p1 = scmp.eq.s32.totalorder %s3902_s23, 0  ;;  %p5526_p2 = scmp.eq.s32.totalorder %s3902_s23, 3 }
  0x10   : > { %p133_p3 = scmp.eq.s32.totalorder %s3903_s24, 3  ;;  %p3904_p5 = scmp.ge.s32.totalorder %s5437_s22, 1 }
  0x11   : > { %s6814_s25 = scalar_select %p5522_p1, 1, 0 }
  0x12   : > { %s6815_s26 = scalar_select %p5526_p2, 1, 0 }
  0x13   : > { %p5532_p4 = por %p5522_p1, %p59_p0  ;;  %p5537_p6 = por %p133_p3, %p59_p0 }
  0x14   : > { %p168_p7 = scmp.lt.s32.totalorder %s5437_s22, 5  ;;  %s5439_s30 = smov [#allocation5]  }
  0x15   : > { %s6816_s27 = scalar_select %p5532_p4, 1, 0 }
  0x16   : > { %s6817_s28 = scalar_select %p5537_p6, 1, 0 }
  0x17   : > { %p5542_p8 = pnand %p3904_p5, %p168_p7  ;;  %s180_s5 = sshll.u32 %s5439_s30, 4  ;;  %s181_s5 = int_to_ptr.vmem [resolvable:$true] %s180_s5 }
  0x18   : > { %6818 = sst [smem:[#allocation16_spill]] %s6817_s28  ;;  %s5440_s7 = smov [#allocation7]  }
  0x19   : > { %s6819_s29 = scalar_select %p5542_p8, 1, 0 }
  0x1a   : > { %p5012_p9 = pneg %p5542_p8  ;;  %s193_s8 = sshll.u32 %s5440_s7, 4  ;;  %s5554_s8 = int_to_ptr.vmem [resolvable:$true] %s193_s8 }
  0x1b   : > { %s6821_s1 = sld [smem:[#allocation19_spill]] }
  0x1c   : > { %p5550_p10 = pnand %p5012_p9, %p5522_p1 }
  0x1e   : > { %p5219_p12 = pneg %p5550_p10 }
  0x21   : > { %s5217_s11 = scalar_lea.hbm %s6821_s1, 9216 }
  0x22   : > { %p5218_p11 = scmp.ne.s32.totalorder %s6821_s1, %s5217_s11  ;;  %p5224_p3 = scmp.lt.u32.totalorder %s5217_s11, %s6821_s1 }
  0x24   : > { %p5220_p13 = pnand %p5219_p12, %p5218_p11 }
  0x26   : > { %p5221_p0 = pneg %p5220_p13 }
  0x28   : > { %p5226_p5 = pnand %p5224_p3, %p5221_p0 }
  0x2a   : > { %5229 = shalt.err (!%p5226_p5)
}
  0x2b   : > { %s5230_s24 = scalar_lea.vmem %s181_s5, 9216  ;;  %p5238_p1 = scmp.lt.s32.totalorder %s181_s5, %s181_s5 }
  0x2c   : > { %p5231_p7 = scmp.ne.s32.totalorder %s181_s5, %s5230_s24  ;;  %p5239_p4 = scmp.lt.s32.totalorder %s5230_s24, %s5230_s24 }
  0x2e   : > { %p5233_p9 = pnand %p5231_p7, %p5219_p12  ;;  %p5240_p8 = por %p5239_p4, %p5238_p1 }
  0x30   : > { %p5234_p6 = pneg %p5233_p9 }
  0x32   : > { %p5241_p2 = pnand %p5240_p8, %p5234_p6 }
  0x34   : > { %5244 = shalt.err (!%p5241_p2)
}
  0x35   : > { %s6806_s30 = smov 64   ;;  %s6807_s7 = smov 4  }
  0x36   : > { %5015 = dma.hbm_to_vmem [thread:$0]  (!%p5550_p10), %s6821_s1, 9216, %s181_s5, [#allocation6], %s6806_s30, %s6806_s30, %s6807_s7  }
  0x37   : > { %s6822_s2 = sld [smem:[#allocation20_spill]] }
  0x3d   : > { %s5245_s13 = scalar_lea.hbm %s6822_s2, 2048 }
  0x3e   : > { %p5246_p1 = scmp.ne.s32.totalorder %s6822_s2, %s5245_s13  ;;  %p5252_p6 = scmp.lt.u32.totalorder %s5245_s13, %s6822_s2 }
  0x40   : > { %p5248_p2 = pnand %p5246_p1, %p5219_p12 }
  0x42   : > { %p5249_p4 = pneg %p5248_p2 }
  0x44   : > { %p5254_p8 = pnand %p5252_p6, %p5249_p4 }
  0x46   : > { %5257 = shalt.err (!%p5254_p8)
}
  0x47   : > { %s5258_s5 = scalar_lea.vmem %s5554_s8, 2048  ;;  %p5266_p3 = scmp.lt.s32.totalorder %s5554_s8, %s5554_s8 }
  0x48   : > { %p5259_p11 = scmp.ne.s32.totalorder %s5554_s8, %s5258_s5  ;;  %p5267_p5 = scmp.lt.s32.totalorder %s5258_s5, %s5258_s5 }
  0x4a   : > { %p5261_p13 = pnand %p5259_p11, %p5219_p12  ;;  %p5268_p7 = por %p5267_p5, %p5266_p3 }
  0x4c   : > { %p5262_p0 = pneg %p5261_p13 }
  0x4e   : > { %p5269_p9 = pnand %p5268_p7, %p5262_p0 }
  0x50   : > { %5272 = shalt.err (!%p5269_p9)
}
  0x51   : > { %s5443_s28 = smov 128   ;;  %s5444_s9 = smov 8  }
  0x52   : > { %5018 = dma.hbm_to_vmem [thread:$0]  (!%p5550_p10), %s6822_s2, 2048, %s5554_s8, [#allocation6], %s5443_s28, %s5443_s28, %s5444_s9  }
  0x53   : > { %s34_s12 = sadd.s32 1, %s5429_s20  ;;  %s37_s13 = sadd.s32 1, %s5433_s21 }
  0x54   : > { %p35_p12 = scmp.ge.s32.totalorder %s34_s12, 2  ;;  %s46_s14 = sadd.s32 1, %s5417_s17 }
  0x55   : > { %p53_p1 = scmp.ne.s32.totalorder %s5417_s17, %s5413_s16  ;;  %p54_p2 = scmp.eq.s32.totalorder %s5437_s22, 0 }
  0x56   : > { %s6852_s12 = smov (%p35_p12, %s34_s12), 0  ;;  %s6854_s13 = smov (!%p35_p12, %s37_s13), %s5433_s21 }
  0x57   : > { %6823 = sst [smem:[#allocation17_spill]] %s6852_s12  ;;  %s42_s23 = ssub.s32 %s5429_s20, %s6852_s12 }
  0x58   : > { %p5617_p4 = por %p54_p2, %p53_p1  ;;  %p39_p10 = scmp.ge.s32.totalorder %s6854_s13, 2 }
  0x59   : > { %p6825_p6 = scmp.ne.s32.totalorder %s6815_s26, 0  ;;  %p5032_p11 = scmp.lt.s32.totalorder %s5437_s22, 4 }
  0x5a   : > { %s207_s24 = sand.u32 1, %s5417_s17   ;;  %s6856_s13 = smov (%p39_p10, %s6854_s13), 0 }
  0x5b   : > { %p5623_p8 = por %p6825_p6, %p53_p1  ;;  %6827 = sst [smem:[#allocation18_spill]] %s6856_s13 }
  0x5c   : > { %s4994_s5 = smul.u32 120, %s207_s24  ;;  %s41_s28 = ssub.s32 %s5433_s21, %s6856_s13 }
  0x5d   : > { %s4995_s9 = smul.u32 30, %s5429_s20  ;;  %s43_s10 = sor.u32 %s42_s23, %s41_s28 }
  0x5e   : > { %p44_p13 = scmp.eq.s32.totalorder %s43_s10, 0  ;;  %s4996_s11 = smul.u32 60, %s5433_s21 }
  0x5f   : > { %s211_s30 = scalar_lea.vmem [#allocation2], %s4994_s5  ;;  %p5637_p0 = pnand %p5032_p11, %p5617_p4 }
  0x60   : > { %s220_s7 = sshll.u32 %s211_s30, 4  ;;  %s217_s2 = sadd.s32 %s4996_s11, %s4995_s9  ;;  %s5644_s7 = int_to_ptr.vmem [resolvable:$true] %s220_s7 }
  0x61   : > { %s5642_s1 = scalar_select %p44_p13, %s5417_s17, %s46_s14  }
  0x62   : > { %s3908_s12 = sshll.u32 %s217_s2, 6  ;;  %s5651_s30 = scalar_lea.sflag [#allocation3], %s207_s24 }
  0x63   : > { %s5649_s23 = scalar_lea.hbm %s6796_s0, %s3908_s12  ;;  %p5275_p5 = pneg %p5637_p0 }
  0x64   : > { %s5273_s6 = scalar_lea.hbm %s5649_s23, 1920  ;;  %s5278_s20 = scalar_lea.hbm %s6796_s0, 7680 }
  0x65   : > { %p5274_p3 = scmp.ne.s32.totalorder %s5649_s23, %s5273_s6  ;;  %p5279_p12 = scmp.lt.u32.totalorder %s5649_s23, %s6796_s0 }
  0x66   : > { %p5280_p1 = scmp.lt.u32.totalorder %s5278_s20, %s5273_s6  ;;  %p5282_p4 = scmp.lt.u32.totalorder %s5273_s6, %s5649_s23 }
  0x67   : > { %p5276_p7 = pnand %p5275_p5, %p5274_p3 }
  0x68   : > { %p5281_p2 = por %p5280_p1, %p5279_p12 }
  0x69   : > { %p5277_p9 = pneg %p5276_p7 }
  0x6a   : > { %p5283_p10 = por %p5282_p4, %p5281_p2 }
  0x6c   : > { %p5284_p6 = pnand %p5283_p10, %p5277_p9 }
  0x6e   : > { %5287 = shalt.err (!%p5284_p6)
}
  0x6f   : > { %s5288_s24 = scalar_lea.vmem %s5644_s7, 1920  ;;  %s5445_s5 = smov [#allocation2]  }
  0x70   : > { %p5289_p11 = scmp.ne.s32.totalorder %s5644_s7, %s5288_s24  ;;  %s5293_s28 = sshll.u32 %s5445_s5, 4  ;;  %s5294_s28 = int_to_ptr.vmem [resolvable:$false] %s5293_s28 }
  0x71   : > { %s5295_s9 = scalar_lea.vmem %s5294_s28, 3840  ;;  %p5296_p7 = scmp.lt.s32.totalorder %s5644_s7, %s5294_s28 }
  0x72   : > { %p5291_p13 = pnand %p5289_p11, %p5275_p5  ;;  %p5297_p12 = scmp.lt.s32.totalorder %s5295_s9, %s5288_s24 }
  0x74   : > { %p5292_p3 = pneg %p5291_p13  ;;  %p5298_p1 = por %p5297_p12, %p5296_p7 }
  0x76   : > { %p5299_p2 = pnand %p5298_p1, %p5292_p3 }
  0x78   : > { %5302 = shalt.err (!%p5299_p2)
}
  0x79   : > { %s6829_s10 = smov 4   ;;  %s6830_s11 = smov 64  }
  0x7a   : > { %5022 = dma.hbm_to_vmem [thread:$0]  (!%p5637_p0), %s5649_s23, 1920, %s5644_s7, %s5651_s30, %s6830_s11, %s6830_s11, %s6829_s10  }
  0x7b   : > { %p6831_p5 = scmp.ne.s32.totalorder %s6819_s29, 0 }
  0x7c   : > { %s5685_s6 = sand.u32 (!%p6831_p5), 1, %s5413_s16   ;;  %p6832_p9 = scmp.ne.s32.totalorder (!%p6831_p5), %s6816_s27, 0 }
  0x7d   : > { %232 = sbr.rel (%p6831_p5) target bundleno = 938 (0x3aa), region = 32  ;;  %s235_s14 = scalar_lea.sflag (!%p6831_p5), [#allocation3], %s5685_s6 }
  0x7e   : > { %s4997_s2 = smul.u32 (!%p6831_p5), 120, %s5685_s6 }
  0x80   : > { %s5689_s20 = scalar_lea.vmem (!%p6831_p5), [#allocation2], %s4997_s2 }
  0x84   : > { %5392 = dma.done.wait (%p6832_p9), %s235_s14, 1920  }
  0x85   : > { %5394 = vsyncadd (%p6832_p9), %s235_s14, 4294965376  ;;  %p6833_p0 = scmp.ne.s32.totalorder %s6814_s25, 0 }
  0x87   : > { %5396 = dma.done.wait (%p6833_p0), [#allocation6], 11264  }
  0x88   : > { %5398 = vsyncadd (%p6833_p0), [#allocation6], 4294956032  ;;  %vm317_vm0 = vsmask.f32 3328  ;;  %vm318_vm1 = vsmask.f32 7440 }
  0x89   : > { %v5700_v0 = vld [vmem:[%s5689_s20] sm:$0xf]  ;;  %v5703_v1 = vld [vmem:[%s5689_s20 + $0x4] sm:$0xf]  ;;  %v309_v2 = vld [vmem:[%s5689_s20 + $0x8] sm:$0x1] }
  0x8a   : > { %v321_v3 = vshrl.u32 %v5700_v0, 16  ;;  %v324_v4 = vshll.u32 %v5700_v0, 16  ;;  %v330_v5 = vshll.u32 %v5703_v1, 16  ;;  %v334_v6 = vshrl.u32 %v5703_v1, 16  ;;  %v4034_v7 = vld [vmem:[%s5689_s20 + $0xc] sm:$0xf]  ;;  %vm5725_vm3 = vmor %vm317_vm0, %vm318_vm1 }
  0x8b   : > { %v340_v8 = vshll.u32 %v309_v2, 16  ;;  %vm593_vm2 = vcmask 31744   ;;  %v5712_v9 = vld [vmem:[%s5689_s20 + $0x10] sm:$0xf]  ;;  %v5715_v10 = vld [vmem:[%s5689_s20 + $0x14] sm:$0x1] }
  0x8c   : > { %v323_v11 = vrot.slane %v321_v3, 4  ;;  %v326_v12 = vrot.slane %v324_v4, 5  ;;  %v332_v13 = vrot.slane %v330_v5, 5  ;;  %v336_v14 = vrot.slane %v334_v6, 4  ;;  %v5721_v23 = vld [vmem:[%s5689_s20 + $0xc] sm:$0xf] }
  0x8d   : > { %v342_v15 = vrot.slane %v340_v8, 5  ;;  %v1589_v16 = vshrl.u32 %v4034_v7, 16  ;;  %v1592_v17 = vshll.u32 %v4034_v7, 16  ;;  %v1598_v18 = vshll.u32 %v5712_v9, 16  ;;  %v5731_v29 = vld [vmem:[%s5689_s20 + $0x10] sm:$0xf] }
  0x8e   : > { %v327_v19 = vor.u32 %v326_v12, %v323_v11  ;;  %v337_v20 = vor.u32 %v336_v14, %v332_v13  ;;  %v1602_v21 = vshrl.u32 %v5712_v9, 16  ;;  %v1608_v22 = vshll.u32 %v5715_v10, 16  ;;  %v310_v36 = vld [vmem:[%s5689_s20 + $0x14] sm:$0x1]  ;;  %v4037_v44 = vld [vmem:[%s5689_s20 + $0x18] sm:$0xf] }
  0x8f   : > { %v1591_v25 = vrot.slane %v1589_v16, 4  ;;  %v1594_v26 = vrot.slane %v1592_v17, 5  ;;  %v1600_v27 = vrot.slane %v1598_v18, 5  ;;  %v345_v37 = vshrl.u32 %v5721_v23, 16  ;;  %v5113_v39 = vld [vmem:[#allocation5 + $0x40] sm:$0xff]   ;;  %s3912_s25 = sshll.u32 %s5685_s6, 6 }
  0x90   : > { %v328_v30 = vrot.slane %v327_v19, 4  ;;  %v338_v31 = vrot.slane %v337_v20, 4  ;;  %v1604_v32 = vrot.slane %v1602_v21, 4  ;;  %v1610_v33 = vrot.slane %v1608_v22, 5  ;;  %v5115_v45 = vld [vmem:[#allocation5 + $0x100] sm:$0xff]   ;;  %4498 = vmatprep.mubr.msk.bf16.mxu1 %vm593_vm2, %v5113_v39  ;;  %s6588_s27 = scalar_lea.vmem [#allocation8], %s3912_s25 }
  0x91   : > { %v1595_v34 = vor.u32 %v1594_v26, %v1591_v25  ;;  %v348_v38 = vshll.u32 %v5721_v23, 16  ;;  %v354_v43 = vshll.u32 %v5731_v29, 16  ;;  %v347_v48 = vrot.slane %v345_v37, 4  ;;  %v5746_v54 = vld [vmem:[%s5689_s20 + $0x1c] sm:$0xf]  ;;  %4626 = vmatprep.mubr.msk.bf16.mxu0 %vm593_vm2, %v5115_v45  ;;  %s3913_s29 = sshll.u32 %s5685_s6, 7 }
  0x92   : > { %v333_v40 = vsel %vm5725_vm3, %v328_v30, %v332_v13  ;;  %v343_v41 = vsel %vm5725_vm3, %v338_v31, %v342_v15  ;;  %v1605_v42 = vor.u32 %v1604_v32, %v1600_v27  ;;  %v358_v52 = vshrl.u32 %v5731_v29, 16  ;;  %v5754_v58 = vld [vmem:[%s5689_s20 + $0x20] sm:$0x1]  ;;  %v5759_v2 = vld [vmem:[%s5689_s20 + $0x18] sm:$0xf]  ;;  %s6641_s7 = scalar_lea.vmem [#allocation9], %s3913_s29 }
  0x93   : > { %v3922_v46 = vcombine.low %v333_v40, %v343_v41  ;;  %v1596_v47 = vrot.slane %v1595_v34, 4  ;;  %v350_v49 = vrot.slane %v348_v38, 5  ;;  %v356_v51 = vrot.slane %v354_v43, 5  ;;  %v5765_v13 = vld [vmem:[%s5689_s20 + $0x1c] sm:$0xf]  ;;  %s4268_s26 = sshll.u32 %s5425_s19, 5 }
  0x94   : > { %v1606_v50 = vrot.slane %v1605_v42, 4  ;;  %v364_v53 = vshll.u32 %v310_v36, 16  ;;  %v1613_v59 = vshrl.u32 %v4037_v44, 16  ;;  %v360_v61 = vrot.slane %v358_v52, 4  ;;  %v311_v17 = vld [vmem:[%s5689_s20 + $0x20] sm:$0x1]  ;;  %s6702_s9 = sadd.s32 %s5421_s18, %s4268_s26 }
  0x95   : > { %4914 = vmatprep.subr.msk.bf16.mxu1 %vm593_vm2, %v3922_v46  ;;  %v1601_v55 = vsel %vm5725_vm3, %v1596_v47, %v1600_v27  ;;  %v619_v56 = vsel %vm593_vm2, %v3922_v46, 0  ;;  %v351_v57 = vor.u32 %v350_v49, %v347_v48  ;;  %v1616_v63 = vshll.u32 %v4037_v44, 16  ;;  %v4040_v31 = vld [vmem:[%s5689_s20 + $0x24] sm:$0xf]  ;;  %v5780_v41 = vld [vmem:[%s5689_s20 + $0x28] sm:$0xf] }
  0x96   : > { %v1611_v60 = vsel %vm5725_vm3, %v1606_v50, %v1610_v33  ;;  %4483 = vmatpush3.bf16.xpose.msra.mxu1 %v619_v56  ;;  %v366_v62 = vrot.slane %v364_v53, 5  ;;  %v1615_v5 = vrot.slane %v1613_v59, 4  ;;  %v1622_v6 = vshll.u32 %v5746_v54, 16  ;;  %v5787_v49 = vld [vmem:[%s5689_s20 + $0x2c] sm:$0x1]  ;;  %s4270_s23 = sshll.u32 %s5421_s18, 4 }
  0x97   : > { %v4066_v3 = vcombine.low %v1601_v55, %v1611_v60  ;;  %v352_v4 = vrot.slane %v351_v57, 4  ;;  %v361_v7 = vor.u32 %v360_v61, %v356_v51  ;;  %v1618_v8 = vrot.slane %v1616_v63, 5  ;;  %v4083_v35 = vld [vmem:[%s5689_s20 + $0x18] sm:$0xe]  ;;  %s3756_s30 = sadd.s32 %s4270_s23, %s4268_s26  ;;  %s3759_s12 = sshll.u32 %s6641_s7, 4  ;;  %s6690_s12 = int_to_ptr.vmem [resolvable:$true] %s3759_s12 }
  0x98   : > { %v1626_v11 = vshrl.u32 %v5746_v54, 16  ;;  %v1632_v12 = vshll.u32 %v5754_v58, 16  ;;  %v1624_v16 = vrot.slane %v1622_v6, 5  ;;  %v369_v18 = vshrl.u32 %v5759_v2, 16  ;;  %s4272_s19 = sshll.u32 %s3756_s30, 7  ;;  %s3741_s28 = sshll.u32 %s6588_s27, 4  ;;  %s6733_s28 = int_to_ptr.vmem [resolvable:$true] %s3741_s28 }
  0x99   : > { %4946 = vmatprep.subr.msk.bf16.mxu0 %vm593_vm2, %v4066_v3  ;;  %v1886_v14 = vsel %vm593_vm2, %v4066_v3, 0  ;;  %v357_v15 = vsel %vm5725_vm3, %v352_v4, %v356_v51  ;;  %v362_v19 = vrot.slane %v361_v7, 4  ;;  %v1619_v20 = vor.u32 %v1618_v8, %v1615_v5  ;;  %v5790_v51 = vld [vmem:[%s5689_s20 + $0x24] sm:$0xf]  ;;  %v5798_v4 = vld [vmem:[%s5689_s20 + $0x28] sm:$0xf]  ;;  %s6695_s5 = scalar_lea.hbm %s6800_s4, %s4272_s19 }
  0x9a   : > { %4611 = vmatpush3.bf16.xpose.msra.mxu0 %v1886_v14  ;;  %v1628_v21 = vrot.slane %v1626_v11, 4  ;;  %v1634_v22 = vrot.slane %v1632_v12, 5  ;;  %v371_v25 = vrot.slane %v369_v18, 4  ;;  %v372_v26 = vshll.u32 %v5759_v2, 16  ;;  %v312_v12 = vld [vmem:[%s5689_s20 + $0x2c] sm:$0x1] }
  0x9b   : > { %v378_v27 = vshll.u32 %v5765_v13, 16  ;;  %v382_v30 = vshrl.u32 %v5765_v13, 16  ;;  %v367_v32 = vsel %vm5725_vm3, %v362_v19, %v366_v62  ;;  %v1620_v33 = vrot.slane %v1619_v20, 4  ;;  %v4043_v14 = vld [vmem:[%s5689_s20 + $0x30] sm:$0xf]  ;;  %s3727_s10 = scalar_lea.sflag [#allocation10], %s5685_s6 }
  0x9c   : > { %v1629_v34 = vor.u32 %v1628_v21, %v1624_v16  ;;  %v388_v36 = vshll.u32 %v311_v17, 16  ;;  %v3923_v37 = vcombine.low %v357_v15, %v367_v32  ;;  %v374_v38 = vrot.slane %v372_v26, 5  ;;  %s5303_s11 = scalar_lea.vmem %s6690_s12, 2048  ;;  %s5447_s2 = smov [#allocation9]  }
  0x9d   : > { %v380_v39 = vrot.slane %v378_v27, 5  ;;  %v384_v40 = vrot.slane %v382_v30, 4  ;;  %v1625_v42 = vsel %vm5725_vm3, %v1620_v33, %v1624_v16  ;;  %v1637_v45 = vshrl.u32 %v4040_v31, 16  ;;  %p5304_p4 = scmp.ne.s32.totalorder %s6690_s12, %s5303_s11  ;;  %s5307_s14 = sshll.u32 %s5447_s2, 4  ;;  %s5308_s14 = int_to_ptr.vmem [resolvable:$false] %s5307_s14 }
  0x9e   : > { %v1630_v43 = vrot.slane %v1629_v34, 4  ;;  %v390_v44 = vrot.slane %v388_v36, 5  ;;  %4915 = vmatprep.subr.msk.bf16.mxu1 %vm593_vm2, %v3923_v37  ;;  %v622_v46 = vsel %vm593_vm2, %v3923_v37, 0  ;;  %v375_v47 = vor.u32 %v374_v38, %v371_v25  ;;  %v5813_v25 = vld [vmem:[%s5689_s20 + $0x34] sm:$0xf]  ;;  %p5310_p11 = scmp.lt.s32.totalorder %s6690_s12, %s5308_s14 }
  0x9f   : > { %v385_v48 = vor.u32 %v384_v40, %v380_v39  ;;  %v1640_v50 = vshll.u32 %v4040_v31, 16  ;;  %4485 = vmatpush3.bf16.xpose.msra.mxu1 %v622_v46  ;;  %v1639_v53 = vrot.slane %v1637_v45, 4  ;;  %v1646_v55 = vshll.u32 %v5780_v41, 16  ;;  %v5818_v31 = vld [vmem:[%s5689_s20 + $0x38] sm:$0x1]  ;;  %p5305_p10 = pnand %p5304_p4, %p5623_p8 }
  0xa0   : > { %v1635_v52 = vsel %vm5725_vm3, %v1630_v43, %v1634_v22  ;;  %v1650_v56 = vshrl.u32 %v5780_v41, 16  ;;  %v376_v59 = vrot.slane %v375_v47, 4  ;;  %v1656_v3 = vshll.u32 %v5787_v49, 16  ;;  %v5823_v38 = vld [vmem:[%s5689_s20 + $0x30] sm:$0xf] }
  0xa1   : > { %v4067_v57 = vcombine.low %v1625_v42, %v1635_v52  ;;  %v386_v60 = vrot.slane %v385_v48, 4  ;;  %v1642_v61 = vrot.slane %v1640_v50, 5  ;;  %v1648_v62 = vrot.slane %v1646_v55, 5  ;;  %p5306_p6 = pneg %p5305_p10 }
  0xa2   : > { %v1652_v63 = vrot.slane %v1650_v56, 4  ;;  %v393_v5 = vshrl.u32 %v5790_v51, 16  ;;  %v381_v7 = vsel %vm5725_vm3, %v376_v59, %v380_v39  ;;  %v1658_v17 = vrot.slane %v1656_v3, 5 }
  0xa3   : > { %4947 = vmatprep.subr.msk.bf16.mxu0 %vm593_vm2, %v4067_v57  ;;  %v1889_v6 = vsel %vm593_vm2, %v4067_v57, 0  ;;  %v391_v8 = vsel %vm5725_vm3, %v386_v60, %v390_v44  ;;  %v1643_v11 = vor.u32 %v1642_v61, %v1639_v53  ;;  %v396_v20 = vshll.u32 %v5790_v51, 16  ;;  %v5831_v53 = vld [vmem:[%s5689_s20 + $0x34] sm:$0xf]  ;;  %v5837_v61 = vld [vmem:[%s5689_s20 + $0x38] sm:$0x1] }
  0xa4   : > { %4613 = vmatpush3.bf16.xpose.msra.mxu0 %v1889_v6  ;;  %v3924_v15 = vcombine.low %v381_v7, %v391_v8  ;;  %v1653_v16 = vor.u32 %v1652_v63, %v1648_v62  ;;  %v395_v18 = vrot.slane %v393_v5, 4  ;;  %v402_v21 = vshll.u32 %v5798_v4, 16  ;;  %v4046_v6 = vld [vmem:[%s5689_s20 + $0x3c] sm:$0xf] }
  0xa5   : > { %v1644_v19 = vrot.slane %v1643_v11, 4  ;;  %v406_v22 = vshrl.u32 %v5798_v4, 16  ;;  %v412_v30 = vshll.u32 %v312_v12, 16  ;;  %v1661_v32 = vshrl.u32 %v4043_v14, 16 }
  0xa6   : > { %4916 = vmatprep.subr.msk.bf16.mxu1 %vm593_vm2, %v3924_v15  ;;  %v1654_v26 = vrot.slane %v1653_v16, 4  ;;  %v625_v27 = vsel %vm593_vm2, %v3924_v15, 0  ;;  %v398_v34 = vrot.slane %v396_v20, 5  ;;  %v404_v36 = vrot.slane %v402_v21, 5 }
  0xa7   : > { %v1649_v33 = vsel %vm5725_vm3, %v1644_v19, %v1648_v62  ;;  %v408_v37 = vrot.slane %v406_v22, 4  ;;  %4487 = vmatpush3.bf16.xpose.msra.mxu1 %v625_v27  ;;  %v414_v40 = vrot.slane %v412_v30, 5  ;;  %v1663_v42 = vrot.slane %v1661_v32, 4  ;;  %v5851_v19 = vld [vmem:[%s5689_s20 + $0x44] sm:$0x1] }
  0xa8   : > { %v1659_v39 = vsel %vm5725_vm3, %v1654_v26, %v1658_v17  ;;  %v1664_v43 = vshll.u32 %v4043_v14, 16  ;;  %v399_v45 = vor.u32 %v398_v34, %v395_v18  ;;  %v1670_v47 = vshll.u32 %v5813_v25, 16  ;;  %v5847_v14 = vld [vmem:[%s5689_s20 + $0x40] sm:$0xf]  ;;  %v5859_v34 = vld [vmem:[%s5689_s20 + $0x3c] sm:$0xf] }
  0xa9   : > { %v4068_v44 = vcombine.low %v1649_v33, %v1659_v39  ;;  %v409_v46 = vor.u32 %v408_v37, %v404_v36  ;;  %v1674_v50 = vshrl.u32 %v5813_v25, 16  ;;  %v1680_v52 = vshll.u32 %v5818_v31, 16 }
  0xaa   : > { %v1666_v48 = vrot.slane %v1664_v43, 5  ;;  %v417_v55 = vshrl.u32 %v5823_v38, 16  ;;  %v400_v57 = vrot.slane %v399_v45, 4  ;;  %v1672_v60 = vrot.slane %v1670_v47, 5 }
  0xab   : > { %4948 = vmatprep.subr.msk.bf16.mxu0 %vm593_vm2, %v4068_v44  ;;  %v1892_v56 = vsel %vm593_vm2, %v4068_v44, 0  ;;  %v410_v59 = vrot.slane %v409_v46, 4  ;;  %v1676_v63 = vrot.slane %v1674_v50, 4  ;;  %v1682_v3 = vrot.slane %v1680_v52, 5 }
  0xac   : > { %4615 = vmatpush3.bf16.xpose.msra.mxu0 %v1892_v56  ;;  %v1667_v62 = vor.u32 %v1666_v48, %v1663_v42  ;;  %v419_v5 = vrot.slane %v417_v55, 4  ;;  %v405_v7 = vsel %vm5725_vm3, %v400_v57, %v404_v36  ;;  %v420_v11 = vshll.u32 %v5823_v38, 16  ;;  %v5867_v57 = vld [vmem:[%s5689_s20 + $0x40] sm:$0xf] }
  0xad   : > { %v415_v8 = vsel %vm5725_vm3, %v410_v59, %v414_v40  ;;  %v426_v12 = vshll.u32 %v5831_v53, 16  ;;  %v1677_v17 = vor.u32 %v1676_v63, %v1672_v60  ;;  %v430_v18 = vshrl.u32 %v5831_v53, 16 }
  0xae   : > { %v3925_v15 = vcombine.low %v405_v7, %v415_v8  ;;  %v1668_v16 = vrot.slane %v1667_v62, 4  ;;  %v422_v20 = vrot.slane %v420_v11, 5  ;;  %v436_v22 = vshll.u32 %v5837_v61, 16 }
  0xaf   : > { %v428_v21 = vrot.slane %v426_v12, 5  ;;  %v1685_v26 = vshrl.u32 %v4046_v6, 16  ;;  %v1678_v30 = vrot.slane %v1677_v17, 4  ;;  %v432_v33 = vrot.slane %v430_v18, 4 }
  0xb0   : > { %4917 = vmatprep.subr.msk.bf16.mxu1 %vm593_vm2, %v3925_v15  ;;  %v1673_v27 = vsel %vm5725_vm3, %v1668_v16, %v1672_v60  ;;  %v628_v32 = vsel %vm593_vm2, %v3925_v15, 0  ;;  %v423_v36 = vor.u32 %v422_v20, %v419_v5  ;;  %v438_v37 = vrot.slane %v436_v22, 5  ;;  %v5875_v5 = vld [vmem:[%s5689_s20 + $0x44] sm:$0x1]  ;;  %v5882_v15 = vld [vmem:[%s5689_s20 + $0x4c] sm:$0xf] }
  0xb1   : > { %4489 = vmatpush3.bf16.xpose.msra.mxu1 %v628_v32  ;;  %v1687_v39 = vrot.slane %v1685_v26, 4  ;;  %v1688_v40 = vshll.u32 %v4046_v6, 16  ;;  %v1683_v42 = vsel %vm5725_vm3, %v1678_v30, %v1682_v3  ;;  %v433_v43 = vor.u32 %v432_v33, %v428_v21  ;;  %v4049_v6 = vld [vmem:[%s5689_s20 + $0x48] sm:$0xf] }
  0xb2   : > { %v1694_v44 = vshll.u32 %v5847_v14, 16  ;;  %v1698_v45 = vshrl.u32 %v5847_v14, 16  ;;  %v4069_v46 = vcombine.low %v1673_v27, %v1683_v42  ;;  %v424_v47 = vrot.slane %v423_v36, 4  ;;  %v5890_v22 = vld [vmem:[%s5689_s20 + $0x48] sm:$0xf] }
  0xb3   : > { %v1690_v48 = vrot.slane %v1688_v40, 5  ;;  %v1704_v50 = vshll.u32 %v5851_v19, 16  ;;  %v434_v52 = vrot.slane %v433_v43, 4  ;;  %v441_v59 = vshrl.u32 %v5859_v34, 16 }
  0xb4   : > { %v1696_v55 = vrot.slane %v1694_v44, 5  ;;  %v1700_v56 = vrot.slane %v1698_v45, 4  ;;  %4949 = vmatprep.subr.msk.bf16.mxu0 %vm593_vm2, %v4069_v46  ;;  %v1895_v60 = vsel %vm593_vm2, %v4069_v46, 0  ;;  %v429_v62 = vsel %vm5725_vm3, %v424_v47, %v428_v21  ;;  %v5887_v21 = vld [vmem:[%s5689_s20 + $0x50] sm:$0x1] }
  0xb5   : > { %v1691_v63 = vor.u32 %v1690_v48, %v1687_v39  ;;  %v1706_v3 = vrot.slane %v1704_v50, 5  ;;  %4617 = vmatpush3.bf16.xpose.msra.mxu0 %v1895_v60  ;;  %v439_v7 = vsel %vm5725_vm3, %v434_v52, %v438_v37  ;;  %v443_v11 = vrot.slane %v441_v59, 4  ;;  %v5900_v45 = vld [vmem:[%s5689_s20 + $0x4c] sm:$0xf]  ;;  %v5904_v52 = vld [vmem:[%s5689_s20 + $0x50] sm:$0x1] }
  0xb6   : > { %v1701_v8 = vor.u32 %v1700_v56, %v1696_v55  ;;  %v444_v12 = vshll.u32 %v5859_v34, 16  ;;  %v3926_v16 = vcombine.low %v429_v62, %v439_v7  ;;  %v450_v18 = vshll.u32 %v5867_v57, 16  ;;  %v4052_v62 = vld [vmem:[%s5689_s20 + $0x54] sm:$0xf] }
  0xb7   : > { %v1692_v17 = vrot.slane %v1691_v63, 4  ;;  %v454_v20 = vshrl.u32 %v5867_v57, 16  ;;  %v460_v30 = vshll.u32 %v5875_v5, 16  ;;  %v1709_v32 = vshrl.u32 %v4049_v6, 16 }
  0xb8   : > { %v1702_v26 = vrot.slane %v1701_v8, 4  ;;  %v446_v27 = vrot.slane %v444_v12, 5  ;;  %4918 = vmatprep.subr.msk.bf16.mxu1 %vm593_vm2, %v3926_v16  ;;  %v631_v36 = vsel %vm593_vm2, %v3926_v16, 0  ;;  %v452_v37 = vrot.slane %v450_v18, 5 }
  0xb9   : > { %v1697_v33 = vsel %vm5725_vm3, %v1692_v17, %v1696_v55  ;;  %v456_v39 = vrot.slane %v454_v20, 4  ;;  %4491 = vmatpush3.bf16.xpose.msra.mxu1 %v631_v36  ;;  %v462_v43 = vrot.slane %v460_v30, 5  ;;  %v1711_v44 = vrot.slane %v1709_v32, 4 }
  0xba   : > { %v1707_v40 = vsel %vm5725_vm3, %v1702_v26, %v1706_v3  ;;  %v447_v42 = vor.u32 %v446_v27, %v443_v11  ;;  %v1712_v48 = vshll.u32 %v4049_v6, 16  ;;  %v1718_v50 = vshll.u32 %v5882_v15, 16  ;;  %v5919_v27 = vld [vmem:[%s5689_s20 + $0x58] sm:$0xf] }
  0xbb   : > { %v4070_v46 = vcombine.low %v1697_v33, %v1707_v40  ;;  %v457_v47 = vor.u32 %v456_v39, %v452_v37  ;;  %v1722_v56 = vshrl.u32 %v5882_v15, 16  ;;  %v1728_v59 = vshll.u32 %v5887_v21, 16 }
  0xbc   : > { %v448_v55 = vrot.slane %v447_v42, 4  ;;  %v465_v60 = vshrl.u32 %v5890_v22, 16  ;;  %v1714_v7 = vrot.slane %v1712_v48, 5  ;;  %v1720_v6 = vrot.slane %v1718_v50, 5 }
  0xbd   : > { %4950 = vmatprep.subr.msk.bf16.mxu0 %vm593_vm2, %v4070_v46  ;;  %v1898_v63 = vsel %vm593_vm2, %v4070_v46, 0  ;;  %v458_v3 = vrot.slane %v457_v47, 4  ;;  %v1724_v11 = vrot.slane %v1722_v56, 4  ;;  %v1730_v12 = vrot.slane %v1728_v59, 5 }
  0xbe   : > { %4619 = vmatpush3.bf16.xpose.msra.mxu0 %v1898_v63  ;;  %v453_v8 = vsel %vm5725_vm3, %v448_v55, %v452_v37  ;;  %v467_v16 = vrot.slane %v465_v60, 4  ;;  %v1715_v18 = vor.u32 %v1714_v7, %v1711_v44  ;;  %v468_v20 = vshll.u32 %v5890_v22, 16  ;;  %v5924_v37 = vld [vmem:[%s5689_s20 + $0x5c] sm:$0x1] }
  0xbf   : > { %v463_v17 = vsel %vm5725_vm3, %v458_v3, %v462_v43  ;;  %v474_v26 = vshll.u32 %v5900_v45, 16  ;;  %v1725_v32 = vor.u32 %v1724_v11, %v1720_v6  ;;  %v478_v33 = vshrl.u32 %v5900_v45, 16  ;;  %v5927_v43 = vld [vmem:[%s5689_s20 + $0x54] sm:$0xf]  ;;  %v5938_v11 = vld [vmem:[%s5689_s20 + $0x58] sm:$0xf] }
  0xc0   : > { %v3927_v30 = vcombine.low %v453_v8, %v463_v17  ;;  %v484_v36 = vshll.u32 %v5904_v52, 16  ;;  %v1716_v39 = vrot.slane %v1715_v18, 4  ;;  %v470_v40 = vrot.slane %v468_v20, 5  ;;  %v5942_v20 = vld [vmem:[%s5689_s20 + $0x5c] sm:$0x1] }
  0xc1   : > { %v476_v42 = vrot.slane %v474_v26, 5  ;;  %v1733_v46 = vshrl.u32 %v4052_v62, 16  ;;  %v1726_v44 = vrot.slane %v1725_v32, 4  ;;  %v480_v48 = vrot.slane %v478_v33, 4  ;;  %v4055_v32 = vld [vmem:[%s5689_s20 + $0x60] sm:$0xf] }
  0xc2   : > { %4919 = vmatprep.subr.msk.bf16.mxu1 %vm593_vm2, %v3927_v30  ;;  %v634_v47 = vsel %vm593_vm2, %v3927_v30, 0  ;;  %v486_v50 = vrot.slane %v484_v36, 5  ;;  %v1721_v55 = vsel %vm5725_vm3, %v1716_v39, %v1720_v6  ;;  %v471_v56 = vor.u32 %v470_v40, %v467_v16 }
  0xc3   : > { %4493 = vmatpush3.bf16.xpose.msra.mxu1 %v634_v47  ;;  %v1735_v59 = vrot.slane %v1733_v46, 4  ;;  %v1736_v60 = vshll.u32 %v4052_v62, 16  ;;  %vm988_vm4 = vcmask 1042432   ;;  %vm989_vm5 = vcmask 1046532  }
  0xc4   : > { %v1731_v63 = vsel %vm5725_vm3, %v1726_v44, %v1730_v12  ;;  %v481_v3 = vor.u32 %v480_v48, %v476_v42  ;;  %v1742_v7 = vshll.u32 %v5919_v27, 16  ;;  %v1746_v8 = vshrl.u32 %v5919_v27, 16  ;;  %vm5975_vm6 = vmor %vm988_vm4, %vm989_vm5 }
  0xc5   : > { %v4071_v17 = vcombine.low %v1721_v55, %v1731_v63  ;;  %v472_v6 = vrot.slane %v471_v56, 4  ;;  %v1738_v18 = vrot.slane %v1736_v60, 5  ;;  %v1752_v16 = vshll.u32 %v5924_v37, 16  ;;  %v5954_v55 = vld [vmem:[%s5689_s20 + $0x64] sm:$0xf] }
  0xc6   : > { %v482_v62 = vrot.slane %v481_v3, 4  ;;  %v1744_v26 = vrot.slane %v1742_v7, 5  ;;  %v1748_v30 = vrot.slane %v1746_v8, 4  ;;  %v489_v12 = vshrl.u32 %v5927_v43, 16 }
  0xc7   : > { %4951 = vmatprep.subr.msk.bf16.mxu0 %vm593_vm2, %v4071_v17  ;;  %v1901_v33 = vsel %vm593_vm2, %v4071_v17, 0  ;;  %v477_v36 = vsel %vm5725_vm3, %v472_v6, %v476_v42  ;;  %v1739_v39 = vor.u32 %v1738_v18, %v1735_v59  ;;  %v1754_v40 = vrot.slane %v1752_v16, 5  ;;  %v5959_v42 = vld [vmem:[%s5689_s20 + $0x68] sm:$0x1] }
  0xc8   : > { %4621 = vmatpush3.bf16.xpose.msra.mxu0 %v1901_v33  ;;  %v487_v46 = vsel %vm5725_vm3, %v482_v62, %v486_v50  ;;  %v1749_v44 = vor.u32 %v1748_v30, %v1744_v26  ;;  %v491_v47 = vrot.slane %v489_v12, 4  ;;  %v492_v48 = vshll.u32 %v5927_v43, 16  ;;  %v4082_v62 = vld [vmem:[%s5689_s20 + $0xc] sm:$0xe] }
  0xc9   : > { %v3928_v56 = vcombine.low %v477_v36, %v487_v46  ;;  %v1740_v60 = vrot.slane %v1739_v39, 4  ;;  %v498_v63 = vshll.u32 %v5938_v11, 16  ;;  %v502_v3 = vshrl.u32 %v5938_v11, 16 }
  0xca   : > { %v1750_v59 = vrot.slane %v1749_v44, 4  ;;  %v494_v7 = vrot.slane %v492_v48, 5  ;;  %v508_v8 = vshll.u32 %v5942_v20, 16  ;;  %v1757_v50 = vshrl.u32 %v4055_v32, 16 }
  0xcb   : > { %4920 = vmatprep.subr.msk.bf16.mxu1 %vm593_vm2, %v3928_v56  ;;  %v1745_v17 = vsel %vm5725_vm3, %v1740_v60, %v1744_v26  ;;  %v637_v6 = vsel %vm593_vm2, %v3928_v56, 0  ;;  %v500_v18 = vrot.slane %v498_v63, 5  ;;  %v504_v16 = vrot.slane %v502_v3, 4  ;;  %v5203_v60 = vld [vmem:[#allocation5 + $0x208] sm:$0xff]  }
  0xcc   : > { %v1755_v30 = vsel %vm5725_vm3, %v1750_v59, %v1754_v40  ;;  %4495 = vmatpush3.bf16.xpose.msra.mxu1 %v637_v6  ;;  %v495_v12 = vor.u32 %v494_v7, %v491_v47  ;;  %v510_v33 = vrot.slane %v508_v8, 5  ;;  %v1759_v36 = vrot.slane %v1757_v50, 4 }
  0xcd   : > { %v4072_v39 = vcombine.low %v1745_v17, %v1755_v30  ;;  %v505_v46 = vor.u32 %v504_v16, %v500_v18  ;;  %v1760_v44 = vshll.u32 %v4055_v32, 16  ;;  %v1766_v48 = vshll.u32 %v5954_v55, 16 }
  0xce   : > { %v496_v28 = vrot.slane %v495_v12, 4  ;;  %v1770_v26 = vshrl.u32 %v5954_v55, 16  ;;  %v1776_v56 = vshll.u32 %v5959_v42, 16  ;;  %v4090_v40 = vrot.slane %v4082_v62, 9 }
  0xcf   : > { %4952 = vmatprep.subr.msk.bf16.mxu0 %vm593_vm2, %v4072_v39  ;;  %v1904_v47 = vsel %vm593_vm2, %v4072_v39, 0  ;;  %v506_v32 = vrot.slane %v505_v46, 4  ;;  %v1762_v63 = vrot.slane %v1760_v44, 5  ;;  %v1768_v3 = vrot.slane %v1766_v48, 5 }
  0xd0   : > { %4623 = vmatpush3.bf16.xpose.msra.mxu0 %v1904_v47  ;;  %v501_v59 = vsel %vm5725_vm3, %v496_v28, %v500_v18  ;;  %v1772_v7 = vrot.slane %v1770_v26, 4  ;;  %v3946_v8 = vcombine.low %v5700_v0, %v5703_v1  ;;  %v6838_v6 = vrot.slane %v5712_v9, 5  ;;  %v4084_v18 = vld [vmem:[%s5689_s20 + $0x24] sm:$0xe]  ;;  %v4085_v47 = vld [vmem:[%s5689_s20 + $0x30] sm:$0xe] }
  0xd1   : > { %v511_v50 = vsel %vm5725_vm3, %v506_v32, %v510_v33  ;;  %v1763_v17 = vor.u32 %v1762_v63, %v1759_v36  ;;  %v1778_v46 = vrot.slane %v1776_v56, 5  ;;  %v4091_v28 = vrot.slane %v4083_v35, 9  ;;  %v5116_v63 = vld [vmem:[#allocation5 + $0x48] sm:$0xff]  }
  0xd2   : > { %v2057_v16 = vsel %vm5975_vm6, %v4090_v40, %v6838_v6  ;;  %v6839_v62 = vmov %v6838_v6  ;;  %v3929_v12 = vcombine.low %v501_v59, %v511_v50  ;;  %v1773_v39 = vor.u32 %v1772_v7, %v1768_v3  ;;  %v4086_v7 = vld [vmem:[%s5689_s20 + $0x3c] sm:$0xe] }
  0xd3   : > { %v2058_v30 = vrot.slane %v6839_v62, 4  ;;  %v1764_v44 = vrot.slane %v1763_v17, 4  ;;  %v6840_v0 = vrot.slane %v5715_v10, 5  ;;  %v2063_v33 = vrot.slane %v5746_v54, 5 }
  0xd4   : > { %v2066_v36 = vrot.slane %v5754_v58, 5  ;;  %4921 = vmatprep.subr.msk.bf16.mxu1 %vm593_vm2, %v3929_v12  ;;  %v1774_v9 = vrot.slane %v1773_v39, 4  ;;  %v640_v48 = vsel %vm593_vm2, %v3929_v12, 0  ;;  %v4092_v58 = vrot.slane %v4084_v18, 9 }
  0xd5   : > { %v2060_v1 = vsel %vm5975_vm6, %v2058_v30, %v6840_v0  ;;  %v1769_v35 = vsel %vm5725_vm3, %v1764_v44, %v1768_v3  ;;  %4497 = vmatpush3.bf16.xpose.msra.mxu1 %v640_v48  ;;  %v2064_v10 = vsel %vm5975_vm6, %v4091_v28, %v2063_v33  ;;  %v2065_v56 = vrot.slane %v2063_v33, 4  ;;  %v5125_v48 = vld [vmem:[#allocation5 + $0x58] sm:$0xff]  }
  0xd6   : > { %v4106_v26 = vcombine.low %v2057_v16, %v2060_v1  ;;  %v1779_v54 = vsel %vm5725_vm3, %v1774_v9, %v1778_v46  ;;  %4922 = vmatprep.subr.msk.bf16.mxu1 %vm593_vm2, %v3946_v8  ;;  %v2070_v40 = vrot.slane %v5780_v41, 5  ;;  %v2073_v3 = vrot.slane %v5787_v49, 5  ;;  %v5122_v16 = vld [vmem:[#allocation5 + $0x50] sm:$0xff]  }
  0xd7   : > { %v4073_v32 = vcombine.low %v1769_v35, %v1779_v54  ;;  %v2067_v59 = vsel %vm5975_vm6, %v2065_v56, %v2066_v36  ;;  %v4093_v41 = vrot.slane %v4085_v47, 9  ;;  %v2077_v30 = vrot.slane %v5813_v25, 5 }
  0xd8   : > { %v4107_v50 = vcombine.low %v2064_v10, %v2067_v59  ;;  %v2071_v17 = vsel %vm5975_vm6, %v4092_v58, %v2070_v40  ;;  %v2072_v6 = vrot.slane %v2070_v40, 4  ;;  %v2080_v12 = vrot.slane %v5818_v31, 5  ;;  %v5127_v10 = vld [vmem:[#allocation5 + $0x60] sm:$0xff]   ;;  %v5134_v59 = vld [vmem:[#allocation5 + $0x130] sm:$0xff]  }
  0xd9   : > { %4953 = vmatprep.subr.msk.bf16.mxu0 %vm593_vm2, %v4073_v32  ;;  %v1907_v62 = vsel %vm593_vm2, %v4073_v32, 0  ;;  %v844_v39 = vsel %vm593_vm2, %v3946_v8, 0  ;;  %v3947_v49 = vcombine.low %v5721_v23, %v5731_v29  ;;  %v6028_v28 = vcombine.low %v5823_v38, %v5831_v53  ;;  %v5117_v38 = vld [vmem:[#allocation5 + $0x108] sm:$0xff]   ;;  %v5129_v58 = vld [vmem:[#allocation5 + $0x120] sm:$0xff]  }
  0xda   : > { %4625 = vmatpush3.bf16.xpose.msra.mxu0 %v1907_v62  ;;  %v2074_v46 = vsel %vm5975_vm6, %v2072_v6, %v2073_v3  ;;  %v2078_v25 = vsel %vm5975_vm6, %v4093_v41, %v2077_v30  ;;  %v2079_v31 = vrot.slane %v2077_v30, 4  ;;  %v4094_v44 = vrot.slane %v4086_v7, 9  ;;  %v968_v32 = vld [vmem:[%s5689_s20 + $0x30] sm:$0xe]  ;;  %v969_v3 = vld [vmem:[%s5689_s20 + $0x3c] sm:$0xe] }
  0xdb   : > { %4954 = vmatprep.subr.msk.bf16.mxu0 %vm593_vm2, %v4106_v26  ;;  %v4108_v18 = vcombine.low %v2071_v17, %v2074_v46  ;;  %v2084_v8 = vrot.slane %v5847_v14, 5  ;;  %v2087_v23 = vrot.slane %v5851_v19, 5  ;;  %v6038_v29 = vcombine.low %v5859_v34, %v5867_v57  ;;  %v5124_v19 = vld [vmem:[#allocation5 + $0x110] sm:$0xff]  }
  0xdc   : > { %4499 = vmatmul.mubr.msk.bf16.vlgmr.msra.gmra.mrb[0].mxu1 %vm593_vm2, %v5116_v63  ;;  %v2081_v0 = vsel %vm5975_vm6, %v2079_v31, %v2080_v12  ;;  %v2216_v36 = vsel %vm593_vm2, %v4106_v26, 0  ;;  %v6051_v34 = vcombine.low %v5890_v22, %v5900_v45  ;;  %v847_v56 = vsel %vm593_vm2, %v3947_v49, 0  ;;  %v5126_v26 = vld [vmem:[#allocation5 + $0x118] sm:$0xff]   ;;  %v5131_v63 = vld [vmem:[#allocation5 + $0x128] sm:$0xff]  }
  0xdd   : > { %4515 = vmatpush3.bf16.xpose.msra.mxu1 %v844_v39  ;;  %4502 = vmatprep.mubr.msk.bf16.mxu1 %vm593_vm2, %v5122_v16  ;;  %v6044_v1 = vcombine.low %v2078_v25, %v2081_v0  ;;  %v2085_v14 = vsel %vm5975_vm6, %v4094_v44, %v2084_v8  ;;  %v2086_v33 = vrot.slane %v2084_v8, 4  ;;  %v3948_v54 = vcombine.low %v5759_v2, %v5765_v13  ;;  %v5130_v13 = vld [vmem:[#allocation5 + $0x68] sm:$0xff]   ;;  %v970_v17 = vld [vmem:[%s5689_s20 + $0x48] sm:$0xe]  ;;  %v5137_v16 = vld [vmem:[#allocation5] sm:$0xff]  }
  0xde   : > { %4923 = vmatprep.subr.msk.bf16.mxu1 %vm593_vm2, %v3947_v49  ;;  %v6064_v22 = vcombine.low %v5927_v43, %v5938_v11  ;;  %v2219_v2 = vsel %vm593_vm2, %v4107_v50, 0  ;;  %v5132_v43 = vld [vmem:[#allocation5 + $0x70] sm:$0xff]   ;;  %v3949_v47 = vcombine.low %v5790_v51, %v5798_v4  ;;  %v3966_v7 = vrot.slane %v968_v32, 9  ;;  %v5135_v51 = vld [vmem:[#allocation5 + $0x78] sm:$0xff]  }
  0xdf   : > { %v2088_v9 = vsel %vm5975_vm6, %v2086_v33, %v2087_v23  ;;  %v850_v40 = vsel %vm593_vm2, %v3948_v54, 0  ;;  %v1024_v4 = vrot.slane %v5837_v61, 5  ;;  %v2222_v6 = vsel %vm593_vm2, %v4108_v18, 0  ;;  %v971_v49 = vld [vmem:[%s5689_s20 + $0x54] sm:$0xe] }
  0xe0   : > { %v6056_v35 = vcombine.low %v2085_v14, %v2088_v9  ;;  %v3967_v30 = vrot.slane %v969_v3, 9  ;;  %v1028_v12 = vrot.slane %v5867_v57, 5  ;;  %v1031_v39 = vrot.slane %v5875_v5, 5  ;;  %v5136_v23 = vld [vmem:[#allocation5 + $0x138] sm:$0xff]  }
  0xe1   : > { %4627 = vmatmul.mubr.msk.bf16.vlgmr.msra.gmra.mrb[0].mxu0 %vm593_vm2, %v5117_v38  ;;  %v3968_v46 = vrot.slane %v970_v17, 9  ;;  %v1035_v5 = vrot.slane %v5900_v45, 5  ;;  %v1038_v31 = vrot.slane %v5904_v52, 5  ;;  %v3969_v44 = vrot.slane %v971_v49, 9  ;;  %v4087_v45 = vld [vmem:[%s5689_s20 + $0x48] sm:$0xe] }
  0xe2   : > { %4643 = vmatpush3.bf16.xpose.msra.mxu0 %v2216_v36  ;;  %4630 = vmatprep.mubr.msk.bf16.mxu0 %vm593_vm2, %v5124_v19  ;;  %v1029_v57 = vsel %vm5975_vm6, %v3967_v30, %v1028_v12  ;;  %v1030_v25 = vrot.slane %v1028_v12, 4  ;;  %v2091_v8 = vrot.slane %v5882_v15, 5  ;;  %v1042_v52 = vrot.slane %v5938_v11, 5  ;;  %v5138_v19 = vld [vmem:[#allocation5 + $0x140] sm:$0xff]  }
  0xe3   : > { %4955 = vmatprep.subr.msk.bf16.mxu0 %vm593_vm2, %v4107_v50  ;;  %v1021_v50 = vrot.slane %v5831_v53, 5  ;;  %v853_v53 = vsel %vm593_vm2, %v3949_v47, 0  ;;  %v1036_v0 = vsel %vm5975_vm6, %v3968_v46, %v1035_v5  ;;  %v1037_v14 = vrot.slane %v1035_v5, 4 }
  0xe4   : > { %4503 = vmatmul.mubr.msk.bf16.gmra.mrb[4].mxu1 %vm593_vm2, %v5125_v48  ;;  %v1032_v38 = vsel %vm5975_vm6, %v1030_v25, %v1031_v39  ;;  %v1045_v15 = vrot.slane %v5942_v20, 5  ;;  %v2225_v9 = vsel %vm593_vm2, %v6044_v1, 0  ;;  %v4095_v11 = vrot.slane %v4087_v45, 9  ;;  %v965_v25 = vld [vmem:[%s5689_s20 + $0xc] sm:$0xe] }
  0xe5   : > { %4517 = vmatpush3.bf16.xpose.msra.mxu1 %v847_v56  ;;  %4506 = vmatprep.mubr.msk.bf16.mxu1 %vm593_vm2, %v5127_v10  ;;  %v1022_v62 = vsel %vm5975_vm6, %v3966_v7, %v1021_v50  ;;  %v1023_v41 = vrot.slane %v1021_v50, 4  ;;  %v6112_v33 = vcombine.low %v1029_v57, %v1032_v38  ;;  %v1039_v36 = vsel %vm5975_vm6, %v1037_v14, %v1038_v31 }
  0xe6   : > { %4924 = vmatprep.subr.msk.bf16.mxu1 %vm593_vm2, %v3948_v54  ;;  %v6122_v48 = vcombine.low %v1036_v0, %v1039_v36  ;;  %v1043_v10 = vsel %vm5975_vm6, %v3969_v44, %v1042_v52  ;;  %v1044_v56 = vrot.slane %v1042_v52, 4  ;;  %v2093_v54 = vrot.slane %v2091_v8, 4  ;;  %v5139_v0 = vld [vmem:[%s5689_s20 + $0x18] sm:$0xff]  }
  0xe7   : > { %v1025_v61 = vsel %vm5975_vm6, %v1023_v41, %v1024_v4  ;;  %v2094_v20 = vrot.slane %v5887_v21, 5  ;;  %v2105_v7 = vrot.slane %v5954_v55, 5  ;;  %v5210_v55 = vld [vmem:[%s5689_s20 + $0x8] sm:$0x1]  ;;  %v865_v5 = vsel %vm593_vm2, %v6064_v22, 0  ;;  %v5140_v36 = vld [vmem:[#allocation5 + $0x8] sm:$0xff]  }
  0xe8   : > { %v996_v41 = vrot.slane %v5210_v55, 5  ;;  %v3963_v44 = vrot.slane %v965_v25, 9  ;;  %v966_v52 = vld [vmem:[%s5689_s20 + $0x18] sm:$0xe]  ;;  %v5156_v55 = vld [vmem:[#allocation5 + $0x30] sm:$0xff]   ;;  %vm3495_vm7 = vcmask 7168  }
  0xe9   : > { %4631 = vmatmul.mubr.msk.bf16.gmra.mrb[4].mxu0 %vm593_vm2, %v5126_v26  ;;  %v1046_v26 = vsel %vm5975_vm6, %v1044_v56, %v1045_v15  ;;  %v2095_v21 = vsel %vm5975_vm6, %v2093_v54, %v2094_v20  ;;  %v5213_v15 = vld [vmem:[%s5689_s20 + $0x1c] sm:$0xf]  ;;  %v5214_v20 = vld [vmem:[%s5689_s20 + $0x20] sm:$0x1]  ;;  %vm3512_vm8 = vcmask 15360  }
  0xea   : > { %4645 = vmatpush3.bf16.xpose.msra.mxu0 %v2219_v2  ;;  %4634 = vmatprep.mubr.msk.bf16.mxu0 %vm593_vm2, %v5129_v58  ;;  %v6133_v58 = vcombine.low %v1043_v10, %v1046_v26  ;;  %v2092_v2 = vsel %vm5975_vm6, %v4095_v11, %v2091_v8  ;;  %v3964_v11 = vrot.slane %v966_v52, 9  ;;  %v1010_v26 = vrot.slane %v5214_v20, 5  ;;  %v5163_v25 = vld [vmem:[#allocation5 + $0x180] sm:$0xff]  }
  0xeb   : > { %4956 = vmatprep.subr.msk.bf16.mxu0 %vm593_vm2, %v4108_v18  ;;  %v6096_v18 = vcombine.low %v1022_v62, %v1025_v61  ;;  %v862_v62 = vsel %vm593_vm2, %v6051_v34, 0 }
  0xec   : > { %4507 = vmatmul.mubr.msk.bf16.gmra.mrb[8].mxu1 %vm593_vm2, %v5130_v13  ;;  %v2098_v13 = vrot.slane %v5919_v27, 5 }
  0xed   : > { %4519 = vmatpush3.bf16.xpose.msra.mxu1 %v850_v40  ;;  %4510 = vmatprep.mubr.msk.bf16.mxu1 %vm593_vm2, %v5132_v43  ;;  %v4088_v40 = vld [vmem:[%s5689_s20 + $0x54] sm:$0xe]  ;;  %v4111_v43 = vcombine.low %v2092_v2, %v2095_v21  ;;  %v5147_v2 = vld [vmem:[#allocation5 + $0x150] sm:$0xff]   ;;  %v2491_v21 = vsel %vm593_vm2, %v5139_v0, 0 }
  0xee   : > { %4925 = vmatprep.subr.msk.bf16.mxu1 %vm593_vm2, %v3949_v47  ;;  %v4096_v47 = vrot.slane %v4088_v40, 9  ;;  %v2100_v32 = vrot.slane %v2098_v13, 4 }
  0xef   : > { %v2231_v50 = vsel %vm593_vm2, %v4111_v43, 0 }
  0xf0   : > { %v2099_v27 = vsel %vm5975_vm6, %v4096_v47, %v2098_v13  ;;  %v5142_v13 = vld [vmem:[%s5689_s20 + $0x24] sm:$0xff]  }
  0xf1   : > { %4635 = vmatmul.mubr.msk.bf16.gmra.mrb[8].mxu0 %vm593_vm2, %v5131_v63  ;;  %v2101_v63 = vrot.slane %v5924_v37, 5  ;;  %v964_v37 = vld [vmem:[%s5689_s20] sm:$0xe]  ;;  %v5215_v47 = vld [vmem:[%s5689_s20 + $0x28] sm:$0xf] }
  0xf2   : > { %4647 = vmatpush3.bf16.xpose.msra.mxu0 %v2222_v6  ;;  %4638 = vmatprep.mubr.msk.bf16.mxu0 %vm593_vm2, %v5134_v59  ;;  %v859_v59 = vsel %vm593_vm2, %v6038_v29, 0  ;;  %v2107_v6 = vrot.slane %v2105_v7, 4  ;;  %v3962_v30 = vrot.slane %v964_v37, 9  ;;  %v5216_v37 = vld [vmem:[%s5689_s20 + $0x2c] sm:$0x1] }
  0xf3   : > { %4957 = vmatprep.subr.msk.bf16.mxu0 %vm593_vm2, %v6044_v1  ;;  %v856_v1 = vsel %vm593_vm2, %v6028_v28, 0  ;;  %v2102_v3 = vsel %vm5975_vm6, %v2100_v32, %v2101_v63  ;;  %v1014_v32 = vrot.slane %v5215_v47, 5  ;;  %v5149_v63 = vld [vmem:[#allocation5 + $0x18] sm:$0xff]  }
  0xf4   : > { %4511 = vmatmul.mubr.msk.bf16.gmra.mrb[12].mxu1 %vm593_vm2, %v5135_v51  ;;  %v5209_v51 = vld [vmem:[%s5689_s20 + $0x4] sm:$0xf] }
  0xf5   : > { %4521 = vmatpush3.bf16.xpose.msra.mxu1 %v853_v53  ;;  %4530 = vmatprep.mubr.msk.bf16.mxu1 %vm593_vm2, %v5137_v16  ;;  %v993_v4 = vrot.slane %v5209_v51, 5  ;;  %v2108_v16 = vrot.slane %v5959_v42, 5  ;;  %v5211_v42 = vld [vmem:[%s5689_s20 + $0x10] sm:$0xf]  ;;  %v2494_v51 = vsel %vm593_vm2, %v5142_v13, 0 }
  0xf6   : > { %4926 = vmatprep.subr.msk.bf16.mxu1 %vm593_vm2, %v6028_v28  ;;  %v2228_v28 = vsel %vm593_vm2, %v6056_v35, 0 }
  0xf7   : > { %v995_v12 = vrot.slane %v993_v4, 4  ;;  %v2109_v49 = vsel %vm5975_vm6, %v2107_v6, %v2108_v16  ;;  %v994_v46 = vsel %vm5975_vm6, %v3962_v30, %v993_v4  ;;  %v5143_v4 = vld [vmem:[%s5689_s20 + $0x30] sm:$0xff]  }
  0xf9   : > { %4639 = vmatmul.mubr.msk.bf16.gmra.mrb[12].mxu0 %vm593_vm2, %v5136_v23  ;;  %v997_v57 = vsel %vm5975_vm6, %v995_v12, %v996_v41  ;;  %v5212_v23 = vld [vmem:[%s5689_s20 + $0x14] sm:$0x1]  ;;  %v5144_v12 = vld [vmem:[%s5689_s20 + $0x3c] sm:$0xff]  }
  0xfa   : > { %4649 = vmatpush3.bf16.xpose.msra.mxu0 %v2225_v9  ;;  %4658 = vmatprep.mubr.msk.bf16.mxu0 %vm593_vm2, %v5138_v19  ;;  %v3978_v31 = vcombine.low %v994_v46, %v997_v57  ;;  %v1003_v38 = vrot.slane %v5212_v23, 5  ;;  %v1007_v19 = vrot.slane %v5213_v15, 5  ;;  %v5146_v9 = vld [vmem:[#allocation5 + $0x10] sm:$0xff]   ;;  %v2500_v46 = vsel %vm593_vm2, %v5144_v12, 0  ;;  %v5160_v57 = vld [vmem:[#allocation5 + $0x178] sm:$0xff]  }
  0xfb   : > { %4958 = vmatprep.subr.msk.bf16.mxu0 %vm593_vm2, %v6056_v35  ;;  %v4089_v35 = vld [vmem:[%s5689_s20 + $0x60] sm:$0xe]  ;;  %v5148_v23 = vld [vmem:[%s5689_s20 + $0x54] sm:$0xff]  }
  0xfc   : > { %v4097_v17 = vrot.slane %v4089_v35, 9  ;;  %v1153_v10 = vsel %vm593_vm2, %v3978_v31, 0  ;;  %v1009_v54 = vrot.slane %v1007_v19, 4  ;;  %v1008_v40 = vsel %vm5975_vm6, %v3964_v11, %v1007_v19  ;;  %v6267_v11 = vld [vmem:[%s5689_s20 + $0x20] sm:$0x1] }
  0xfd   : > { %4523 = vmatpush3.bf16.xpose.msra.mxu1 %v856_v1  ;;  %v5141_v1 = vld [vmem:[#allocation5 + $0x148] sm:$0xff]   ;;  %v2506_v19 = vsel %vm593_vm2, %v5148_v23, 0 }
  0xfe   : > { %4927 = vmatprep.subr.msk.bf16.mxu1 %vm593_vm2, %v6038_v29  ;;  %v4112_v29 = vcombine.low %v2099_v27, %v2102_v3  ;;  %v2106_v39 = vsel %vm5975_vm6, %v4097_v17, %v2105_v7  ;;  %v1016_v7 = vrot.slane %v1014_v32, 4  ;;  %v5152_v17 = vld [vmem:[#allocation5 + $0x160] sm:$0xff]  }
  0xff   : > { %v4113_v61 = vcombine.low %v2106_v39, %v2109_v49  ;;  %v5155_v39 = vld [vmem:[#allocation5 + $0x168] sm:$0xff]   ;;  %v5157_v49 = vld [vmem:[#allocation5 + $0x170] sm:$0xff]  }
 0x100   : > { %v2234_v53 = vsel %vm593_vm2, %v4112_v29, 0 }
 0x101   : > { %v2237_v14 = vsel %vm593_vm2, %v4113_v61, 0 }
 0x102   : > { %4651 = vmatpush3.bf16.xpose.msra.mxu0 %v2228_v28  ;;  %v1011_v28 = vsel %vm5975_vm6, %v1009_v54, %v1010_v26  ;;  %v1171_v54 = vsel %vm593_vm2, %v6122_v48, 0 }
 0x103   : > { %4959 = vmatprep.subr.msk.bf16.mxu0 %vm593_vm2, %v4111_v43  ;;  %v967_v43 = vld [vmem:[%s5689_s20 + $0x24] sm:$0xe]  ;;  %v3980_v3 = vcombine.low %v1008_v40, %v1011_v28  ;;  %v2671_v40 = vshll.u32 %v6267_v11, 16 }
 0x104   : > { %v3965_v35 = vrot.slane %v967_v43, 9 }
 0x105   : > { %4525 = vmatpush3.bf16.xpose.msra.mxu1 %v859_v59  ;;  %v5151_v59 = vld [vmem:[#allocation5 + $0x20] sm:$0xff]   ;;  %v1159_v41 = vsel %vm593_vm2, %v3980_v3, 0 }
 0x106   : > { %4928 = vmatprep.subr.msk.bf16.mxu1 %vm593_vm2, %v6051_v34  ;;  %v1000_v34 = vrot.slane %v5211_v42, 5  ;;  %v1015_v6 = vsel %vm5975_vm6, %v3965_v35, %v1014_v32  ;;  %v5159_v42 = vld [vmem:[#allocation5 + $0x38] sm:$0xff]   ;;  %v2673_v35 = vrot.slane %v2671_v40, 5 }
 0x108   : > { %v1002_v8 = vrot.slane %v1000_v34, 4  ;;  %v1001_v45 = vsel %vm5975_vm6, %v3963_v44, %v1000_v34  ;;  %v2497_v34 = vsel %vm593_vm2, %v5143_v4, 0  ;;  %v4162_v44 = vld [vmem:[%s5689_s20 + $0x18] sm:$0xf] }
 0x10a   : > { %4653 = vmatpush3.bf16.xpose.msra.mxu0 %v2231_v50  ;;  %v1017_v50 = vrot.slane %v5216_v37, 5  ;;  %v6284_v37 = vld [vmem:[%s5689_s20 + $0x34] sm:$0xf] }
 0x10b   : > { %4960 = vmatprep.subr.msk.bf16.mxu0 %vm593_vm2, %v4112_v29  ;;  %v5150_v29 = vld [vmem:[#allocation5 + $0x158] sm:$0xff]  }
 0x10c   : > { %v1018_v16 = vsel %vm5975_vm6, %v1016_v7, %v1017_v50  ;;  %v4168_v7 = vld [vmem:[%s5689_s20 + $0x30] sm:$0xf]  ;;  %v1174_v50 = vsel %vm593_vm2, %v6133_v58, 0 }
 0x10d   : > { %4527 = vmatpush3.bf16.xpose.msra.mxu1 %v862_v62  ;;  %v5154_v62 = vld [vmem:[#allocation5 + $0x28] sm:$0xff]   ;;  %v3981_v30 = vcombine.low %v1015_v6, %v1018_v16  ;;  %v2700_v16 = vshrl.u32 %v4168_v7, 16 }
 0x10e   : > { %4929 = vmatprep.subr.msk.bf16.mxu1 %vm593_vm2, %v6064_v22  ;;  %v1004_v22 = vsel %vm5975_vm6, %v1002_v8, %v1003_v38  ;;  %v6251_v38 = vld [vmem:[%s5689_s20 + $0x1c] sm:$0xf] }
 0x10f   : > { %v3979_v56 = vcombine.low %v1001_v45, %v1004_v22  ;;  %v2661_v45 = vshll.u32 %v6251_v38, 16  ;;  %v2665_v22 = vshrl.u32 %v6251_v38, 16 }
 0x111   : > { %v1156_v27 = vsel %vm593_vm2, %v3979_v56, 0 }
 0x112   : > { %4655 = vmatpush3.bf16.xpose.msra.mxu0 %v2234_v53  ;;  %v5161_v53 = vld [vmem:[#allocation5 + $0x80] sm:$0xff]  }
 0x113   : > { %4961 = vmatprep.subr.msk.bf16.mxu0 %vm593_vm2, %v4113_v61  ;;  %v1162_v61 = vsel %vm593_vm2, %v3981_v30, 0 }
 0x115   : > { %4529 = vmatpush3.bf16.xpose.msra.mxu1 %v865_v5  ;;  %v5145_v5 = vld [vmem:[%s5689_s20 + $0x48] sm:$0xff]  }
 0x116   : > { %4930 = vmatprep.subr.msk.bf16.mxu1 %vm593_vm2, %v3978_v31  ;;  %v1165_v31 = vsel %vm593_vm2, %v6096_v18, 0  ;;  %v2503_v8 = vsel %vm593_vm2, %v5145_v5, 0 }
 0x11a   : > { %4657 = vmatpush3.bf16.xpose.msra.mxu0 %v2237_v14  ;;  %v2655_v14 = vshll.u32 %v4162_v44, 16 }
 0x11b   : > { %4962 = vmatprep.subr.msk.bf16.mxu0 %vm593_vm2, %v5139_v0  ;;  %v2652_v0 = vshrl.u32 %v4162_v44, 16  ;;  %v5170_v44 = vld [vmem:[#allocation5 + $0x90] sm:$0xff]  }
 0x11c   : > { %4531 = vmatmul.mubr.msk.bf16.vlgmr.msra.gmra.mrb[0].mxu1 %vm593_vm2, %v5140_v36  ;;  %v2657_v15 = vrot.slane %v2655_v14, 5  ;;  %v5153_v36 = vld [vmem:[%s5689_s20 + $0x60] sm:$0xff]  }
 0x11d   : > { %4547 = vmatpush3.bf16.xpose.msra.mxu1 %v1153_v10  ;;  %4534 = vmatprep.mubr.msk.bf16.mxu1 %vm593_vm2, %v5146_v9  ;;  %v2654_v52 = vrot.slane %v2652_v0, 4  ;;  %v2663_v9 = vrot.slane %v2661_v45, 5  ;;  %v2667_v10 = vrot.slane %v2665_v22, 4 }
 0x11e   : > { %4931 = vmatprep.subr.msk.bf16.mxu1 %vm593_vm2, %v3979_v56  ;;  %v4165_v56 = vld [vmem:[%s5689_s20 + $0x24] sm:$0xf] }
 0x11f   : > { %v2658_v20 = vor.u32 %v2657_v15, %v2654_v52  ;;  %v2676_v26 = vshrl.u32 %v4165_v56, 16 }
 0x121   : > { %4659 = vmatmul.mubr.msk.bf16.vlgmr.msra.gmra.mrb[0].mxu0 %vm593_vm2, %v5141_v1  ;;  %v2679_v1 = vshll.u32 %v4165_v56, 16  ;;  %v2659_v28 = vrot.slane %v2658_v20, 4  ;;  %v2678_v43 = vrot.slane %v2676_v26, 4  ;;  %v4174_v56 = vld [vmem:[%s5689_s20 + $0x48] sm:$0xf] }
 0x122   : > { %4675 = vmatpush3.bf16.xpose.msra.mxu0 %v2491_v21  ;;  %4662 = vmatprep.mubr.msk.bf16.mxu0 %vm593_vm2, %v5147_v2  ;;  %v5171_v20 = vld [vmem:[#allocation5 + $0x190] sm:$0xff]  }
 0x123   : > { %4963 = vmatprep.subr.msk.bf16.mxu0 %vm593_vm2, %v5142_v13  ;;  %v2668_v13 = vor.u32 %v2667_v10, %v2663_v9  ;;  %v2681_v47 = vrot.slane %v2679_v1, 5 }
 0x124   : > { %4535 = vmatmul.mubr.msk.bf16.gmra.mrb[4].mxu1 %vm593_vm2, %v5149_v63 }
 0x125   : > { %4549 = vmatpush3.bf16.xpose.msra.mxu1 %v1156_v27  ;;  %4538 = vmatprep.mubr.msk.bf16.mxu1 %vm593_vm2, %v5151_v59  ;;  %v2509_v59 = vsel %vm593_vm2, %v5153_v36, 0  ;;  %v5158_v27 = vld [vmem:[%s5689_s20 + $0x6c] sm:$0xff]  }
 0x126   : > { %4932 = vmatprep.subr.msk.bf16.mxu1 %vm593_vm2, %v3980_v3  ;;  %v2669_v3 = vrot.slane %v2668_v13, 4  ;;  %v6328_v13 = vld [vmem:[%s5689_s20 + $0x44] sm:$0x1] }
 0x129   : > { %4663 = vmatmul.mubr.msk.bf16.gmra.mrb[4].mxu0 %vm593_vm2, %v5150_v29 }
 0x12a   : > { %4677 = vmatpush3.bf16.xpose.msra.mxu0 %v2494_v51  ;;  %4666 = vmatprep.mubr.msk.bf16.mxu0 %vm593_vm2, %v5152_v17  ;;  %v5162_v17 = vld [vmem:[%s5689_s20 + $0xc] sm:$0xff]   ;;  %v2664_v51 = vsel %vm5725_vm3, %v2659_v28, %v2663_v9  ;;  %v5165_v9 = vld [vmem:[#allocation5 + $0x188] sm:$0xff]  }
 0x12b   : > { %4964 = vmatprep.subr.msk.bf16.mxu0 %vm593_vm2, %v5143_v4  ;;  %v2682_v4 = vor.u32 %v2681_v47, %v2678_v43 }
 0x12c   : > { %4539 = vmatmul.mubr.msk.bf16.gmra.mrb[8].mxu1 %vm593_vm2, %v5154_v62  ;;  %v2674_v62 = vsel %vm5725_vm3, %v2669_v3, %v2673_v35  ;;  %v5175_v35 = vld [vmem:[#allocation5 + $0xa0] sm:$0xff]  }
 0x12d   : > { %4551 = vmatpush3.bf16.xpose.msra.mxu1 %v1159_v41  ;;  %4542 = vmatprep.mubr.msk.bf16.mxu1 %vm593_vm2, %v5156_v55  ;;  %v2703_v55 = vshll.u32 %v4168_v7, 16  ;;  %v2713_v41 = vshrl.u32 %v6284_v37, 16 }
 0x12e   : > { %4933 = vmatprep.subr.msk.bf16.mxu1 %vm593_vm2, %v3981_v30  ;;  %v2512_v30 = vsel %vm593_vm2, %v5158_v27, 0 }
 0x131   : > { %4667 = vmatmul.mubr.msk.bf16.gmra.mrb[8].mxu0 %vm593_vm2, %v5155_v39  ;;  %v2683_v39 = vrot.slane %v2682_v4, 4 }
 0x132   : > { %4679 = vmatpush3.bf16.xpose.msra.mxu0 %v2497_v34  ;;  %4670 = vmatprep.mubr.msk.bf16.mxu0 %vm593_vm2, %v5157_v49  ;;  %v6300_v34 = vld [vmem:[%s5689_s20 + $0x38] sm:$0x1] }
 0x133   : > { %4965 = vmatprep.subr.msk.bf16.mxu0 %vm593_vm2, %v5144_v12  ;;  %v4194_v12 = vcombine.low %v2664_v51, %v2674_v62  ;;  %v2719_v0 = vshll.u32 %v6300_v34, 16 }
 0x134   : > { %4543 = vmatmul.mubr.msk.bf16.gmra.mrb[12].mxu1 %vm593_vm2, %v5159_v42 }
 0x135   : > { %4553 = vmatpush3.bf16.xpose.msra.mxu1 %v1162_v61  ;;  %4562 = vmatprep.mubr.msk.bf16.mxu1 %vm593_vm2, %v5161_v53  ;;  %v2702_v53 = vrot.slane %v2700_v16, 4  ;;  %v2705_v61 = vrot.slane %v2703_v55, 5  ;;  %v2949_v10 = vsel %vm593_vm2, %v4194_v12, 0 }
 0x136   : > { %4934 = vmatprep.subr.msk.bf16.mxu1 %vm593_vm2, %v6096_v18  ;;  %v1168_v18 = vsel %vm593_vm2, %v6112_v33, 0 }
 0x137   : > { %v2706_v45 = vor.u32 %v2705_v61, %v2702_v53  ;;  %v6357_v53 = vld [vmem:[%s5689_s20 + $0x58] sm:$0xf] }
 0x139   : > { %4671 = vmatmul.mubr.msk.bf16.gmra.mrb[12].mxu0 %vm593_vm2, %v5160_v57  ;;  %v2715_v57 = vrot.slane %v2713_v41, 4  ;;  %v2707_v1 = vrot.slane %v2706_v45, 4  ;;  %v5174_v41 = vld [vmem:[#allocation5 + $0x198] sm:$0xff]  }
 0x13a   : > { %4681 = vmatpush3.bf16.xpose.msra.mxu0 %v2500_v46  ;;  %4690 = vmatprep.mubr.msk.bf16.mxu0 %vm593_vm2, %v5163_v25  ;;  %v5164_v25 = vld [vmem:[#allocation5 + $0x88] sm:$0xff]  }
 0x13b   : > { %4966 = vmatprep.subr.msk.bf16.mxu0 %vm593_vm2, %v5145_v5  ;;  %v4171_v5 = vld [vmem:[%s5689_s20 + $0x3c] sm:$0xf] }
 0x13c   : > { %v2724_v52 = vshrl.u32 %v4171_v5, 16  ;;  %v2727_v15 = vshll.u32 %v4171_v5, 16  ;;  %v5177_v5 = vld [vmem:[#allocation5 + $0xa8] sm:$0xff]  }
 0x13d   : > { %4555 = vmatpush3.bf16.xpose.msra.mxu1 %v1165_v31  ;;  %v6306_v31 = vld [vmem:[%s5689_s20 + $0x40] sm:$0xf] }
 0x13e   : > { %4935 = vmatprep.subr.msk.bf16.mxu1 %vm593_vm2, %v6112_v33  ;;  %v6264_v33 = vld [vmem:[%s5689_s20 + $0x28] sm:$0xf]  ;;  %v2726_v40 = vrot.slane %v2724_v52, 4  ;;  %v2729_v28 = vrot.slane %v2727_v15, 5  ;;  %v2781_v52 = vshll.u32 %v6357_v53, 16  ;;  %v2785_v15 = vshrl.u32 %v6357_v53, 16 }
 0x13f   : > { %v2685_v2 = vshll.u32 %v6264_v33, 16  ;;  %v2689_v21 = vshrl.u32 %v6264_v33, 16 }
 0x140   : > { %v2730_v4 = vor.u32 %v2729_v28, %v2726_v40  ;;  %v6376_v28 = vrot.slane %v2781_v52, 5  ;;  %v4183_v52 = vld [vmem:[%s5689_s20 + $0x6c] sm:$0xf] }
 0x141   : > { %v2687_v32 = vrot.slane %v2685_v2, 5  ;;  %v2691_v63 = vrot.slane %v2689_v21, 4  ;;  %v2721_v21 = vrot.slane %v2719_v0, 5  ;;  %v5180_v0 = vld [vmem:[#allocation5 + $0xb0] sm:$0xff]  }
 0x142   : > { %4683 = vmatpush3.bf16.xpose.msra.mxu0 %v2503_v8  ;;  %v1428_v8 = vsel %vm593_vm2, %v5162_v17, 0 }
 0x143   : > { %4967 = vmatprep.subr.msk.bf16.mxu0 %vm593_vm2, %v5148_v23  ;;  %v2692_v6 = vor.u32 %v2691_v63, %v2687_v32  ;;  %v5166_v23 = vld [vmem:[%s5689_s20 + $0x18] sm:$0xff]   ;;  %v2688_v14 = vsel %vm5725_vm3, %v2683_v39, %v2687_v32  ;;  %v5172_v32 = vld [vmem:[#allocation5 + $0x98] sm:$0xff]   ;;  %v2748_v63 = vshrl.u32 %v4174_v56, 16 }
 0x144   : > { %v1431_v7 = vsel %vm593_vm2, %v5166_v23, 0 }
 0x145   : > { %4557 = vmatpush3.bf16.xpose.msra.mxu1 %v1168_v18  ;;  %v2693_v49 = vrot.slane %v2692_v6, 4  ;;  %v2750_v16 = vrot.slane %v2748_v63, 4 }
 0x146   : > { %4936 = vmatprep.subr.msk.bf16.mxu1 %vm593_vm2, %v6122_v48  ;;  %v6278_v48 = vld [vmem:[%s5689_s20 + $0x2c] sm:$0x1] }
 0x147   : > { %v2695_v29 = vshll.u32 %v6278_v48, 16 }
 0x149   : > { %v2697_v42 = vrot.slane %v2695_v29, 5  ;;  %v2743_v29 = vshll.u32 %v6328_v13, 16 }
 0x14a   : > { %4685 = vmatpush3.bf16.xpose.msra.mxu0 %v2506_v19  ;;  %v2733_v19 = vshll.u32 %v6306_v31, 16 }
 0x14b   : > { %4968 = vmatprep.subr.msk.bf16.mxu0 %vm593_vm2, %v5153_v36  ;;  %v2698_v18 = vsel %vm5725_vm3, %v2693_v49, %v2697_v42  ;;  %v2737_v36 = vshrl.u32 %v6306_v31, 16  ;;  %v4177_v42 = vld [vmem:[%s5689_s20 + $0x54] sm:$0xf] }
 0x14c   : > { %v4195_v26 = vcombine.low %v2688_v14, %v2698_v18  ;;  %v6330_v43 = vrot.slane %v2733_v19, 5  ;;  %v3530_v14 = vld [vmem:[#allocation7 + $0x8] sm:$0xff]  ;;  %v5168_v18 = vld [vmem:[%s5689_s20 + $0x30] sm:$0xff]   ;;  %v2772_v45 = vshrl.u32 %v4177_v42, 16  ;;  %v5446_v19 = vmov 0  }
 0x14d   : > { %4559 = vmatpush3.bf16.xpose.msra.mxu1 %v1171_v54  ;;  %v6325_v54 = vld [vmem:[%s5689_s20 + $0x4c] sm:$0xf]  ;;  %v2739_v47 = vrot.slane %v2737_v36, 4  ;;  %5112 = vset.pattern.permute.xlu1 %v5446_v19 }
 0x14e   : > { %4937 = vmatprep.subr.msk.bf16.mxu1 %vm593_vm2, %v6133_v58  ;;  %v2709_v58 = vshll.u32 %v6284_v37, 16  ;;  %v2761_v3 = vshrl.u32 %v6325_v54, 16  ;;  %v2952_v39 = vsel %vm593_vm2, %v4195_v26, 0  ;;  %3552 = vperm.xlu1 %5112, %v3530_v14  }
 0x14f   : > { %v2740_v6 = vor.u32 %v2739_v47, %v6330_v43  ;;  %v5181_v47 = vld [vmem:[#allocation5 + $0x1b0] sm:$0xff]   ;;  %5111 = vset.pattern.permute.xlu0 %v5446_v19  ;;  %v3534_v19 = vld [vmem:[#allocation7 + $0x28] sm:$0xff] }
 0x150   : > { %v6302_v46 = vrot.slane %v2709_v58, 5  ;;  %v2763_v58 = vrot.slane %v2761_v3, 4  ;;  %v6384_v3 = vld [vmem:[%s5689_s20 + $0x64] sm:$0xf] }
 0x152   : > { %4687 = vmatpush3.bf16.xpose.msra.mxu0 %v2509_v59  ;;  %v2716_v22 = vor.u32 %v2715_v57, %v6302_v46  ;;  %v2751_v59 = vshll.u32 %v4174_v56, 16  ;;  %v2741_v57 = vrot.slane %v2740_v6, 4 }
 0x153   : > { %4969 = vmatprep.subr.msk.bf16.mxu0 %vm593_vm2, %v5158_v27  ;;  %v2757_v27 = vshll.u32 %v6325_v54, 16 }
 0x154   : > { %v2717_v2 = vrot.slane %v2716_v22, 4  ;;  %v2753_v62 = vrot.slane %v2751_v59, 5  ;;  %v2775_v22 = vshll.u32 %v4177_v42, 16  ;;  %v6380_v59 = vld [vmem:[%s5689_s20 + $0x5c] sm:$0x1] }
 0x155   : > { %4561 = vmatpush3.bf16.xpose.msra.mxu1 %v1174_v50  ;;  %v5167_v50 = vld [vmem:[%s5689_s20 + $0x24] sm:$0xff]   ;;  %v6347_v55 = vrot.slane %v2757_v27, 5  ;;  %v4180_v27 = vld [vmem:[%s5689_s20 + $0x60] sm:$0xf] }
 0x156   : > { %4938 = vmatprep.subr.msk.bf16.mxu1 %vm593_vm2, %v5162_v17  ;;  %v2712_v17 = vsel %vm5725_vm3, %v2707_v1, %v6302_v46  ;;  %v2722_v51 = vsel %vm5725_vm3, %v2717_v2, %v2721_v21  ;;  %v1434_v61 = vsel %vm593_vm2, %v5167_v50, 0  ;;  %v2731_v46 = vrot.slane %v2730_v4, 4  ;;  %v5179_v1 = vld [vmem:[#allocation5 + $0x1a8] sm:$0xff]   ;;  %v3531_v2 = vld [vmem:[#allocation7 + $0x10] sm:$0xff] }
 0x157   : > { %v4196_v49 = vcombine.low %v2712_v17, %v2722_v51  ;;  %v2774_v21 = vrot.slane %v2772_v45, 4  ;;  %v2777_v40 = vrot.slane %v2775_v22, 5  ;;  %3557 = vperm.xlu1 %5112, %v3531_v2   ;;  %v5185_v17 = vld [vmem:[#allocation5 + $0xc0] sm:$0xff]   ;;  %v3532_v51 = vld [vmem:[#allocation7 + $0x18] sm:$0xff]  ;;  %v3542_v22 = vld [vmem:[#allocation7 + $0x68] sm:$0xff]  ;;  %v2820_v2 = vshrl.u32 %v4183_v52, 16 }
 0x158   : > { %v2736_v36 = vsel %vm5725_vm3, %v2731_v46, %v6330_v43  ;;  %v2787_v43 = vrot.slane %v2785_v15, 4  ;;  %v5169_v4 = vld [vmem:[%s5689_s20 + $0x3c] sm:$0xff]   ;;  %v6405_v45 = vld [vmem:[%s5689_s20 + $0x68] sm:$0x1]  ;;  %v6410_v15 = vld [vmem:[%s5689_s20 + $0x70] sm:$0xf] }
 0x159   : > { %v3533_v46 = vld [vmem:[#allocation7 + $0x20] sm:$0xff] }
 0x15a   : > { %4689 = vmatpush3.bf16.xpose.msra.mxu0 %v2512_v30  ;;  %v6352_v30 = vld [vmem:[%s5689_s20 + $0x50] sm:$0x1] }
 0x15b   : > { %4970 = vmatprep.subr.msk.bf16.mxu0 %vm593_vm2, %v4194_v12  ;;  %v5176_v12 = vld [vmem:[#allocation5 + $0x1a0] sm:$0xff]   ;;  %3562 = vperm.xlu1 %5112, %v3532_v51  }
 0x15c   : > { %4563 = vmatmul.mubr.msk.bf16.vlgmr.msra.gmra.mrb[0].mxu1 %vm593_vm2, %v5164_v25  ;;  %v2745_v25 = vrot.slane %v2743_v29, 5  ;;  %v6427_v51 = vld [vmem:[%s5689_s20 + $0x74] sm:$0x1] }
 0x15d   : > { %4579 = vmatpush3.bf16.xpose.msra.mxu1 %v1428_v8  ;;  %4566 = vmatprep.mubr.msk.bf16.mxu1 %vm593_vm2, %v5170_v44  ;;  %v2754_v44 = vor.u32 %v2753_v62, %v2750_v16  ;;  %v2764_v8 = vor.u32 %v2763_v58, %v6347_v55  ;;  %v2778_v16 = vor.u32 %v2777_v40, %v2774_v21  ;;  %v2791_v58 = vshll.u32 %v6380_v59, 16 }
 0x15e   : > { %4939 = vmatprep.subr.msk.bf16.mxu1 %vm593_vm2, %v5166_v23  ;;  %v2767_v23 = vshll.u32 %v6352_v30, 16  ;;  %v2788_v62 = vor.u32 %v2787_v43, %v6376_v28  ;;  %v2823_v21 = vshll.u32 %v4183_v52, 16  ;;  %v2829_v40 = vshll.u32 %v6410_v15, 16  ;;  %v3541_v52 = vld [vmem:[#allocation7 + $0x60] sm:$0xff] }
 0x15f   : > { %v2755_v56 = vrot.slane %v2754_v44, 4  ;;  %v2793_v44 = vrot.slane %v2791_v58, 5  ;;  %3567 = vperm.xlu1 %5112, %v3533_v46   ;;  %v2833_v43 = vshrl.u32 %v6410_v15, 16 }
 0x161   : > { %4691 = vmatmul.mubr.msk.bf16.vlgmr.msra.gmra.mrb[0].mxu0 %vm593_vm2, %v5165_v9  ;;  %v2746_v9 = vsel %vm5725_vm3, %v2741_v57, %v2745_v25  ;;  %v2760_v29 = vsel %vm5725_vm3, %v2755_v56, %v6347_v55  ;;  %v2799_v55 = vshll.u32 %v4180_v27, 16  ;;  %v2779_v25 = vrot.slane %v2778_v16, 4  ;;  %v5178_v16 = vld [vmem:[%s5689_s20 + $0x54] sm:$0xff]  }
 0x162   : > { %4707 = vmatpush3.bf16.xpose.msra.mxu0 %v2949_v10  ;;  %4694 = vmatprep.mubr.msk.bf16.mxu0 %vm593_vm2, %v5171_v20  ;;  %v3529_v10 = vld [vmem:[#allocation7] sm:$0xff]  ;;  %v2765_v20 = vrot.slane %v2764_v8, 4  ;;  %v4197_v63 = vcombine.low %v2736_v36, %v2746_v9  ;;  %v1440_v36 = vsel %vm593_vm2, %v5169_v4, 0  ;;  %v5173_v9 = vld [vmem:[%s5689_s20 + $0x48] sm:$0xff]  }
 0x163   : > { %4971 = vmatprep.subr.msk.bf16.mxu0 %vm593_vm2, %v4195_v26  ;;  %v2769_v26 = vrot.slane %v2767_v23, 5  ;;  %3547 = vperm.xlu0 %5111, %v3529_v10   ;;  %v5186_v8 = vld [vmem:[#allocation5 + $0x1c0] sm:$0xff]   ;;  %v2784_v10 = vsel %vm5725_vm3, %v2779_v25, %v6376_v28  ;;  %v3535_v28 = vld [vmem:[#allocation7 + $0x30] sm:$0xff] }
 0x164   : > { %4567 = vmatmul.mubr.msk.bf16.gmra.mrb[4].mxu1 %vm593_vm2, %v5172_v32  ;;  %v2955_v32 = vsel %vm593_vm2, %v4196_v49, 0  ;;  %v2958_v42 = vsel %vm593_vm2, %v4197_v63, 0  ;;  %3572 = vperm.xlu1 %5112, %v3534_v19  }
 0x165   : > { %4581 = vmatpush3.bf16.xpose.msra.mxu1 %v1431_v7  ;;  %4570 = vmatprep.mubr.msk.bf16.mxu1 %vm593_vm2, %v5175_v35  ;;  %v5182_v35 = vld [vmem:[#allocation5 + $0xb8] sm:$0xff]   ;;  %v3538_v7 = vld [vmem:[#allocation7 + $0x48] sm:$0xff]  ;;  %v2770_v6 = vsel %vm5725_vm3, %v2765_v20, %v2769_v26 }
 0x166   : > { %4940 = vmatprep.subr.msk.bf16.mxu1 %vm593_vm2, %v5167_v50  ;;  %v1437_v50 = vsel %vm593_vm2, %v5168_v18, 0  ;;  %v4198_v57 = vcombine.low %v2760_v29, %v2770_v6  ;;  %v2831_v29 = vrot.slane %v2829_v40, 5  ;;  %v1443_v6 = vsel %vm593_vm2, %v5173_v9, 0 }
 0x167   : > { %3592 = vperm.xlu0 %5111, %v3538_v7   ;;  %v2822_v7 = vrot.slane %v2820_v2, 4  ;;  %v3129_v2 = vrot.slane %v6278_v48, 5 }
 0x168   : > { %3577 = vperm.xlu1 %5112, %v3535_v28   ;;  %v5187_v28 = vld [vmem:[#allocation5 + $0xc8] sm:$0xff]  }
 0x169   : > { %4695 = vmatmul.mubr.msk.bf16.gmra.mrb[4].mxu0 %vm593_vm2, %v5174_v41  ;;  %v2796_v41 = vshrl.u32 %v4180_v27, 16 }
 0x16a   : > { %4709 = vmatpush3.bf16.xpose.msra.mxu0 %v2952_v39  ;;  %4698 = vmatprep.mubr.msk.bf16.mxu0 %vm593_vm2, %v5176_v12  ;;  %v2805_v12 = vshll.u32 %v6384_v3, 16  ;;  %v2809_v39 = vshrl.u32 %v6384_v3, 16 }
 0x16b   : > { %4972 = vmatprep.subr.msk.bf16.mxu0 %vm593_vm2, %v4196_v49  ;;  %v3540_v49 = vld [vmem:[#allocation7 + $0x58] sm:$0xff]  ;;  %v2798_v23 = vrot.slane %v2796_v41, 4 }
 0x16c   : > { %4571 = vmatmul.mubr.msk.bf16.gmra.mrb[8].mxu1 %vm593_vm2, %v5177_v5  ;;  %v2789_v5 = vrot.slane %v2788_v62, 4  ;;  %v2807_v14 = vrot.slane %v2805_v12, 5  ;;  %3602 = vperm.xlu0 %5111, %v3540_v49   ;;  %v2839_v12 = vshll.u32 %v6427_v51, 16 }
 0x16d   : > { %4583 = vmatpush3.bf16.xpose.msra.mxu1 %v1434_v61  ;;  %4574 = vmatprep.mubr.msk.bf16.mxu1 %vm593_vm2, %v5180_v0  ;;  %v5184_v61 = vld [vmem:[#allocation5 + $0x1b8] sm:$0xff]   ;;  %v2801_v0 = vrot.slane %v2799_v55, 5 }
 0x16e   : > { %4941 = vmatprep.subr.msk.bf16.mxu1 %vm593_vm2, %v5168_v18  ;;  %v2811_v18 = vrot.slane %v2809_v39, 4  ;;  %v2794_v56 = vsel %vm5725_vm3, %v2789_v5, %v2793_v44  ;;  %v3537_v39 = vld [vmem:[#allocation7 + $0x40] sm:$0xff]  ;;  %v2841_v25 = vrot.slane %v2839_v12, 5  ;;  %v3539_v44 = vld [vmem:[#allocation7 + $0x50] sm:$0xff]  ;;  %v3143_v12 = vrot.slane %v6328_v13, 5 }
 0x16f   : > { %v2802_v20 = vor.u32 %v2801_v0, %v2798_v23  ;;  %v4210_v5 = vld [vmem:[%s5689_s20 + $0x18] sm:$0xe]  ;;  %v5183_v23 = vld [vmem:[%s5689_s20 + $0x60] sm:$0xff]  }
 0x170   : > { %v2812_v26 = vor.u32 %v2811_v18, %v2807_v14  ;;  %3612 = vperm.xlu0 %5111, %v3542_v22   ;;  %v4218_v0 = vrot.slane %v4210_v5, 9  ;;  %v3122_v18 = vrot.slane %v6267_v11, 5  ;;  %v1449_v24 = vsel %vm593_vm2, %v5183_v23, 0  ;;  %v5197_v13 = vld [vmem:[#allocation5 + $0xf0] sm:$0xff]  }
 0x171   : > { %4699 = vmatmul.mubr.msk.bf16.gmra.mrb[8].mxu0 %vm593_vm2, %v5179_v1  ;;  %v2815_v1 = vshll.u32 %v6405_v45, 16 }
 0x172   : > { %4711 = vmatpush3.bf16.xpose.msra.mxu0 %v2955_v32  ;;  %4702 = vmatprep.mubr.msk.bf16.mxu0 %vm593_vm2, %v5181_v47  ;;  %v2961_v47 = vsel %vm593_vm2, %v4198_v57, 0  ;;  %v4199_v32 = vcombine.low %v2784_v10, %v2794_v56  ;;  %v2813_v27 = vrot.slane %v2812_v26, 4  ;;  %v3126_v10 = vrot.slane %v6264_v33, 5  ;;  %v4211_v56 = vld [vmem:[%s5689_s20 + $0x24] sm:$0xe] }
 0x173   : > { %4973 = vmatprep.subr.msk.bf16.mxu0 %vm593_vm2, %v4197_v63  ;;  %v2803_v63 = vrot.slane %v2802_v20, 4  ;;  %v4219_v26 = vrot.slane %v4211_v56, 9  ;;  %v5201_v56 = vld [vmem:[#allocation5 + $0x200] sm:$0xff]  }
 0x174   : > { %4575 = vmatmul.mubr.msk.bf16.gmra.mrb[12].mxu1 %vm593_vm2, %v5182_v35  ;;  %v2817_v35 = vrot.slane %v2815_v1, 5  ;;  %v2964_v49 = vsel %vm593_vm2, %v4199_v32, 0  ;;  %v3128_v1 = vrot.slane %v3126_v10, 4 }
 0x175   : > { %4585 = vmatpush3.bf16.xpose.msra.mxu1 %v1437_v50  ;;  %4594 = vmatprep.mubr.msk.bf16.mxu1 %vm593_vm2, %v5185_v17  ;;  %v2825_v50 = vrot.slane %v2823_v21, 5  ;;  %v2835_v17 = vrot.slane %v2833_v43, 4  ;;  %v2808_v62 = vsel %vm5725_vm3, %v2803_v63, %v2807_v14  ;;  %v3127_v33 = vsel %vm5975_vm6, %v4219_v26, %v3126_v10 }
 0x176   : > { %4942 = vmatprep.subr.msk.bf16.mxu1 %vm593_vm2, %v5169_v4  ;;  %v3536_v4 = vld [vmem:[#allocation7 + $0x38] sm:$0xff]  ;;  %v2818_v58 = vsel %vm5725_vm3, %v2813_v27, %v2817_v35  ;;  %v3130_v40 = vsel %vm5975_vm6, %v3128_v1, %v3129_v2  ;;  %v3133_v43 = vrot.slane %v6284_v37, 5  ;;  %v5190_v37 = vld [vmem:[#allocation5 + $0x1d0] sm:$0xff]   ;;  %v3157_v10 = vrot.slane %v6380_v59, 5 }
 0x177   : > { %v2826_v41 = vor.u32 %v2825_v50, %v2822_v7  ;;  %v2836_v55 = vor.u32 %v2835_v17, %v2831_v29  ;;  %3582 = vperm.xlu1 %5112, %v3536_v4   ;;  %v4235_v48 = vcombine.low %v3127_v33, %v3130_v40  ;;  %v3136_v7 = vrot.slane %v6300_v34, 5  ;;  %v5188_v50 = vld [vmem:[#allocation5 + $0x1c8] sm:$0xff]   ;;  %v5193_v34 = vld [vmem:[#allocation5 + $0xe0] sm:$0xff]  }
 0x178   : > { %v3135_v35 = vrot.slane %v3133_v43, 4  ;;  %v3140_v4 = vrot.slane %v6306_v31, 5  ;;  %v5192_v31 = vld [vmem:[#allocation5 + $0x1d8] sm:$0xff]   ;;  %v3161_v26 = vrot.slane %v6384_v3, 5  ;;  %v4216_v1 = vld [vmem:[%s5689_s20 + $0x60] sm:$0xe] }
 0x179   : > { %4703 = vmatmul.mubr.msk.bf16.gmra.mrb[12].mxu0 %vm593_vm2, %v5184_v61  ;;  %v3119_v61 = vrot.slane %v6251_v38, 5  ;;  %v2827_v46 = vrot.slane %v2826_v41, 4  ;;  %v3164_v40 = vrot.slane %v6405_v45, 5 }
 0x17a   : > { %4713 = vmatpush3.bf16.xpose.msra.mxu0 %v2958_v42  ;;  %4722 = vmatprep.mubr.msk.bf16.mxu0 %vm593_vm2, %v5186_v8  ;;  %v4200_v42 = vcombine.low %v2808_v62, %v2818_v58  ;;  %v1446_v8 = vsel %vm593_vm2, %v5178_v16, 0  ;;  %v3137_v17 = vsel %vm5975_vm6, %v3135_v35, %v3136_v7  ;;  %v3282_v62 = vsel %vm593_vm2, %v4235_v48, 0 }
 0x17b   : > { %4974 = vmatprep.subr.msk.bf16.mxu0 %vm593_vm2, %v4198_v57  ;;  %v2837_v57 = vrot.slane %v2836_v55, 4  ;;  %3587 = vperm.xlu1 %5112, %v3537_v39   ;;  %v3121_v14 = vrot.slane %v3119_v61, 4  ;;  %v2832_v38 = vsel %vm5725_vm3, %v2827_v46, %v2831_v29  ;;  %v3142_v55 = vrot.slane %v3140_v4, 4  ;;  %v5194_v39 = vld [vmem:[#allocation5 + $0x1e0] sm:$0xff]   ;;  %v5195_v46 = vld [vmem:[#allocation5 + $0xe8] sm:$0xff]  }
 0x17c   : > { %v2967_v19 = vsel %vm593_vm2, %v4200_v42, 0  ;;  %v3163_v33 = vrot.slane %v3161_v26, 4 }
 0x17d   : > { %4587 = vmatpush3.bf16.xpose.msra.mxu1 %v1440_v36  ;;  %v2842_v22 = vsel %vm5725_vm3, %v2837_v57, %v2841_v25  ;;  %v3123_v11 = vsel %vm5975_vm6, %v3121_v14, %v3122_v18  ;;  %v4214_v57 = vld [vmem:[%s5689_s20 + $0x48] sm:$0xe] }
 0x17e   : > { %4943 = vmatprep.subr.msk.bf16.mxu1 %vm593_vm2, %v5173_v9  ;;  %v4201_v36 = vcombine.low %v2832_v38, %v2842_v22  ;;  %v3120_v9 = vsel %vm5975_vm6, %v4218_v0, %v3119_v61  ;;  %v3147_v61 = vrot.slane %v6325_v54, 5  ;;  %v5196_v54 = vld [vmem:[#allocation5 + $0x1e8] sm:$0xff]   ;;  %v5198_v0 = vld [vmem:[#allocation5 + $0x1f0] sm:$0xff]   ;;  %v3154_v38 = vrot.slane %v6357_v53, 5  ;;  %v5199_v22 = vld [vmem:[#allocation5 + $0xf8] sm:$0xff]  }
 0x17f   : > { %3597 = vperm.xlu1 %5112, %v3539_v44   ;;  %v4234_v20 = vcombine.low %v3120_v9, %v3123_v11  ;;  %v4222_v44 = vrot.slane %v4214_v57, 9  ;;  %v5200_v53 = vld [vmem:[#allocation5 + $0x1f8] sm:$0xff]  }
 0x180   : > { %v2970_v21 = vsel %vm593_vm2, %v4201_v36, 0  ;;  %v3156_v11 = vrot.slane %v3154_v38, 4 }
 0x181   : > { %v3279_v63 = vsel %vm593_vm2, %v4234_v20, 0  ;;  %v3148_v14 = vsel %vm5975_vm6, %v4222_v44, %v3147_v61 }
 0x182   : > { %4715 = vmatpush3.bf16.xpose.msra.mxu0 %v2961_v47  ;;  %v4212_v47 = vld [vmem:[%s5689_s20 + $0x30] sm:$0xe] }
 0x183   : > { %4975 = vmatprep.subr.msk.bf16.mxu0 %vm593_vm2, %v4199_v32  ;;  %3607 = vperm.xlu1 %5112, %v3541_v52   ;;  %v5189_v32 = vld [vmem:[#allocation5 + $0xd0] sm:$0xff]   ;;  %v4220_v27 = vrot.slane %v4212_v47, 9  ;;  %v4215_v52 = vld [vmem:[%s5689_s20 + $0x54] sm:$0xe] }
 0x184   : > { %v4223_v9 = vrot.slane %v4215_v52, 9  ;;  %v4217_v47 = vld [vmem:[%s5689_s20 + $0x6c] sm:$0xe] }
 0x185   : > { %4589 = vmatpush3.bf16.xpose.msra.mxu1 %v1443_v6  ;;  %v3134_v29 = vsel %vm5975_vm6, %v4220_v27, %v3133_v43  ;;  %v5191_v6 = vld [vmem:[#allocation5 + $0xd8] sm:$0xff]   ;;  %v3165_v43 = vsel %vm5975_vm6, %v3163_v33, %v3164_v40  ;;  %v3171_v27 = vrot.slane %v6427_v51, 5 }
 0x186   : > { %4944 = vmatprep.subr.msk.bf16.mxu1 %vm593_vm2, %v5178_v16  ;;  %v4213_v16 = vld [vmem:[%s5689_s20 + $0x3c] sm:$0xe]  ;;  %v4236_v58 = vcombine.low %v3134_v29, %v3137_v17  ;;  %v5206_v29 = vld [vmem:[#allocation5 + $0x230] sm:$0xff]   ;;  %s5309_s20 = scalar_lea.vmem %s5308_s14, 4096 }
 0x187   : > { %v4221_v41 = vrot.slane %v4213_v16, 9  ;;  %v5205_v17 = vld [vmem:[#allocation5 + $0x210] sm:$0xff]   ;;  %p5311_p13 = scmp.lt.s32.totalorder %s5309_s20, %s5303_s11 }
 0x188   : > { %v3285_v25 = vsel %vm593_vm2, %v4236_v58, 0 }
 0x189   : > { %p5312_p3 = por %p5311_p13, %p5310_p11 }
 0x18a   : > { %4717 = vmatpush3.bf16.xpose.msra.mxu0 %v2964_v49  ;;  %v3141_v49 = vsel %vm5975_vm6, %v4221_v41, %v3140_v4  ;;  %v5208_v4 = vld [vmem:[#allocation5 + $0x238] sm:$0xff]  }
 0x18b   : > { %4976 = vmatprep.subr.msk.bf16.mxu0 %vm593_vm2, %v4200_v42  ;;  %v3144_v42 = vsel %vm5975_vm6, %v3142_v55, %v3143_v12  ;;  %p5313_p7 = pnand %p5312_p3, %p5306_p6 }
 0x18c   : > { %v4237_v5 = vcombine.low %v3141_v49, %v3144_v42 }
 0x18d   : > { %4591 = vmatpush3.bf16.xpose.msra.mxu1 %v1446_v8  ;;  %v3149_v8 = vrot.slane %v3147_v61, 4 }
 0x18e   : > { %4945 = vmatprep.subr.msk.bf16.mxu1 %vm593_vm2, %v5183_v23  ;;  %v3150_v23 = vrot.slane %v6352_v30, 5  ;;  %v5202_v30 = vld [vmem:[#allocation5 + $0x220] sm:$0xff]  }
 0x190   : > { %v3151_v18 = vsel %vm5975_vm6, %v3149_v8, %v3150_v23 }
 0x192   : > { %4719 = vmatpush3.bf16.xpose.msra.mxu0 %v2967_v19  ;;  %v3288_v19 = vsel %vm593_vm2, %v4237_v5, 0 }
 0x193   : > { %4977 = vmatprep.subr.msk.bf16.mxu0 %vm593_vm2, %v4201_v36  ;;  %v4238_v36 = vcombine.low %v3148_v14, %v3151_v18 }
 0x195   : > { %4593 = vmatpush3.bf16.xpose.msra.mxu1 %v1449_v24  ;;  %v3155_v24 = vsel %vm5975_vm6, %v4223_v9, %v3154_v38  ;;  %v3291_v59 = vsel %vm593_vm2, %v4238_v36, 0 }
 0x196   : > { %4979 = vmatprep.subr.msk.bf16.mxu1 %vm593_vm2, %v4234_v20 }
 0x19a   : > { %4721 = vmatpush3.bf16.xpose.msra.mxu0 %v2970_v21  ;;  %v4224_v21 = vrot.slane %v4216_v1, 9 }
 0x19b   : > { %4978 = vmatprep.subr.msk.bf16.mxu0 %vm593_vm2, %v4234_v20  ;;  %v3158_v20 = vsel %vm5975_vm6, %v3156_v11, %v3157_v10 }
 0x19c   : > { %4595 = vmatmul.mubr.msk.bf16.vlgmr.msra.gmra.mrb[0].mxu1 %vm593_vm2, %v5187_v28  ;;  %v4239_v2 = vcombine.low %v3155_v24, %v3158_v20  ;;  %v3162_v3 = vsel %vm5975_vm6, %v4224_v21, %v3161_v26  ;;  %v3168_v28 = vrot.slane %v6410_v15, 5 }
 0x19d   : > { %4778 = vmatpush3.bf16.xpose.msra.mxu1 %v3279_v63  ;;  %4598 = vmatprep.mubr.msk.bf16.mxu1 %vm593_vm2, %v5189_v32 }
 0x19e   : > { %4981 = vmatprep.subr.msk.bf16.mxu1 %vm593_vm2, %v4235_v48  ;;  %v3294_v32 = vsel %vm593_vm2, %v4239_v2, 0  ;;  %v3170_v45 = vrot.slane %v3168_v28, 4 }
 0x1a0   : > { %v3172_v15 = vsel %vm5975_vm6, %v3170_v45, %v3171_v27 }
 0x1a1   : > { %4723 = vmatmul.mubr.msk.bf16.vlgmr.msra.gmra.mrb[0].mxu0 %vm593_vm2, %v5188_v50 }
 0x1a2   : > { %4739 = vmatpush3.bf16.xpose.msra.mxu0 %v3279_v63  ;;  %4726 = vmatprep.mubr.msk.bf16.mxu0 %vm593_vm2, %v5190_v37  ;;  %v4240_v63 = vcombine.low %v3162_v3, %v3165_v43  ;;  %v5204_v37 = vld [vmem:[#allocation5 + $0x228] sm:$0xff]  }
 0x1a3   : > { %4980 = vmatprep.subr.msk.bf16.mxu0 %vm593_vm2, %v4235_v48  ;;  %v4225_v48 = vrot.slane %v4217_v47, 9 }
 0x1a4   : > { %4599 = vmatmul.mubr.msk.bf16.gmra.mrb[4].mxu1 %vm593_vm2, %v5191_v6  ;;  %v3297_v7 = vsel %vm593_vm2, %v4240_v63, 0  ;;  %v5207_v6 = vld [vmem:[#allocation5 + $0x218] sm:$0xff]  }
 0x1a5   : > { %4779 = vmatpush3.bf16.xpose.msra.mxu1 %v3282_v62  ;;  %4602 = vmatprep.mubr.msk.bf16.mxu1 %vm593_vm2, %v5193_v34  ;;  %v3169_v35 = vsel %vm5975_vm6, %v4225_v48, %v3168_v28 }
 0x1a6   : > { %4983 = vmatprep.subr.msk.bf16.mxu1 %vm593_vm2, %v4236_v58  ;;  %v4241_v50 = vcombine.low %v3169_v35, %v3172_v15 }
 0x1a8   : > { %v3300_v51 = vsel %vm593_vm2, %v4241_v50, 0 }
 0x1a9   : > { %4727 = vmatmul.mubr.msk.bf16.gmra.mrb[4].mxu0 %vm593_vm2, %v5192_v31 }
 0x1aa   : > { %4741 = vmatpush3.bf16.xpose.msra.mxu0 %v3282_v62  ;;  %4730 = vmatprep.mubr.msk.bf16.mxu0 %vm593_vm2, %v5194_v39 }
 0x1ab   : > { %4982 = vmatprep.subr.msk.bf16.mxu0 %vm593_vm2, %v4236_v58 }
 0x1ac   : > { %4603 = vmatmul.mubr.msk.bf16.gmra.mrb[8].mxu1 %vm593_vm2, %v5195_v46 }
 0x1ad   : > { %4780 = vmatpush3.bf16.xpose.msra.mxu1 %v3285_v25  ;;  %4606 = vmatprep.mubr.msk.bf16.mxu1 %vm593_vm2, %v5197_v13 }
 0x1ae   : > { %4985 = vmatprep.subr.msk.bf16.mxu1 %vm593_vm2, %v4237_v5 }
 0x1b1   : > { %4731 = vmatmul.mubr.msk.bf16.gmra.mrb[8].mxu0 %vm593_vm2, %v5196_v54 }
 0x1b2   : > { %4743 = vmatpush3.bf16.xpose.msra.mxu0 %v3285_v25  ;;  %4734 = vmatprep.mubr.msk.bf16.mxu0 %vm593_vm2, %v5198_v0 }
 0x1b3   : > { %4984 = vmatprep.subr.msk.bf16.mxu0 %vm593_vm2, %v4237_v5 }
 0x1b4   : > { %4607 = vmatmul.mubr.msk.bf16.gmra.mrb[12].mxu1 %vm593_vm2, %v5199_v22 }
 0x1b5   : > { %4781 = vmatpush3.bf16.xpose.msra.mxu1 %v3288_v19  ;;  %4762 = vmatprep.mubr.msk.bf16.mxu1 %vm593_vm2, %v5202_v30 }
 0x1b6   : > { %4987 = vmatprep.subr.msk.bf16.mxu1 %vm593_vm2, %v4238_v36 }
 0x1b9   : > { %4735 = vmatmul.mubr.msk.bf16.gmra.mrb[12].mxu0 %vm593_vm2, %v5200_v53 }
 0x1ba   : > { %4745 = vmatpush3.bf16.xpose.msra.mxu0 %v3288_v19  ;;  %4754 = vmatprep.mubr.msk.bf16.mxu0 %vm593_vm2, %v5201_v56 }
 0x1bb   : > { %4986 = vmatprep.subr.msk.bf16.mxu0 %vm593_vm2, %v4238_v36 }
 0x1bd   : > { %4782 = vmatpush3.bf16.xpose.msra.mxu1 %v3291_v59 }
 0x1be   : > { %4989 = vmatprep.subr.msk.bf16.mxu1 %vm593_vm2, %v4239_v2 }
 0x1c2   : > { %4747 = vmatpush3.bf16.xpose.msra.mxu0 %v3291_v59 }
 0x1c3   : > { %4988 = vmatprep.subr.msk.bf16.mxu0 %vm593_vm2, %v4239_v2 }
 0x1c5   : > { %4783 = vmatpush3.bf16.xpose.msra.mxu1 %v3294_v32 }
 0x1c6   : > { %4991 = vmatprep.subr.msk.bf16.mxu1 %vm593_vm2, %v4240_v63 }
 0x1ca   : > { %4749 = vmatpush3.bf16.xpose.msra.mxu0 %v3294_v32 }
 0x1cb   : > { %4990 = vmatprep.subr.msk.bf16.mxu0 %vm593_vm2, %v4240_v63 }
 0x1cd   : > { %4784 = vmatpush3.bf16.xpose.msra.mxu1 %v3297_v7  ;;  %v6563_v42 = vpop.permute.xlu1 %3552 }
 0x1ce   : > { %4993 = vmatprep.subr.msk.bf16.mxu1 %vm593_vm2, %v4241_v50 }
 0x1d2   : > { %4751 = vmatpush3.bf16.xpose.msra.mxu0 %v3297_v7 }
 0x1d3   : > { %4992 = vmatprep.subr.msk.bf16.mxu0 %vm593_vm2, %v4241_v50 }
 0x1d5   : > { %4785 = vmatpush3.bf16.xpose.msra.mxu1 %v3300_v51 }
 0x1d6   : > { %v3558_v8 = vpop.permute.xlu1 %3557 }
 0x1da   : > { %4753 = vmatpush3.bf16.xpose.msra.mxu0 %v3300_v51  ;;  %v3563_v30 = vpop.permute.xlu1 %3562 }
 0x1dc   : > { %4763 = vmatmul.mubr.msk.bf16.vlgmr.msra.gmra.mrb[16].mxu1 %vm593_vm2, %v5204_v37 }
 0x1dd   : > { %4766 = vmatprep.mubr.msk.bf16.mxu1 %vm593_vm2, %v5206_v29 }
 0x1de   : > { %v6565_v24 = vpop.permute.xlu1 %3567 }
 0x1e1   : > { %4755 = vmatmul.mubr.msk.bf16.vlgmr.msra.gmra.mrb[0].mxu0 %vm593_vm2, %v5203_v60 }
 0x1e2   : > { %4758 = vmatprep.mubr.msk.bf16.mxu0 %vm593_vm2, %v5205_v17  ;;  %v3548_v59 = vpop.permute.xlu0 %3547 }
 0x1e3   : > { %v6567_v20 = vpop.permute.xlu1 %3572 }
 0x1e4   : > { %4767 = vmatmul.mubr.msk.bf16.gmra.mrb[20].mxu1 %vm593_vm2, %v5208_v4 }
 0x1e6   : > { %v3593_v21 = vpop.permute.xlu0 %3592 }
 0x1e7   : > { %v6569_v26 = vpop.permute.xlu1 %3577 }
 0x1e9   : > { %4759 = vmatmul.mubr.msk.bf16.gmra.mrb[4].mxu0 %vm593_vm2, %v5207_v6 }
 0x1eb   : > { %v3603_v32 = vpop.permute.xlu0 %3602 }
 0x1f6   : > { %v6571_v1 = vpop.permute.xlu1 %3582 }
 0x1fa   : > { %v3588_v2 = vpop.permute.xlu1 %3587 }
 0x1fe   : > { %v3598_v43 = vpop.permute.xlu1 %3597 }
 0x26f   : > { %v4596_v16 = vpop.f32.mrb[0].mxu1 }
 0x270   : > { %v1485_v34 = vpop.f32.mrb[1].mxu1 }
 0x271   : > { %v4597_v62 = vpop.f32.mrb[2].mxu1 }
 0x272   : > { %v6553_v58 = vpop.f32.mrb[3].mxu1 }
 0x277   : > { %v6555_v41 = vpop.f32.mrb[4].mxu1 }
 0x278   : > { %v6557_v55 = vpop.f32.mrb[5].mxu1 }
 0x279   : > { %v6559_v12 = vpop.f32.mrb[6].mxu1 }
 0x27a   : > { %v6561_v31 = vpop.f32.mrb[7].mxu1 }
 0x27f   : > { %v4604_v39 = vpop.f32.mrb[8].mxu1 }
 0x280   : > { %v1517_v49 = vpop.f32.mrb[9].mxu1 }
 0x281   : > { %v4605_v61 = vpop.f32.mrb[10].mxu1 }
 0x282   : > { %v1520_v46 = vpop.f32.mrb[11].mxu1 }
 0x284   : > { %v4732_v57 = vpop.f32.mrb[8].mxu0 }
 0x285   : > { %v4794_v13 = vadd.f32 %v4732_v57, %v4604_v39  ;;  %v3038_v25 = vpop.f32.mrb[9].mxu0 }
 0x286   : > { %v4796_v5 = vadd.f32 %v3038_v25, %v1517_v49  ;;  %v4733_v44 = vpop.f32.mrb[10].mxu0  ;;  %v3608_v25 = vpop.permute.xlu1 %3607 }
 0x287   : > { %v4798_v23 = vadd.f32 %v4733_v44, %v4605_v61  ;;  %v3041_v54 = vpop.f32.mrb[11].mxu0  ;;  %v4608_v0 = vpop.f32.mrb[12].mxu1 }
 0x288   : > { %v4800_v14 = vadd.f32 %v3041_v54, %v1520_v46  ;;  %v1533_v18 = vpop.f32.mrb[13].mxu1  ;;  %v3613_v54 = vpop.permute.xlu0 %3612 }
 0x289   : > { %v4609_v38 = vpop.f32.mrb[14].mxu1 }
 0x28a   : > { %v1536_v22 = vpop.f32.mrb[15].mxu1 }
 0x28c   : > { %v4736_v52 = vpop.f32.mrb[12].mxu0 }
 0x28d   : > { %v4802_v19 = vadd.f32 %v4736_v52, %v4608_v0  ;;  %v3054_v36 = vpop.f32.mrb[13].mxu0 }
 0x28e   : > { %v4804_v9 = vadd.f32 %v3054_v36, %v1533_v18  ;;  %v4737_v11 = vpop.f32.mrb[14].mxu0 }
 0x28f   : > { %v4806_v10 = vadd.f32 %v4737_v11, %v4609_v38  ;;  %v3057_v53 = vpop.f32.mrb[15].mxu0 }
 0x290   : > { %v4808_v56 = vadd.f32 %v3057_v53, %v1536_v22 }
 0x2af   : > { %v4764_v33 = vpop.f32.mrb[16].mxu1 }
 0x2b0   : > { %v6573_v40 = vadd.f32 %v4794_v13, %v4764_v33  ;;  %v3368_v3 = vpop.f32.mrb[17].mxu1 }
 0x2b1   : > { %v6575_v28 = vadd.f32 %v4796_v5, %v3368_v3  ;;  %v4765_v47 = vpop.f32.mrb[18].mxu1 }
 0x2b2   : > { %v6578_v63 = vadd.f32 %v4798_v23, %v4765_v47  ;;  %3435 = vadd.xlane.f32.xlu0 %v6573_v40  ;;  %v3371_v48 = vpop.f32.mrb[19].mxu1  ;;  %v3635_v35 = vadd.f32 %v6573_v40, %v3598_v43 }
 0x2b3   : > { %v6581_v45 = vadd.f32 %v4800_v14, %v3371_v48  ;;  %v3633_v51 = vadd.f32 %v6575_v28, %v3588_v2 }
 0x2b4   : > { %v4756_v27 = vpop.f32.mrb[0].mxu0  ;;  %v3636_v15 = vadd.f32 %v6578_v63, %v3603_v32 }
 0x2b5   : > { %v4786_v7 = vadd.f32 %v4756_v27, %v4596_v16  ;;  %v3336_v50 = vpop.f32.mrb[1].mxu0  ;;  %v3634_v37 = vadd.f32 %v6581_v45, %v3593_v21  ;;  %v3456_v33 = vmul.f32 %v6581_v45, %v6581_v45  ;;  %v3544_v27 = vld [vmem:[#allocation7 + $0x78] sm:$0xff] }
 0x2b6   : > { %v4787_v29 = vadd.f32 %v3336_v50, %v1485_v34  ;;  %v4757_v60 = vpop.f32.mrb[2].mxu0  ;;  %v4319_v17 = vpack.c.bf16 %v3636_v15, %v3635_v35 }
 0x2b7   : > { %v4788_v4 = vadd.f32 %v4757_v60, %v4597_v62  ;;  %v3339_v6 = vpop.f32.mrb[3].mxu0  ;;  %3419 = vadd.xlane.f32.xlu1 %v4786_v7  ;;  %v4314_v39 = vpack.c.bf16 %v3634_v37, %v3633_v51  ;;  %v4768_v49 = vpop.f32.mrb[20].mxu1  ;;  %v3627_v57 = vadd.f32 %v4786_v7, %v3558_v8  ;;  %v3449_v36 = vmul.f32 %v4786_v7, %v4786_v7 }
 0x2b8   : > { %v4789_v61 = vadd.f32 %v3339_v6, %v6553_v58  ;;  %4335 = vst [vmem:[%s6588_s27 + $0x28] sm:$0xff] %v4319_v17   ;;  %3415 = vadd.xlane.f32.xlu0 %v4787_v29  ;;  %v6591_v16 = vadd.f32 %v4802_v19, %v4768_v49  ;;  %v3384_v46 = vpop.f32.mrb[21].mxu1  ;;  %v3625_v5 = vadd.f32 %v4787_v29, %v3548_v59 }
 0x2b9   : > { %v3628_v34 = vadd.f32 %v4788_v4, %v3563_v30  ;;  %4334 = vst [vmem:[%s6588_s27 + $0x20] sm:$0xff] %v4314_v39   ;;  %v6594_v62 = vadd.f32 %v4804_v9, %v3384_v46  ;;  %v4769_v13 = vpop.f32.mrb[22].mxu1 }
 0x2ba   : > { %v3626_v58 = vadd.f32 %v4789_v61, %v6563_v42  ;;  %v6597_v44 = vadd.f32 %v4806_v10, %v4769_v13  ;;  %v3387_v23 = vpop.f32.mrb[23].mxu1  ;;  %v3461_v43 = vmul.f32 %v6591_v16, %v6591_v16 }
 0x2bb   : > { %v4299_v0 = vpack.c.bf16 %v3628_v34, %v3627_v57  ;;  %3421 = vadd.xlane.f32.xlu1 %v4788_v4  ;;  %v6599_v14 = vadd.f32 %v4808_v56, %v3387_v23  ;;  %v3637_v52 = vadd.f32 %v6594_v62, %v3608_v25 }
 0x2bc   : > { %v4294_v8 = vpack.c.bf16 %v3626_v58, %v3625_v5  ;;  %v4760_v18 = vpop.f32.mrb[4].mxu0  ;;  %3431 = vadd.xlane.f32.xlu0 %v6575_v28 }
 0x2bd   : > { %4331 = vst [vmem:[%s6588_s27 + $0x8] sm:$0xff] %v4299_v0   ;;  %v4790_v38 = vadd.f32 %v4760_v18, %v6555_v41  ;;  %v3352_v22 = vpop.f32.mrb[5].mxu0  ;;  %v3638_v42 = vadd.f32 %v6599_v14, %v3613_v54  ;;  %v3460_v48 = vmul.f32 %v6599_v14, %v6599_v14 }
 0x2be   : > { %4295 = vst [vmem:[%s6588_s27] sm:$0xff] %v4294_v8   ;;  %v4791_v30 = vadd.f32 %v3352_v22, %v6557_v55  ;;  %v4761_v19 = vpop.f32.mrb[6].mxu0 }
 0x2bf   : > { %v4792_v9 = vadd.f32 %v4761_v19, %v6559_v12  ;;  %v3355_v11 = vpop.f32.mrb[7].mxu0  ;;  %3437 = vadd.xlane.f32.xlu1 %v6578_v63  ;;  %v4324_v10 = vpack.c.bf16 %v3638_v42, %v3637_v52  ;;  %v3631_v53 = vadd.f32 %v4790_v38, %v6569_v26  ;;  %v3457_v12 = vmul.f32 %v6573_v40, %v6573_v40 }
 0x2c0   : > { %v4793_v41 = vadd.f32 %v3355_v11, %v6561_v31  ;;  %3467 = vadd.xlane.f32.xlu0 %v3449_v36  ;;  %v3629_v55 = vadd.f32 %v4791_v30, %v6565_v24  ;;  %v3450_v31 = vmul.f32 %v4788_v4, %v4788_v4  ;;  %v3458_v26 = vmul.f32 %v6578_v63, %v6578_v63 }
 0x2c1   : > { %v3632_v56 = vadd.f32 %v4792_v9, %v6571_v1  ;;  %4336 = vst [vmem:[%s6588_s27 + $0x30] sm:$0xff] %v4324_v10   ;;  %v3447_v1 = vmul.f32 %v4787_v29, %v4787_v29  ;;  %v3448_v24 = vmul.f32 %v4789_v61, %v4789_v61  ;;  %v3453_v40 = vmul.f32 %v4790_v38, %v4790_v38 }
 0x2c2   : > { %v3630_v59 = vadd.f32 %v4793_v41, %v6567_v20  ;;  %v3455_v20 = vmul.f32 %v6575_v28, %v6575_v28  ;;  %v3454_v3 = vmul.f32 %v4792_v9, %v4792_v9  ;;  %v3462_v28 = vmul.f32 %v6597_v44, %v6597_v44 }
 0x2c3   : > { %v4309_v2 = vpack.c.bf16 %v3632_v56, %v3631_v53  ;;  %3433 = vadd.xlane.f32.xlu1 %v6581_v45  ;;  %v3451_v47 = vmul.f32 %v4791_v30, %v4791_v30  ;;  %v3452_v32 = vmul.f32 %v4793_v41, %v4793_v41  ;;  %v3459_v63 = vmul.f32 %v6594_v62, %v6594_v62  ;;  %v3543_v45 = vld [vmem:[#allocation7 + $0x70] sm:$0xff] }
 0x2c4   : > { %v4304_v21 = vpack.c.bf16 %v3630_v59, %v3629_v55  ;;  %3483 = vadd.xlane.f32.xlu0 %v3457_v12 }
 0x2c5   : > { %4333 = vst [vmem:[%s6588_s27 + $0x18] sm:$0xff] %v4309_v2  }
 0x2c6   : > { %4332 = vst [vmem:[%s6588_s27 + $0x10] sm:$0xff] %v4304_v21  }
 0x2c7   : > { %3469 = vadd.xlane.f32.xlu1 %v3450_v31 }
 0x2c8   : > { %3417 = vadd.xlane.f32.xlu0 %v4789_v61 }
 0x2cb   : > { %3485 = vadd.xlane.f32.xlu1 %v3458_v26 }
 0x2cc   : > { %3463 = vadd.xlane.f32.xlu0 %v3447_v1 }
 0x2cf   : > { %3465 = vadd.xlane.f32.xlu1 %v3448_v24 }
 0x2d0   : > { %3479 = vadd.xlane.f32.xlu0 %v3455_v20 }
 0x2d3   : > { %3481 = vadd.xlane.f32.xlu1 %v3456_v33 }
 0x2d4   : > { %3427 = vadd.xlane.f32.xlu0 %v4790_v38 }
 0x2d7   : > { %3429 = vadd.xlane.f32.xlu1 %v4792_v9 }
 0x2d8   : > { %3443 = vadd.xlane.f32.xlu0 %v6591_v16 }
 0x2db   : > { %3445 = vadd.xlane.f32.xlu1 %v6597_v44 }
 0x2dc   : > { %3423 = vadd.xlane.f32.xlu0 %v4791_v30 }
 0x2df   : > { %3425 = vadd.xlane.f32.xlu1 %v4793_v41 }
 0x2e0   : > { %3439 = vadd.xlane.f32.xlu0 %v6594_v62 }
 0x2e3   : > { %3441 = vadd.xlane.f32.xlu1 %v6599_v14 }
 0x2e4   : > { %3475 = vadd.xlane.f32.xlu0 %v3453_v40 }
 0x2e7   : > { %3477 = vadd.xlane.f32.xlu1 %v3454_v3 }
 0x2e8   : > { %3491 = vadd.xlane.f32.xlu0 %v3461_v43 }
 0x2eb   : > { %3493 = vadd.xlane.f32.xlu1 %v3462_v28 }
 0x2ec   : > { %3471 = vadd.xlane.f32.xlu0 %v3451_v47 }
 0x2ef   : > { %3473 = vadd.xlane.f32.xlu1 %v3452_v32 }
 0x2f0   : > { %3487 = vadd.xlane.f32.xlu0 %v3459_v63 }
 0x2f3   : > { %3489 = vadd.xlane.f32.xlu1 %v3460_v48 }
 0x304   : > { %3617 = vperm.xlu1 %5112, %v3543_v45  }
 0x306   : > { %3622 = vperm.xlu0 %5111, %v3544_v27  }
 0x33f   : > { %v3436_v35 = vpop.xlane.xlu0 %3435 }
 0x344   : > { %v3420_v15 = vpop.xlane.xlu1 %3419 }
 0x345   : > { %v3416_v7 = vpop.xlane.xlu0 %3415 }
 0x348   : > { %v3422_v50 = vpop.xlane.xlu1 %3421 }
 0x349   : > { %v3432_v51 = vpop.xlane.xlu0 %3431 }
 0x34c   : > { %v3438_v37 = vpop.xlane.xlu1 %3437 }
 0x34d   : > { %v3468_v29 = vpop.xlane.xlu0 %3467 }
 0x34e   : > { %v3498_v60 = vsel %vm3495_vm7, %v3420_v15, %v3468_v29 }
 0x34f   : > { %3515 = vst.msk [vmem:[%s6641_s7 + $0x10] sm:$0xff] %vm3512_vm8, %v3498_v60 }
 0x350   : > { %v3434_v17 = vpop.xlane.xlu1 %3433 }
 0x351   : > { %v3484_v4 = vpop.xlane.xlu0 %3483 }
 0x352   : > { %v3506_v6 = vsel %vm3495_vm7, %v3436_v35, %v3484_v4 }
 0x353   : > { %3523 = vst.msk [vmem:[%s6641_s7 + $0x50] sm:$0xff] %vm3512_vm8, %v3506_v6 }
 0x354   : > { %v3470_v39 = vpop.xlane.xlu1 %3469 }
 0x355   : > { %v3499_v49 = vsel %vm3495_vm7, %v3422_v50, %v3470_v39  ;;  %v3418_v61 = vpop.xlane.xlu0 %3417 }
 0x356   : > { %3516 = vst.msk [vmem:[%s6641_s7 + $0x18] sm:$0xff] %vm3512_vm8, %v3499_v49 }
 0x358   : > { %v3486_v46 = vpop.xlane.xlu1 %3485 }
 0x359   : > { %v3507_v57 = vsel %vm3495_vm7, %v3438_v37, %v3486_v46  ;;  %v3464_v34 = vpop.xlane.xlu0 %3463 }
 0x35a   : > { %3524 = vst.msk [vmem:[%s6641_s7 + $0x58] sm:$0xff] %vm3512_vm8, %v3507_v57  ;;  %v3496_v62 = vsel %vm3495_vm7, %v3416_v7, %v3464_v34 }
 0x35b   : > { %3513 = vst.msk [vmem:[%s6641_s7] sm:$0xff] %vm3512_vm8, %v3496_v62 }
 0x35c   : > { %v3466_v13 = vpop.xlane.xlu1 %3465 }
 0x35d   : > { %v3497_v25 = vsel %vm3495_vm7, %v3418_v61, %v3466_v13  ;;  %v3480_v5 = vpop.xlane.xlu0 %3479 }
 0x35e   : > { %3514 = vst.msk [vmem:[%s6641_s7 + $0x8] sm:$0xff] %vm3512_vm8, %v3497_v25  ;;  %v3504_v58 = vsel %vm3495_vm7, %v3432_v51, %v3480_v5 }
 0x35f   : > { %3521 = vst.msk [vmem:[%s6641_s7 + $0x40] sm:$0xff] %vm3512_vm8, %v3504_v58 }
 0x360   : > { %v3482_v23 = vpop.xlane.xlu1 %3481 }
 0x361   : > { %v3505_v54 = vsel %vm3495_vm7, %v3434_v17, %v3482_v23  ;;  %v3428_v0 = vpop.xlane.xlu0 %3427 }
 0x362   : > { %3522 = vst.msk [vmem:[%s6641_s7 + $0x48] sm:$0xff] %vm3512_vm8, %v3505_v54 }
 0x364   : > { %v3430_v14 = vpop.xlane.xlu1 %3429 }
 0x365   : > { %v3444_v8 = vpop.xlane.xlu0 %3443 }
 0x368   : > { %v3446_v18 = vpop.xlane.xlu1 %3445 }
 0x369   : > { %v3424_v38 = vpop.xlane.xlu0 %3423 }
 0x36c   : > { %v3426_v22 = vpop.xlane.xlu1 %3425 }
 0x36d   : > { %v3440_v52 = vpop.xlane.xlu0 %3439 }
 0x370   : > { %v3442_v42 = vpop.xlane.xlu1 %3441 }
 0x371   : > { %v3476_v30 = vpop.xlane.xlu0 %3475 }
 0x372   : > { %v3502_v19 = vsel %vm3495_vm7, %v3428_v0, %v3476_v30 }
 0x373   : > { %3519 = vst.msk [vmem:[%s6641_s7 + $0x30] sm:$0xff] %vm3512_vm8, %v3502_v19 }
 0x374   : > { %v3478_v36 = vpop.xlane.xlu1 %3477 }
 0x375   : > { %v3503_v9 = vsel %vm3495_vm7, %v3430_v14, %v3478_v36  ;;  %v3492_v11 = vpop.xlane.xlu0 %3491 }
 0x376   : > { %3520 = vst.msk [vmem:[%s6641_s7 + $0x38] sm:$0xff] %vm3512_vm8, %v3503_v9  ;;  %v3510_v10 = vsel %vm3495_vm7, %v3444_v8, %v3492_v11 }
 0x377   : > { %3527 = vst.msk [vmem:[%s6641_s7 + $0x70] sm:$0xff] %vm3512_vm8, %v3510_v10 }
 0x378   : > { %v3494_v41 = vpop.xlane.xlu1 %3493 }
 0x379   : > { %v3511_v53 = vsel %vm3495_vm7, %v3446_v18, %v3494_v41  ;;  %v3472_v56 = vpop.xlane.xlu0 %3471 }
 0x37a   : > { %3528 = vst.msk [vmem:[%s6641_s7 + $0x78] sm:$0xff] %vm3512_vm8, %v3511_v53  ;;  %v3500_v55 = vsel %vm3495_vm7, %v3424_v38, %v3472_v56 }
 0x37b   : > { %3517 = vst.msk [vmem:[%s6641_s7 + $0x20] sm:$0xff] %vm3512_vm8, %v3500_v55 }
 0x37c   : > { %v3474_v59 = vpop.xlane.xlu1 %3473 }
 0x37d   : > { %v3501_v12 = vsel %vm3495_vm7, %v3426_v22, %v3474_v59  ;;  %v3488_v2 = vpop.xlane.xlu0 %3487 }
 0x37e   : > { %3518 = vst.msk [vmem:[%s6641_s7 + $0x28] sm:$0xff] %vm3512_vm8, %v3501_v12  ;;  %v3508_v21 = vsel %vm3495_vm7, %v3440_v52, %v3488_v2 }
 0x37f   : > { %3525 = vst.msk [vmem:[%s6641_s7 + $0x60] sm:$0xff] %vm3512_vm8, %v3508_v21 }
 0x380   : > { %v3490_v31 = vpop.xlane.xlu1 %3489 }
 0x381   : > { %v3509_v26 = vsel %vm3495_vm7, %v3442_v42, %v3490_v31 }
 0x382   : > { %3526 = vst.msk [vmem:[%s6641_s7 + $0x68] sm:$0xff] %vm3512_vm8, %v3509_v26 }
 0x383   : > { %5316 = shalt.err (!%p5313_p7)
}
 0x384   : > { %s5317_s18 = scalar_lea.hbm %s6695_s5, 2048  ;;  %s5321_s7 = scalar_lea.hbm %s6800_s4, 8192 }
 0x385   : > { %p5318_p12 = scmp.ne.s32.totalorder %s6695_s5, %s5317_s18  ;;  %p5322_p5 = scmp.lt.u32.totalorder %s6695_s5, %s6800_s4 }
 0x386   : > { %p5323_p9 = scmp.lt.u32.totalorder %s5321_s7, %s5317_s18  ;;  %p5325_p4 = scmp.lt.u32.totalorder %s5317_s18, %s6695_s5 }
 0x387   : > { %p5319_p1 = pnand %p5318_p12, %p5623_p8 }
 0x388   : > { %p5324_p0 = por %p5323_p9, %p5322_p5 }
 0x389   : > { %p5320_p2 = pneg %p5319_p1 }
 0x38a   : > { %p5326_p10 = por %p5325_p4, %p5324_p0 }
 0x38c   : > { %p5327_p6 = pnand %p5326_p10, %p5320_p2 }
 0x38e   : > { %5330 = shalt.err (!%p5327_p6)
}
 0x38f   : > { %s5448_s30 = smov 128   ;;  %s5449_s19 = smov 8   ;;  %v3618_v1 = vpop.permute.xlu1 %3617  ;;  %v3623_v24 = vpop.permute.xlu0 %3622 }
 0x390   : > { %5009 = dma.vmem_to_hbm [thread:$0]  (%p5623_p8), %s6690_s12, 2048, %s6695_s5, %s3727_s10, %s5448_s30, %s5448_s30, %s5449_s19   ;;  %v3639_v20 = vadd.f32 %v6591_v16, %v3618_v1  ;;  %v3640_v33 = vadd.f32 %v6597_v44, %v3623_v24 }
 0x391   : > { %s4269_s13 = sshll.u32 %s6702_s9, 6  ;;  %s3722_s12 = scalar_lea.sflag [#allocation4], %s5685_s6 }
 0x392   : > { %v4329_v40 = vpack.c.bf16 %v3640_v33, %v3639_v20  ;;  %s6740_s2 = scalar_lea.hbm %s6799_s3, %s4269_s13  ;;  %s5331_s5 = scalar_lea.vmem %s6733_s28, 1024 }
 0x393   : > { %p5332_p11 = scmp.ne.s32.totalorder %s6733_s28, %s5331_s5  ;;  %s5450_s9 = smov [#allocation8]  }
 0x394   : > { %4337 = vst [vmem:[%s6588_s27 + $0x38] sm:$0xff] %v4329_v40   ;;  %s5335_s10 = sshll.u32 %s5450_s9, 4  ;;  %s5336_s10 = int_to_ptr.vmem [resolvable:$false] %s5335_s10 }
 0x395   : > { %p5333_p13 = pnand %p5332_p11, %p5623_p8  ;;  %s5337_s14 = scalar_lea.vmem %s5336_s10, 2048 }
 0x396   : > { %p5338_p7 = scmp.lt.s32.totalorder %s6733_s28, %s5336_s10  ;;  %p5339_p12 = scmp.lt.s32.totalorder %s5337_s14, %s5331_s5 }
 0x397   : > { %p5334_p3 = pneg %p5333_p13 }
 0x398   : > { %p5340_p1 = por %p5339_p12, %p5338_p7 }
 0x39a   : > { %p5341_p2 = pnand %p5340_p1, %p5334_p3 }
 0x39c   : > { %5344 = shalt.err (!%p5341_p2)
}
 0x39d   : > { %s5345_s27 = scalar_lea.hbm %s6740_s2, 1024  ;;  %s5349_s25 = scalar_lea.hbm %s6799_s3, 4096 }
 0x39e   : > { %p5346_p5 = scmp.ne.s32.totalorder %s6740_s2, %s5345_s27  ;;  %p5350_p4 = scmp.lt.u32.totalorder %s6740_s2, %s6799_s3 }
 0x39f   : > { %p5351_p10 = scmp.lt.u32.totalorder %s5349_s25, %s5345_s27  ;;  %p5353_p11 = scmp.lt.u32.totalorder %s5345_s27, %s6740_s2 }
 0x3a0   : > { %p5347_p9 = pnand %p5346_p5, %p5623_p8 }
 0x3a1   : > { %p5352_p6 = por %p5351_p10, %p5350_p4 }
 0x3a2   : > { %p5348_p0 = pneg %p5347_p9 }
 0x3a3   : > { %p5354_p13 = por %p5353_p11, %p5352_p6 }
 0x3a5   : > { %p5355_p3 = pnand %p5354_p13, %p5348_p0 }
 0x3a7   : > { %5358 = shalt.err (!%p5355_p3)
}
 0x3a8   : > { %s5451_s26 = smov 64   ;;  %s5452_s23 = smov 4  }
 0x3a9   : > { %5008 = dma.vmem_to_hbm [thread:$0]  (%p5623_p8), %s6733_s28, 1024, %s6740_s2, %s3722_s12, %s5451_s26, %s5448_s30, %s5452_s23  }
 0x3aa PF: > { %s6841_s19 = sld [smem:[#allocation16_spill]]  ;;  %p5035_p7 = scmp.ge.s32.totalorder %s5437_s22, 2 }
 0x3ab   : > { %s3774_s13 = sand.u32 1, %s5409_s15  }
 0x3ac   : > { %s3775_s24 = scalar_lea.sflag [#allocation4], %s3774_s13 }
 0x3b0   : > { %p6842_p12 = scmp.ne.s32.totalorder %s6841_s19, 0 }
 0x3b2   : > { %p5024_p1 = pnand %p5035_p7, %p6842_p12 }
 0x3b4   : > { %5400 = dma.done.wait (!%p5024_p1), %s3775_s24, 1024  }
 0x3b5   : > { %5402 = vsyncadd (!%p5024_p1), %s3775_s24, 4294966272  ;;  %s3784_s11 = scalar_lea.sflag [#allocation10], %s3774_s13 }
 0x3b6   : > { %5404 = dma.done.wait (!%p5024_p1), %s3784_s11, 2048  }
 0x3b7   : > { %5406 = vsyncadd (!%p5024_p1), %s3784_s11, 4294965248  ;;  %s25_s22 = sadd.s32 1, %s5437_s22   ;;  %s6843_s18 = sld [smem:[#allocation15_spill]] }
 0x3b8   : > { %p22_p2 = scmp.ge.s32.totalorder %s25_s22, 6   ;;  %s6844_s20 = sld [smem:[#allocation17_spill]] }
 0x3b9   : > { %s6845_s8 = sld [smem:[#allocation18_spill]]  ;;  %s6846_s15 = smov %s5413_s16 }
 0x3ba   : > { %s6847_s16 = smov %s5417_s17  ;;  %s6848_s17 = smov %s5642_s1 }
 0x3bb   : > { %s6849_s19 = smov %s5433_s21  ;;  %24 = sbr.rel (!%p22_p2) target bundleno = 13 (0xd), region = 112 }
 0x3bf   : > { %s6850_s21 = smov %s6845_s8 }
 0x3c2   :  { %3789 = vsyncpa [#allocation3], 1 }
 0x3c3   :  { %3791 = vsyncpa [#allocation3 + $0x1], 1 }
 0x3c4   :  { %3792 = vsyncpa [#allocation6], 1 }
 0x3c5   :  { %3793 = vsyncpa [#allocation4], 1 }
 0x3c6   :  { %3795 = vsyncpa [#allocation4 + $0x1], 1 }
 0x3c7   :  { %3796 = vsyncpa [#allocation10], 1 }
 0x3c8   :  { %3798 = vsyncpa [#allocation10 + $0x1], 1 }

// kernel: tpu_custom_call.1
= control target key start
LH: loop header
LB: loop body
LE: loop exit
PB: predicated region body
PF: predicated region fallthrough
CT: control target
= control target key end

     0   :  { %s6796_s0 = inlined_call_operand.hbm [shape: bf16[2,2,10,18,4], index: 0, kind: input, shape index: {}]   ;;  %s6797_s1 = inlined_call_operand.hbm [shape: bf16[9,128,4], index: 1, kind: input, shape index: {}]   ;;  %s6798_s2 = inlined_call_operand.hbm [shape: f32[128,1], index: 2, kind: input, shape index: {}]   ;;  %s6799_s3 = inlined_call_operand.hbm [shape: bf16[2,128,256], index: 3, kind: output, shape index: {0}]   ;;  %s6800_s4 = inlined_call_operand.hbm [shape: f32[2,2,128,2], index: 4, kind: output, shape index: {1}]  }
   0x1   :  { %6811 = sst [smem:[#allocation19_spill]] %s6797_s1 }
   0x2   :  { %6812 = sst [smem:[#allocation20_spill]] %s6798_s2 }
   0x3   :  { %10 = vsyncpa [#allocation3], 0 }
   0x4   :  { %12 = vsyncpa [#allocation3 + $0x1], 0 }
   0x5   :  { %13 = vsyncpa [#allocation6], 0 }
   0x6   :  { %14 = vsyncpa [#allocation4], 0 }
   0x7   :  { %16 = vsyncpa [#allocation4 + $0x1], 0 }
   0x8   :  { %17 = vsyncpa [#allocation10], 0 }
   0x9   :  { %19 = vsyncpa [#allocation10 + $0x1], 0  ;;  %s5478_s15 = smov 0   ;;  %s5480_s16 = smov 0  }
   0xa   :  { %s5482_s17 = smov 0   ;;  %s5484_s18 = smov 0  }
   0xb   :  { %s5486_s19 = smov 0   ;;  %s5488_s20 = smov 0  }
   0xc   :  { %s5490_s21 = smov 0   ;;  %s5492_s22 = smov 0  }
   0xd LB: > { %6813 = sst [smem:[#allocation15_spill]] %s5429_s20  ;;  %s3902_s23 = sadd.s32 4294967295, %s5437_s22   ;;  %s5437_s22 = sphi %s5492_s22, %s25_s22   ;;  %s5433_s21 = sphi %s5490_s21, %s6850_s21   ;;  %s5429_s20 = sphi %s5488_s20, %s6844_s20   ;;  %s5425_s19 = sphi %s5486_s19, %s6849_s19   ;;  %s5421_s18 = sphi %s5484_s18, %s6843_s18   ;;  %s5417_s17 = sphi %s5482_s17, %s6848_s17   ;;  %s5413_s16 = sphi %s5480_s16, %s6847_s16   ;;  %s5409_s15 = sphi %s5478_s15, %s6846_s15  }
   0xe   : > { %s3903_s24 = sadd.s32 4294967294, %s5437_s22   ;;  %p59_p0 = scmp.ne.s32.totalorder %s5413_s16, %s5409_s15 }
   0xf   : > { %p5522_p1 = scmp.eq.s32.totalorder %s3902_s23, 0  ;;  %p5526_p2 = scmp.eq.s32.totalorder %s3902_s23, 3 }
  0x10   : > { %p133_p3 = scmp.eq.s32.totalorder %s3903_s24, 3  ;;  %p3904_p5 = scmp.ge.s32.totalorder %s5437_s22, 1 }
  0x11   : > { %s6814_s25 = scalar_select %p5522_p1, 1, 0 }
  0x12   : > { %s6815_s26 = scalar_select %p5526_p2, 1, 0 }
  0x13   : > { %p5532_p4 = por %p5522_p1, %p59_p0  ;;  %p5537_p6 = por %p133_p3, %p59_p0 }
  0x14   : > { %p168_p7 = scmp.lt.s32.totalorder %s5437_s22, 5  ;;  %s5439_s30 = smov [#allocation5]  }
  0x15   : > { %s6816_s27 = scalar_select %p5532_p4, 1, 0 }
  0x16   : > { %s6817_s28 = scalar_select %p5537_p6, 1, 0 }
  0x17   : > { %p5542_p8 = pnand %p3904_p5, %p168_p7  ;;  %s180_s5 = sshll.u32 %s5439_s30, 4  ;;  %s181_s5 = int_to_ptr.vmem [resolvable:$true] %s180_s5 }
  0x18   : > { %6818 = sst [smem:[#allocation16_spill]] %s6817_s28  ;;  %s5440_s7 = smov [#allocation7]  }
  0x19   : > { %s6819_s29 = scalar_select %p5542_p8, 1, 0 }
  0x1a   : > { %p5012_p9 = pneg %p5542_p8  ;;  %s193_s8 = sshll.u32 %s5440_s7, 4  ;;  %s5554_s8 = int_to_ptr.vmem [resolvable:$true] %s193_s8 }
  0x1b   : > { %s6821_s1 = sld [smem:[#allocation19_spill]] }
  0x1c   : > { %p5550_p10 = pnand %p5012_p9, %p5522_p1 }
  0x1e   : > { %p5219_p12 = pneg %p5550_p10 }
  0x21   : > { %s5217_s11 = scalar_lea.hbm %s6821_s1, 9216 }
  0x22   : > { %p5218_p11 = scmp.ne.s32.totalorder %s6821_s1, %s5217_s11  ;;  %p5224_p3 = scmp.lt.u32.totalorder %s5217_s11, %s6821_s1 }
  0x24   : > { %p5220_p13 = pnand %p5219_p12, %p5218_p11 }
  0x26   : > { %p5221_p0 = pneg %p5220_p13 }
  0x28   : > { %p5226_p5 = pnand %p5224_p3, %p5221_p0 }
  0x2a   : > { %5229 = shalt.err (!%p5226_p5)
}
  0x2b   : > { %s5230_s24 = scalar_lea.vmem %s181_s5, 9216  ;;  %p5238_p1 = scmp.lt.s32.totalorder %s181_s5, %s181_s5 }
  0x2c   : > { %p5231_p7 = scmp.ne.s32.totalorder %s181_s5, %s5230_s24  ;;  %p5239_p4 = scmp.lt.s32.totalorder %s5230_s24, %s5230_s24 }
  0x2e   : > { %p5233_p9 = pnand %p5231_p7, %p5219_p12  ;;  %p5240_p8 = por %p5239_p4, %p5238_p1 }
  0x30   : > { %p5234_p6 = pneg %p5233_p9 }
  0x32   : > { %p5241_p2 = pnand %p5240_p8, %p5234_p6 }
  0x34   : > { %5244 = shalt.err (!%p5241_p2)
}
  0x35   : > { %s6806_s30 = smov 64   ;;  %s6807_s7 = smov 4  }
  0x36   : > { %5015 = dma.hbm_to_vmem [thread:$0]  (!%p5550_p10), %s6821_s1, 9216, %s181_s5, [#allocation6], %s6806_s30, %s6806_s30, %s6807_s7  }
  0x37   : > { %s6822_s2 = sld [smem:[#allocation20_spill]] }
  0x3d   : > { %s5245_s13 = scalar_lea.hbm %s6822_s2, 2048 }
  0x3e   : > { %p5246_p1 = scmp.ne.s32.totalorder %s6822_s2, %s5245_s13  ;;  %p5252_p6 = scmp.lt.u32.totalorder %s5245_s13, %s6822_s2 }
  0x40   : > { %p5248_p2 = pnand %p5246_p1, %p5219_p12 }
  0x42   : > { %p5249_p4 = pneg %p5248_p2 }
  0x44   : > { %p5254_p8 = pnand %p5252_p6, %p5249_p4 }
  0x46   : > { %5257 = shalt.err (!%p5254_p8)
}
  0x47   : > { %s5258_s5 = scalar_lea.vmem %s5554_s8, 2048  ;;  %p5266_p3 = scmp.lt.s32.totalorder %s5554_s8, %s5554_s8 }
  0x48   : > { %p5259_p11 = scmp.ne.s32.totalorder %s5554_s8, %s5258_s5  ;;  %p5267_p5 = scmp.lt.s32.totalorder %s5258_s5, %s5258_s5 }
  0x4a   : > { %p5261_p13 = pnand %p5259_p11, %p5219_p12  ;;  %p5268_p7 = por %p5267_p5, %p5266_p3 }
  0x4c   : > { %p5262_p0 = pneg %p5261_p13 }
  0x4e   : > { %p5269_p9 = pnand %p5268_p7, %p5262_p0 }
  0x50   : > { %5272 = shalt.err (!%p5269_p9)
}
  0x51   : > { %s5443_s28 = smov 128   ;;  %s5444_s9 = smov 8  }
  0x52   : > { %5018 = dma.hbm_to_vmem [thread:$0]  (!%p5550_p10), %s6822_s2, 2048, %s5554_s8, [#allocation6], %s5443_s28, %s5443_s28, %s5444_s9  }
  0x53   : > { %s34_s12 = sadd.s32 1, %s5429_s20  ;;  %s37_s13 = sadd.s32 1, %s5433_s21 }
  0x54   : > { %p35_p12 = scmp.ge.s32.totalorder %s34_s12, 2  ;;  %s46_s14 = sadd.s32 1, %s5417_s17 }
  0x55   : > { %p53_p1 = scmp.ne.s32.totalorder %s5417_s17, %s5413_s16  ;;  %p54_p2 = scmp.eq.s32.totalorder %s5437_s22, 0 }
  0x56   : > { %s6852_s12 = smov (%p35_p12, %s34_s12), 0  ;;  %s6854_s13 = smov (!%p35_p12, %s37_s13), %s5433_s21 }
  0x57   : > { %6823 = sst [smem:[#allocation17_spill]] %s6852_s12  ;;  %s42_s23 = ssub.s32 %s5429_s20, %s6852_s12 }
  0x58   : > { %p5617_p4 = por %p54_p2, %p53_p1  ;;  %p39_p10 = scmp.ge.s32.totalorder %s6854_s13, 2 }
  0x59   : > { %p6825_p6 = scmp.ne.s32.totalorder %s6815_s26, 0  ;;  %p5032_p11 = scmp.lt.s32.totalorder %s5437_s22, 4 }
  0x5a   : > { %s207_s24 = sand.u32 1, %s5417_s17   ;;  %s6856_s13 = smov (%p39_p10, %s6854_s13), 0 }
  0x5b   : > { %p5623_p8 = por %p6825_p6, %p53_p1  ;;  %6827 = sst [smem:[#allocation18_spill]] %s6856_s13 }
  0x5c   : > { %s4994_s5 = smul.u32 120, %s207_s24  ;;  %s41_s28 = ssub.s32 %s5433_s21, %s6856_s13 }
  0x5d   : > { %s4995_s9 = smul.u32 30, %s5429_s20  ;;  %s43_s10 = sor.u32 %s42_s23, %s41_s28 }
  0x5e   : > { %p44_p13 = scmp.eq.s32.totalorder %s43_s10, 0  ;;  %s4996_s11 = smul.u32 60, %s5433_s21 }
  0x5f   : > { %s211_s30 = scalar_lea.vmem [#allocation2], %s4994_s5  ;;  %p5637_p0 = pnand %p5032_p11, %p5617_p4 }
  0x60   : > { %s220_s7 = sshll.u32 %s211_s30, 4  ;;  %s217_s2 = sadd.s32 %s4996_s11, %s4995_s9  ;;  %s5644_s7 = int_to_ptr.vmem [resolvable:$true] %s220_s7 }
  0x61   : > { %s5642_s1 = scalar_select %p44_p13, %s5417_s17, %s46_s14  }
  0x62   : > { %s3908_s12 = sshll.u32 %s217_s2, 6  ;;  %s5651_s30 = scalar_lea.sflag [#allocation3], %s207_s24 }
  0x63   : > { %s5649_s23 = scalar_lea.hbm %s6796_s0, %s3908_s12  ;;  %p5275_p5 = pneg %p5637_p0 }
  0x64   : > { %s5273_s6 = scalar_lea.hbm %s5649_s23, 1920  ;;  %s5278_s20 = scalar_lea.hbm %s6796_s0, 7680 }
  0x65   : > { %p5274_p3 = scmp.ne.s32.totalorder %s5649_s23, %s5273_s6  ;;  %p5279_p12 = scmp.lt.u32.totalorder %s5649_s23, %s6796_s0 }
  0x66   : > { %p5280_p1 = scmp.lt.u32.totalorder %s5278_s20, %s5273_s6  ;;  %p5282_p4 = scmp.lt.u32.totalorder %s5273_s6, %s5649_s23 }
  0x67   : > { %p5276_p7 = pnand %p5275_p5, %p5274_p3 }
  0x68   : > { %p5281_p2 = por %p5280_p1, %p5279_p12 }
  0x69   : > { %p5277_p9 = pneg %p5276_p7 }
  0x6a   : > { %p5283_p10 = por %p5282_p4, %p5281_p2 }
  0x6c   : > { %p5284_p6 = pnand %p5283_p10, %p5277_p9 }
  0x6e   : > { %5287 = shalt.err (!%p5284_p6)
}
  0x6f   : > { %s5288_s24 = scalar_lea.vmem %s5644_s7, 1920  ;;  %s5445_s5 = smov [#allocation2]  }
  0x70   : > { %p5289_p11 = scmp.ne.s32.totalorder %s5644_s7, %s5288_s24  ;;  %s5293_s28 = sshll.u32 %s5445_s5, 4  ;;  %s5294_s28 = int_to_ptr.vmem [resolvable:$false] %s5293_s28 }
  0x71   : > { %s5295_s9 = scalar_lea.vmem %s5294_s28, 3840  ;;  %p5296_p7 = scmp.lt.s32.totalorder %s5644_s7, %s5294_s28 }
  0x72   : > { %p5291_p13 = pnand %p5289_p11, %p5275_p5  ;;  %p5297_p12 = scmp.lt.s32.totalorder %s5295_s9, %s5288_s24 }
  0x74   : > { %p5292_p3 = pneg %p5291_p13  ;;  %p5298_p1 = por %p5297_p12, %p5296_p7 }
  0x76   : > { %p5299_p2 = pnand %p5298_p1, %p5292_p3 }
  0x78   : > { %5302 = shalt.err (!%p5299_p2)
}
  0x79   : > { %s6829_s10 = smov 4   ;;  %s6830_s11 = smov 64  }
  0x7a   : > { %5022 = dma.hbm_to_vmem [thread:$0]  (!%p5637_p0), %s5649_s23, 1920, %s5644_s7, %s5651_s30, %s6830_s11, %s6830_s11, %s6829_s10  }
  0x7b   : > { %p6831_p5 = scmp.ne.s32.totalorder %s6819_s29, 0 }
  0x7c   : > { %s5685_s6 = sand.u32 (!%p6831_p5), 1, %s5413_s16   ;;  %p6832_p9 = scmp.ne.s32.totalorder (!%p6831_p5), %s6816_s27, 0 }
  0x7d   : > { %232 = sbr.rel (%p6831_p5) target bundleno = 938 (0x3aa), region = 32  ;;  %s235_s14 = scalar_lea.sflag (!%p6831_p5), [#allocation3], %s5685_s6 }
  0x7e   : > { %s4997_s2 = smul.u32 (!%p6831_p5), 120, %s5685_s6 }
  0x80   : > { %s5689_s20 = scalar_lea.vmem (!%p6831_p5), [#allocation2], %s4997_s2 }
  0x84   : > { %5392 = dma.done.wait (%p6832_p9), %s235_s14, 1920  }
  0x85   : > { %5394 = vsyncadd (%p6832_p9), %s235_s14, 4294965376  ;;  %p6833_p0 = scmp.ne.s32.totalorder %s6814_s25, 0 }
  0x87   : > { %5396 = dma.done.wait (%p6833_p0), [#allocation6], 11264  }
  0x88   : > { %5398 = vsyncadd (%p6833_p0), [#allocation6], 4294956032  ;;  %vm317_vm0 = vsmask.f32 3328  ;;  %vm318_vm1 = vsmask.f32 7440 }
  0x89   : > { %v5700_v0 = vld [vmem:[%s5689_s20] sm:$0xf]  ;;  %v5703_v1 = vld [vmem:[%s5689_s20 + $0x4] sm:$0xf]  ;;  %v309_v2 = vld [vmem:[%s5689_s20 + $0x8] sm:$0x1] }
  0x8a   : > { %v321_v3 = vshrl.u32 %v5700_v0, 16  ;;  %v324_v4 = vshll.u32 %v5700_v0, 16  ;;  %v330_v5 = vshll.u32 %v5703_v1, 16  ;;  %v334_v6 = vshrl.u32 %v5703_v1, 16  ;;  %v4034_v7 = vld [vmem:[%s5689_s20 + $0xc] sm:$0xf]  ;;  %vm5725_vm3 = vmor %vm317_vm0, %vm318_vm1 }
  0x8b   : > { %v340_v8 = vshll.u32 %v309_v2, 16  ;;  %vm593_vm2 = vcmask 31744   ;;  %v5712_v9 = vld [vmem:[%s5689_s20 + $0x10] sm:$0xf]  ;;  %v5715_v10 = vld [vmem:[%s5689_s20 + $0x14] sm:$0x1] }
  0x8c   : > { %v323_v11 = vrot.slane %v321_v3, 4  ;;  %v326_v12 = vrot.slane %v324_v4, 5  ;;  %v332_v13 = vrot.slane %v330_v5, 5  ;;  %v336_v14 = vrot.slane %v334_v6, 4  ;;  %v5721_v23 = vld [vmem:[%s5689_s20 + $0xc] sm:$0xf] }
  0x8d   : > { %v342_v15 = vrot.slane %v340_v8, 5  ;;  %v1589_v16 = vshrl.u32 %v4034_v7, 16  ;;  %v1592_v17 = vshll.u32 %v4034_v7, 16  ;;  %v1598_v18 = vshll.u32 %v5712_v9, 16  ;;  %v5731_v29 = vld [vmem:[%s5689_s20 + $0x10] sm:$0xf] }
  0x8e   : > { %v327_v19 = vor.u32 %v326_v12, %v323_v11  ;;  %v337_v20 = vor.u32 %v336_v14, %v332_v13  ;;  %v1602_v21 = vshrl.u32 %v5712_v9, 16  ;;  %v1608_v22 = vshll.u32 %v5715_v10, 16  ;;  %v310_v36 = vld [vmem:[%s5689_s20 + $0x14] sm:$0x1]  ;;  %v4037_v44 = vld [vmem:[%s5689_s20 + $0x18] sm:$0xf] }
  0x8f   : > { %v1591_v25 = vrot.slane %v1589_v16, 4  ;;  %v1594_v26 = vrot.slane %v1592_v17, 5  ;;  %v1600_v27 = vrot.slane %v1598_v18, 5  ;;  %v345_v37 = vshrl.u32 %v5721_v23, 16  ;;  %v5113_v39 = vld [vmem:[#allocation5 + $0x40] sm:$0xff]   ;;  %s3912_s25 = sshll.u32 %s5685_s6, 6 }
  0x90   : > { %v328_v30 = vrot.slane %v327_v19, 4  ;;  %v338_v31 = vrot.slane %v337_v20, 4  ;;  %v1604_v32 = vrot.slane %v1602_v21, 4  ;;  %v1610_v33 = vrot.slane %v1608_v22, 5  ;;  %v5115_v45 = vld [vmem:[#allocation5 + $0x100] sm:$0xff]   ;;  %4498 = vmatprep.mubr.msk.bf16.mxu1 %vm593_vm2, %v5113_v39  ;;  %s6588_s27 = scalar_lea.vmem [#allocation8], %s3912_s25 }
  0x91   : > { %v1595_v34 = vor.u32 %v1594_v26, %v1591_v25  ;;  %v348_v38 = vshll.u32 %v5721_v23, 16  ;;  %v354_v43 = vshll.u32 %v5731_v29, 16  ;;  %v347_v48 = vrot.slane %v345_v37, 4  ;;  %v5746_v54 = vld [vmem:[%s5689_s20 + $0x1c] sm:$0xf]  ;;  %4626 = vmatprep.mubr.msk.bf16.mxu0 %vm593_vm2, %v5115_v45  ;;  %s3913_s29 = sshll.u32 %s5685_s6, 7 }
  0x92   : > { %v333_v40 = vsel %vm5725_vm3, %v328_v30, %v332_v13  ;;  %v343_v41 = vsel %vm5725_vm3, %v338_v31, %v342_v15  ;;  %v1605_v42 = vor.u32 %v1604_v32, %v1600_v27  ;;  %v358_v52 = vshrl.u32 %v5731_v29, 16  ;;  %v5754_v58 = vld [vmem:[%s5689_s20 + $0x20] sm:$0x1]  ;;  %v5759_v2 = vld [vmem:[%s5689_s20 + $0x18] sm:$0xf]  ;;  %s6641_s7 = scalar_lea.vmem [#allocation9], %s3913_s29 }
  0x93   : > { %v3922_v46 = vcombine.low %v333_v40, %v343_v41  ;;  %v1596_v47 = vrot.slane %v1595_v34, 4  ;;  %v350_v49 = vrot.slane %v348_v38, 5  ;;  %v356_v51 = vrot.slane %v354_v43, 5  ;;  %v5765_v13 = vld [vmem:[%s5689_s20 + $0x1c] sm:$0xf]  ;;  %s4268_s26 = sshll.u32 %s5425_s19, 5 }
  0x94   : > { %v1606_v50 = vrot.slane %v1605_v42, 4  ;;  %v364_v53 = vshll.u32 %v310_v36, 16  ;;  %v1613_v59 = vshrl.u32 %v4037_v44, 16  ;;  %v360_v61 = vrot.slane %v358_v52, 4  ;;  %v311_v17 = vld [vmem:[%s5689_s20 + $0x20] sm:$0x1]  ;;  %s6702_s9 = sadd.s32 %s5421_s18, %s4268_s26 }
  0x95   : > { %4914 = vmatprep.subr.msk.bf16.mxu1 %vm593_vm2, %v3922_v46  ;;  %v1601_v55 = vsel %vm5725_vm3, %v1596_v47, %v1600_v27  ;;  %v619_v56 = vsel %vm593_vm2, %v3922_v46, 0  ;;  %v351_v57 = vor.u32 %v350_v49, %v347_v48  ;;  %v1616_v63 = vshll.u32 %v4037_v44, 16  ;;  %v4040_v31 = vld [vmem:[%s5689_s20 + $0x24] sm:$0xf]  ;;  %v5780_v41 = vld [vmem:[%s5689_s20 + $0x28] sm:$0xf] }
  0x96   : > { %v1611_v60 = vsel %vm5725_vm3, %v1606_v50, %v1610_v33  ;;  %4483 = vmatpush3.bf16.xpose.msra.mxu1 %v619_v56  ;;  %v366_v62 = vrot.slane %v364_v53, 5  ;;  %v1615_v5 = vrot.slane %v1613_v59, 4  ;;  %v1622_v6 = vshll.u32 %v5746_v54, 16  ;;  %v5787_v49 = vld [vmem:[%s5689_s20 + $0x2c] sm:$0x1]  ;;  %s4270_s23 = sshll.u32 %s5421_s18, 4 }
  0x97   : > { %v4066_v3 = vcombine.low %v1601_v55, %v1611_v60  ;;  %v352_v4 = vrot.slane %v351_v57, 4  ;;  %v361_v7 = vor.u32 %v360_v61, %v356_v51  ;;  %v1618_v8 = vrot.slane %v1616_v63, 5  ;;  %v4083_v35 = vld [vmem:[%s5689_s20 + $0x18] sm:$0xe]  ;;  %s3756_s30 = sadd.s32 %s4270_s23, %s4268_s26  ;;  %s3759_s12 = sshll.u32 %s6641_s7, 4  ;;  %s6690_s12 = int_to_ptr.vmem [resolvable:$true] %s3759_s12 }
  0x98   : > { %v1626_v11 = vshrl.u32 %v5746_v54, 16  ;;  %v1632_v12 = vshll.u32 %v5754_v58, 16  ;;  %v1624_v16 = vrot.slane %v1622_v6, 5  ;;  %v369_v18 = vshrl.u32 %v5759_v2, 16  ;;  %s4272_s19 = sshll.u32 %s3756_s30, 7  ;;  %s3741_s28 = sshll.u32 %s6588_s27, 4  ;;  %s6733_s28 = int_to_ptr.vmem [resolvable:$true] %s3741_s28 }
  0x99   : > { %4946 = vmatprep.subr.msk.bf16.mxu0 %vm593_vm2, %v4066_v3  ;;  %v1886_v14 = vsel %vm593_vm2, %v4066_v3, 0  ;;  %v357_v15 = vsel %vm5725_vm3, %v352_v4, %v356_v51  ;;  %v362_v19 = vrot.slane %v361_v7, 4  ;;  %v1619_v20 = vor.u32 %v1618_v8, %v1615_v5  ;;  %v5790_v51 = vld [vmem:[%s5689_s20 + $0x24] sm:$0xf]  ;;  %v5798_v4 = vld [vmem:[%s5689_s20 + $0x28] sm:$0xf]  ;;  %s6695_s5 = scalar_lea.hbm %s6800_s4, %s4272_s19 }
  0x9a   : > { %4611 = vmatpush3.bf16.xpose.msra.mxu0 %v1886_v14  ;;  %v1628_v21 = vrot.slane %v1626_v11, 4  ;;  %v1634_v22 = vrot.slane %v1632_v12, 5  ;;  %v371_v25 = vrot.slane %v369_v18, 4  ;;  %v372_v26 = vshll.u32 %v5759_v2, 16  ;;  %v312_v12 = vld [vmem:[%s5689_s20 + $0x2c] sm:$0x1] }
  0x9b   : > { %v378_v27 = vshll.u32 %v5765_v13, 16  ;;  %v382_v30 = vshrl.u32 %v5765_v13, 16  ;;  %v367_v32 = vsel %vm5725_vm3, %v362_v19, %v366_v62  ;;  %v1620_v33 = vrot.slane %v1619_v20, 4  ;;  %v4043_v14 = vld [vmem:[%s5689_s20 + $0x30] sm:$0xf]  ;;  %s3727_s10 = scalar_lea.sflag [#allocation10], %s5685_s6 }
  0x9c   : > { %v1629_v34 = vor.u32 %v1628_v21, %v1624_v16  ;;  %v388_v36 = vshll.u32 %v311_v17, 16  ;;  %v3923_v37 = vcombine.low %v357_v15, %v367_v32  ;;  %v374_v38 = vrot.slane %v372_v26, 5  ;;  %s5303_s11 = scalar_lea.vmem %s6690_s12, 2048  ;;  %s5447_s2 = smov [#allocation9]  }
  0x9d   : > { %v380_v39 = vrot.slane %v378_v27, 5  ;;  %v384_v40 = vrot.slane %v382_v30, 4  ;;  %v1625_v42 = vsel %vm5725_vm3, %v1620_v33, %v1624_v16  ;;  %v1637_v45 = vshrl.u32 %v4040_v31, 16  ;;  %p5304_p4 = scmp.ne.s32.totalorder %s6690_s12, %s5303_s11  ;;  %s5307_s14 = sshll.u32 %s5447_s2, 4  ;;  %s5308_s14 = int_to_ptr.vmem [resolvable:$false] %s5307_s14 }
  0x9e   : > { %v1630_v43 = vrot.slane %v1629_v34, 4  ;;  %v390_v44 = vrot.slane %v388_v36, 5  ;;  %4915 = vmatprep.subr.msk.bf16.mxu1 %vm593_vm2, %v3923_v37  ;;  %v622_v46 = vsel %vm593_vm2, %v3923_v37, 0  ;;  %v375_v47 = vor.u32 %v374_v38, %v371_v25  ;;  %v5813_v25 = vld [vmem:[%s5689_s20 + $0x34] sm:$0xf]  ;;  %p5310_p11 = scmp.lt.s32.totalorder %s6690_s12, %s5308_s14 }
  0x9f   : > { %v385_v48 = vor.u32 %v384_v40, %v380_v39  ;;  %v1640_v50 = vshll.u32 %v4040_v31, 16  ;;  %4485 = vmatpush3.bf16.xpose.msra.mxu1 %v622_v46  ;;  %v1639_v53 = vrot.slane %v1637_v45, 4  ;;  %v1646_v55 = vshll.u32 %v5780_v41, 16  ;;  %v5818_v31 = vld [vmem:[%s5689_s20 + $0x38] sm:$0x1]  ;;  %p5305_p10 = pnand %p5304_p4, %p5623_p8 }
  0xa0   : > { %v1635_v52 = vsel %vm5725_vm3, %v1630_v43, %v1634_v22  ;;  %v1650_v56 = vshrl.u32 %v5780_v41, 16  ;;  %v376_v59 = vrot.slane %v375_v47, 4  ;;  %v1656_v3 = vshll.u32 %v5787_v49, 16  ;;  %v5823_v38 = vld [vmem:[%s5689_s20 + $0x30] sm:$0xf] }
  0xa1   : > { %v4067_v57 = vcombine.low %v1625_v42, %v1635_v52  ;;  %v386_v60 = vrot.slane %v385_v48, 4  ;;  %v1642_v61 = vrot.slane %v1640_v50, 5  ;;  %v1648_v62 = vrot.slane %v1646_v55, 5  ;;  %p5306_p6 = pneg %p5305_p10 }
  0xa2   : > { %v1652_v63 = vrot.slane %v1650_v56, 4  ;;  %v393_v5 = vshrl.u32 %v5790_v51, 16  ;;  %v381_v7 = vsel %vm5725_vm3, %v376_v59, %v380_v39  ;;  %v1658_v17 = vrot.slane %v1656_v3, 5 }
  0xa3   : > { %4947 = vmatprep.subr.msk.bf16.mxu0 %vm593_vm2, %v4067_v57  ;;  %v1889_v6 = vsel %vm593_vm2, %v4067_v57, 0  ;;  %v391_v8 = vsel %vm5725_vm3, %v386_v60, %v390_v44  ;;  %v1643_v11 = vor.u32 %v1642_v61, %v1639_v53  ;;  %v396_v20 = vshll.u32 %v5790_v51, 16  ;;  %v5831_v53 = vld [vmem:[%s5689_s20 + $0x34] sm:$0xf]  ;;  %v5837_v61 = vld [vmem:[%s5689_s20 + $0x38] sm:$0x1] }
  0xa4   : > { %4613 = vmatpush3.bf16.xpose.msra.mxu0 %v1889_v6  ;;  %v3924_v15 = vcombine.low %v381_v7, %v391_v8  ;;  %v1653_v16 = vor.u32 %v1652_v63, %v1648_v62  ;;  %v395_v18 = vrot.slane %v393_v5, 4  ;;  %v402_v21 = vshll.u32 %v5798_v4, 16  ;;  %v4046_v6 = vld [vmem:[%s5689_s20 + $0x3c] sm:$0xf] }
  0xa5   : > { %v1644_v19 = vrot.slane %v1643_v11, 4  ;;  %v406_v22 = vshrl.u32 %v5798_v4, 16  ;;  %v412_v30 = vshll.u32 %v312_v12, 16  ;;  %v1661_v32 = vshrl.u32 %v4043_v14, 16 }
  0xa6   : > { %4916 = vmatprep.subr.msk.bf16.mxu1 %vm593_vm2, %v3924_v15  ;;  %v1654_v26 = vrot.slane %v1653_v16, 4  ;;  %v625_v27 = vsel %vm593_vm2, %v3924_v15, 0  ;;  %v398_v34 = vrot.slane %v396_v20, 5  ;;  %v404_v36 = vrot.slane %v402_v21, 5 }
  0xa7   : > { %v1649_v33 = vsel %vm5725_vm3, %v1644_v19, %v1648_v62  ;;  %v408_v37 = vrot.slane %v406_v22, 4  ;;  %4487 = vmatpush3.bf16.xpose.msra.mxu1 %v625_v27  ;;  %v414_v40 = vrot.slane %v412_v30, 5  ;;  %v1663_v42 = vrot.slane %v1661_v32, 4  ;;  %v5851_v19 = vld [vmem:[%s5689_s20 + $0x44] sm:$0x1] }
  0xa8   : > { %v1659_v39 = vsel %vm5725_vm3, %v1654_v26, %v1658_v17  ;;  %v1664_v43 = vshll.u32 %v4043_v14, 16  ;;  %v399_v45 = vor.u32 %v398_v34, %v395_v18  ;;  %v1670_v47 = vshll.u32 %v5813_v25, 16  ;;  %v5847_v14 = vld [vmem:[%s5689_s20 + $0x40] sm:$0xf]  ;;  %v5859_v34 = vld [vmem:[%s5689_s20 + $0x3c] sm:$0xf] }
  0xa9   : > { %v4068_v44 = vcombine.low %v1649_v33, %v1659_v39  ;;  %v409_v46 = vor.u32 %v408_v37, %v404_v36  ;;  %v1674_v50 = vshrl.u32 %v5813_v25, 16  ;;  %v1680_v52 = vshll.u32 %v5818_v31, 16 }
  0xaa   : > { %v1666_v48 = vrot.slane %v1664_v43, 5  ;;  %v417_v55 = vshrl.u32 %v5823_v38, 16  ;;  %v400_v57 = vrot.slane %v399_v45, 4  ;;  %v1672_v60 = vrot.slane %v1670_v47, 5 }
  0xab   : > { %4948 = vmatprep.subr.msk.bf16.mxu0 %vm593_vm2, %v4068_v44  ;;  %v1892_v56 = vsel %vm593_vm2, %v4068_v44, 0  ;;  %v410_v59 = vrot.slane %v409_v46, 4  ;;  %v1676_v63 = vrot.slane %v1674_v50, 4  ;;  %v1682_v3 = vrot.slane %v1680_v52, 5 }
  0xac   : > { %4615 = vmatpush3.bf16.xpose.msra.mxu0 %v1892_v56  ;;  %v1667_v62 = vor.u32 %v1666_v48, %v1663_v42  ;;  %v419_v5 = vrot.slane %v417_v55, 4  ;;  %v405_v7 = vsel %vm5725_vm3, %v400_v57, %v404_v36  ;;  %v420_v11 = vshll.u32 %v5823_v38, 16  ;;  %v5867_v57 = vld [vmem:[%s5689_s20 + $0x40] sm:$0xf] }
  0xad   : > { %v415_v8 = vsel %vm5725_vm3, %v410_v59, %v414_v40  ;;  %v426_v12 = vshll.u32 %v5831_v53, 16  ;;  %v1677_v17 = vor.u32 %v1676_v63, %v1672_v60  ;;  %v430_v18 = vshrl.u32 %v5831_v53, 16 }
  0xae   : > { %v3925_v15 = vcombine.low %v405_v7, %v415_v8  ;;  %v1668_v16 = vrot.slane %v1667_v62, 4  ;;  %v422_v20 = vrot.slane %v420_v11, 5  ;;  %v436_v22 = vshll.u32 %v5837_v61, 16 }
  0xaf   : > { %v428_v21 = vrot.slane %v426_v12, 5  ;;  %v1685_v26 = vshrl.u32 %v4046_v6, 16  ;;  %v1678_v30 = vrot.slane %v1677_v17, 4  ;;  %v432_v33 = vrot.slane %v430_v18, 4 }
  0xb0   : > { %4917 = vmatprep.subr.msk.bf16.mxu1 %vm593_vm2, %v3925_v15  ;;  %v1673_v27 = vsel %vm5725_vm3, %v1668_v16, %v1672_v60  ;;  %v628_v32 = vsel %vm593_vm2, %v3925_v15, 0  ;;  %v423_v36 = vor.u32 %v422_v20, %v419_v5  ;;  %v438_v37 = vrot.slane %v436_v22, 5  ;;  %v5875_v5 = vld [vmem:[%s5689_s20 + $0x44] sm:$0x1]  ;;  %v5882_v15 = vld [vmem:[%s5689_s20 + $0x4c] sm:$0xf] }
  0xb1   : > { %4489 = vmatpush3.bf16.xpose.msra.mxu1 %v628_v32  ;;  %v1687_v39 = vrot.slane %v1685_v26, 4  ;;  %v1688_v40 = vshll.u32 %v4046_v6, 16  ;;  %v1683_v42 = vsel %vm5725_vm3, %v1678_v30, %v1682_v3  ;;  %v433_v43 = vor.u32 %v432_v33, %v428_v21  ;;  %v4049_v6 = vld [vmem:[%s5689_s20 + $0x48] sm:$0xf] }
  0xb2   : > { %v1694_v44 = vshll.u32 %v5847_v14, 16  ;;  %v1698_v45 = vshrl.u32 %v5847_v14, 16  ;;  %v4069_v46 = vcombine.low %v1673_v27, %v1683_v42  ;;  %v424_v47 = vrot.slane %v423_v36, 4  ;;  %v5890_v22 = vld [vmem:[%s5689_s20 + $0x48] sm:$0xf] }
  0xb3   : > { %v1690_v48 = vrot.slane %v1688_v40, 5  ;;  %v1704_v50 = vshll.u32 %v5851_v19, 16  ;;  %v434_v52 = vrot.slane %v433_v43, 4  ;;  %v441_v59 = vshrl.u32 %v5859_v34, 16 }
  0xb4   : > { %v1696_v55 = vrot.slane %v1694_v44, 5  ;;  %v1700_v56 = vrot.slane %v1698_v45, 4  ;;  %4949 = vmatprep.subr.msk.bf16.mxu0 %vm593_vm2, %v4069_v46  ;;  %v1895_v60 = vsel %vm593_vm2, %v4069_v46, 0  ;;  %v429_v62 = vsel %vm5725_vm3, %v424_v47, %v428_v21  ;;  %v5887_v21 = vld [vmem:[%s5689_s20 + $0x50] sm:$0x1] }
  0xb5   : > { %v1691_v63 = vor.u32 %v1690_v48, %v1687_v39  ;;  %v1706_v3 = vrot.slane %v1704_v50, 5  ;;  %4617 = vmatpush3.bf16.xpose.msra.mxu0 %v1895_v60  ;;  %v439_v7 = vsel %vm5725_vm3, %v434_v52, %v438_v37  ;;  %v443_v11 = vrot.slane %v441_v59, 4  ;;  %v5900_v45 = vld [vmem:[%s5689_s20 + $0x4c] sm:$0xf]  ;;  %v5904_v52 = vld [vmem:[%s5689_s20 + $0x50] sm:$0x1] }
  0xb6   : > { %v1701_v8 = vor.u32 %v1700_v56, %v1696_v55  ;;  %v444_v12 = vshll.u32 %v5859_v34, 16  ;;  %v3926_v16 = vcombine.low %v429_v62, %v439_v7  ;;  %v450_v18 = vshll.u32 %v5867_v57, 16  ;;  %v4052_v62 = vld [vmem:[%s5689_s20 + $0x54] sm:$0xf] }
  0xb7   : > { %v1692_v17 = vrot.slane %v1691_v63, 4  ;;  %v454_v20 = vshrl.u32 %v5867_v57, 16  ;;  %v460_v30 = vshll.u32 %v5875_v5, 16  ;;  %v1709_v32 = vshrl.u32 %v4049_v6, 16 }
  0xb8   : > { %v1702_v26 = vrot.slane %v1701_v8, 4  ;;  %v446_v27 = vrot.slane %v444_v12, 5  ;;  %4918 = vmatprep.subr.msk.bf16.mxu1 %vm593_vm2, %v3926_v16  ;;  %v631_v36 = vsel %vm593_vm2, %v3926_v16, 0  ;;  %v452_v37 = vrot.slane %v450_v18, 5 }
  0xb9   : > { %v1697_v33 = vsel %vm5725_vm3, %v1692_v17, %v1696_v55  ;;  %v456_v39 = vrot.slane %v454_v20, 4  ;;  %4491 = vmatpush3.bf16.xpose.msra.mxu1 %v631_v36  ;;  %v462_v43 = vrot.slane %v460_v30, 5  ;;  %v1711_v44 = vrot.slane %v1709_v32, 4 }
  0xba   : > { %v1707_v40 = vsel %vm5725_vm3, %v1702_v26, %v1706_v3  ;;  %v447_v42 = vor.u32 %v446_v27, %v443_v11  ;;  %v1712_v48 = vshll.u32 %v4049_v6, 16  ;;  %v1718_v50 = vshll.u32 %v5882_v15, 16  ;;  %v5919_v27 = vld [vmem:[%s5689_s20 + $0x58] sm:$0xf] }
  0xbb   : > { %v4070_v46 = vcombine.low %v1697_v33, %v1707_v40  ;;  %v457_v47 = vor.u32 %v456_v39, %v452_v37  ;;  %v1722_v56 = vshrl.u32 %v5882_v15, 16  ;;  %v1728_v59 = vshll.u32 %v5887_v21, 16 }
  0xbc   : > { %v448_v55 = vrot.slane %v447_v42, 4  ;;  %v465_v60 = vshrl.u32 %v5890_v22, 16  ;;  %v1714_v7 = vrot.slane %v1712_v48, 5  ;;  %v1720_v6 = vrot.slane %v1718_v50, 5 }
  0xbd   : > { %4950 = vmatprep.subr.msk.bf16.mxu0 %vm593_vm2, %v4070_v46  ;;  %v1898_v63 = vsel %vm593_vm2, %v4070_v46, 0  ;;  %v458_v3 = vrot.slane %v457_v47, 4  ;;  %v1724_v11 = vrot.slane %v1722_v56, 4  ;;  %v1730_v12 = vrot.slane %v1728_v59, 5 }
  0xbe   : > { %4619 = vmatpush3.bf16.xpose.msra.mxu0 %v1898_v63  ;;  %v453_v8 = vsel %vm5725_vm3, %v448_v55, %v452_v37  ;;  %v467_v16 = vrot.slane %v465_v60, 4  ;;  %v1715_v18 = vor.u32 %v1714_v7, %v1711_v44  ;;  %v468_v20 = vshll.u32 %v5890_v22, 16  ;;  %v5924_v37 = vld [vmem:[%s5689_s20 + $0x5c] sm:$0x1] }
  0xbf   : > { %v463_v17 = vsel %vm5725_vm3, %v458_v3, %v462_v43  ;;  %v474_v26 = vshll.u32 %v5900_v45, 16  ;;  %v1725_v32 = vor.u32 %v1724_v11, %v1720_v6  ;;  %v478_v33 = vshrl.u32 %v5900_v45, 16  ;;  %v5927_v43 = vld [vmem:[%s5689_s20 + $0x54] sm:$0xf]  ;;  %v5938_v11 = vld [vmem:[%s5689_s20 + $0x58] sm:$0xf] }
  0xc0   : > { %v3927_v30 = vcombine.low %v453_v8, %v463_v17  ;;  %v484_v36 = vshll.u32 %v5904_v52, 16  ;;  %v1716_v39 = vrot.slane %v1715_v18, 4  ;;  %v470_v40 = vrot.slane %v468_v20, 5  ;;  %v5942_v20 = vld [vmem:[%s5689_s20 + $0x5c] sm:$0x1] }
  0xc1   : > { %v476_v42 = vrot.slane %v474_v26, 5  ;;  %v1733_v46 = vshrl.u32 %v4052_v62, 16  ;;  %v1726_v44 = vrot.slane %v1725_v32, 4  ;;  %v480_v48 = vrot.slane %v478_v33, 4  ;;  %v4055_v32 = vld [vmem:[%s5689_s20 + $0x60] sm:$0xf] }
  0xc2   : > { %4919 = vmatprep.subr.msk.bf16.mxu1 %vm593_vm2, %v3927_v30  ;;  %v634_v47 = vsel %vm593_vm2, %v3927_v30, 0  ;;  %v486_v50 = vrot.slane %v484_v36, 5  ;;  %v1721_v55 = vsel %vm5725_vm3, %v1716_v39, %v1720_v6  ;;  %v471_v56 = vor.u32 %v470_v40, %v467_v16 }
  0xc3   : > { %4493 = vmatpush3.bf16.xpose.msra.mxu1 %v634_v47  ;;  %v1735_v59 = vrot.slane %v1733_v46, 4  ;;  %v1736_v60 = vshll.u32 %v4052_v62, 16  ;;  %vm988_vm4 = vcmask 1042432   ;;  %vm989_vm5 = vcmask 1046532  }
  0xc4   : > { %v1731_v63 = vsel %vm5725_vm3, %v1726_v44, %v1730_v12  ;;  %v481_v3 = vor.u32 %v480_v48, %v476_v42  ;;  %v1742_v7 = vshll.u32 %v5919_v27, 16  ;;  %v1746_v8 = vshrl.u32 %v5919_v27, 16  ;;  %vm5975_vm6 = vmor %vm988_vm4, %vm989_vm5 }
  0xc5   : > { %v4071_v17 = vcombine.low %v1721_v55, %v1731_v63  ;;  %v472_v6 = vrot.slane %v471_v56, 4  ;;  %v1738_v18 = vrot.slane %v1736_v60, 5  ;;  %v1752_v16 = vshll.u32 %v5924_v37, 16  ;;  %v5954_v55 = vld [vmem:[%s5689_s20 + $0x64] sm:$0xf] }
  0xc6   : > { %v482_v62 = vrot.slane %v481_v3, 4  ;;  %v1744_v26 = vrot.slane %v1742_v7, 5  ;;  %v1748_v30 = vrot.slane %v1746_v8, 4  ;;  %v489_v12 = vshrl.u32 %v5927_v43, 16 }
  0xc7   : > { %4951 = vmatprep.subr.msk.bf16.mxu0 %vm593_vm2, %v4071_v17  ;;  %v1901_v33 = vsel %vm593_vm2, %v4071_v17, 0  ;;  %v477_v36 = vsel %vm5725_vm3, %v472_v6, %v476_v42  ;;  %v1739_v39 = vor.u32 %v1738_v18, %v1735_v59  ;;  %v1754_v40 = vrot.slane %v1752_v16, 5  ;;  %v5959_v42 = vld [vmem:[%s5689_s20 + $0x68] sm:$0x1] }
  0xc8   : > { %4621 = vmatpush3.bf16.xpose.msra.mxu0 %v1901_v33  ;;  %v487_v46 = vsel %vm5725_vm3, %v482_v62, %v486_v50  ;;  %v1749_v44 = vor.u32 %v1748_v30, %v1744_v26  ;;  %v491_v47 = vrot.slane %v489_v12, 4  ;;  %v492_v48 = vshll.u32 %v5927_v43, 16  ;;  %v4082_v62 = vld [vmem:[%s5689_s20 + $0xc] sm:$0xe] }
  0xc9   : > { %v3928_v56 = vcombine.low %v477_v36, %v487_v46  ;;  %v1740_v60 = vrot.slane %v1739_v39, 4  ;;  %v498_v63 = vshll.u32 %v5938_v11, 16  ;;  %v502_v3 = vshrl.u32 %v5938_v11, 16 }
  0xca   : > { %v1750_v59 = vrot.slane %v1749_v44, 4  ;;  %v494_v7 = vrot.slane %v492_v48, 5  ;;  %v508_v8 = vshll.u32 %v5942_v20, 16  ;;  %v1757_v50 = vshrl.u32 %v4055_v32, 16 }
  0xcb   : > { %4920 = vmatprep.subr.msk.bf16.mxu1 %vm593_vm2, %v3928_v56  ;;  %v1745_v17 = vsel %vm5725_vm3, %v1740_v60, %v1744_v26  ;;  %v637_v6 = vsel %vm593_vm2, %v3928_v56, 0  ;;  %v500_v18 = vrot.slane %v498_v63, 5  ;;  %v504_v16 = vrot.slane %v502_v3, 4  ;;  %v5203_v60 = vld [vmem:[#allocation5 + $0x208] sm:$0xff]  }
  0xcc   : > { %v1755_v30 = vsel %vm5725_vm3, %v1750_v59, %v1754_v40  ;;  %4495 = vmatpush3.bf16.xpose.msra.mxu1 %v637_v6  ;;  %v495_v12 = vor.u32 %v494_v7, %v491_v47  ;;  %v510_v33 = vrot.slane %v508_v8, 5  ;;  %v1759_v36 = vrot.slane %v1757_v50, 4 }
  0xcd   : > { %v4072_v39 = vcombine.low %v1745_v17, %v1755_v30  ;;  %v505_v46 = vor.u32 %v504_v16, %v500_v18  ;;  %v1760_v44 = vshll.u32 %v4055_v32, 16  ;;  %v1766_v48 = vshll.u32 %v5954_v55, 16 }
  0xce   : > { %v496_v28 = vrot.slane %v495_v12, 4  ;;  %v1770_v26 = vshrl.u32 %v5954_v55, 16  ;;  %v1776_v56 = vshll.u32 %v5959_v42, 16  ;;  %v4090_v40 = vrot.slane %v4082_v62, 9 }
  0xcf   : > { %4952 = vmatprep.subr.msk.bf16.mxu0 %vm593_vm2, %v4072_v39  ;;  %v1904_v47 = vsel %vm593_vm2, %v4072_v39, 0  ;;  %v506_v32 = vrot.slane %v505_v46, 4  ;;  %v1762_v63 = vrot.slane %v1760_v44, 5  ;;  %v1768_v3 = vrot.slane %v1766_v48, 5 }
  0xd0   : > { %4623 = vmatpush3.bf16.xpose.msra.mxu0 %v1904_v47  ;;  %v501_v59 = vsel %vm5725_vm3, %v496_v28, %v500_v18  ;;  %v1772_v7 = vrot.slane %v1770_v26, 4  ;;  %v3946_v8 = vcombine.low %v5700_v0, %v5703_v1  ;;  %v6838_v6 = vrot.slane %v5712_v9, 5  ;;  %v4084_v18 = vld [vmem:[%s5689_s20 + $0x24] sm:$0xe]  ;;  %v4085_v47 = vld [vmem:[%s5689_s20 + $0x30] sm:$0xe] }
  0xd1   : > { %v511_v50 = vsel %vm5725_vm3, %v506_v32, %v510_v33  ;;  %v1763_v17 = vor.u32 %v1762_v63, %v1759_v36  ;;  %v1778_v46 = vrot.slane %v1776_v56, 5  ;;  %v4091_v28 = vrot.slane %v4083_v35, 9  ;;  %v5116_v63 = vld [vmem:[#allocation5 + $0x48] sm:$0xff]  }
  0xd2   : > { %v2057_v16 = vsel %vm5975_vm6, %v4090_v40, %v6838_v6  ;;  %v6839_v62 = vmov %v6838_v6  ;;  %v3929_v12 = vcombine.low %v501_v59, %v511_v50  ;;  %v1773_v39 = vor.u32 %v1772_v7, %v1768_v3  ;;  %v4086_v7 = vld [vmem:[%s5689_s20 + $0x3c] sm:$0xe] }
  0xd3   : > { %v2058_v30 = vrot.slane %v6839_v62, 4  ;;  %v1764_v44 = vrot.slane %v1763_v17, 4  ;;  %v6840_v0 = vrot.slane %v5715_v10, 5  ;;  %v2063_v33 = vrot.slane %v5746_v54, 5 }
  0xd4   : > { %v2066_v36 = vrot.slane %v5754_v58, 5  ;;  %4921 = vmatprep.subr.msk.bf16.mxu1 %vm593_vm2, %v3929_v12  ;;  %v1774_v9 = vrot.slane %v1773_v39, 4  ;;  %v640_v48 = vsel %vm593_vm2, %v3929_v12, 0  ;;  %v4092_v58 = vrot.slane %v4084_v18, 9 }
  0xd5   : > { %v2060_v1 = vsel %vm5975_vm6, %v2058_v30, %v6840_v0  ;;  %v1769_v35 = vsel %vm5725_vm3, %v1764_v44, %v1768_v3  ;;  %4497 = vmatpush3.bf16.xpose.msra.mxu1 %v640_v48  ;;  %v2064_v10 = vsel %vm5975_vm6, %v4091_v28, %v2063_v33  ;;  %v2065_v56 = vrot.slane %v2063_v33, 4  ;;  %v5125_v48 = vld [vmem:[#allocation5 + $0x58] sm:$0xff]  }
  0xd6   : > { %v4106_v26 = vcombine.low %v2057_v16, %v2060_v1  ;;  %v1779_v54 = vsel %vm5725_vm3, %v1774_v9, %v1778_v46  ;;  %4922 = vmatprep.subr.msk.bf16.mxu1 %vm593_vm2, %v3946_v8  ;;  %v2070_v40 = vrot.slane %v5780_v41, 5  ;;  %v2073_v3 = vrot.slane %v5787_v49, 5  ;;  %v5122_v16 = vld [vmem:[#allocation5 + $0x50] sm:$0xff]  }
  0xd7   : > { %v4073_v32 = vcombine.low %v1769_v35, %v1779_v54  ;;  %v2067_v59 = vsel %vm5975_vm6, %v2065_v56, %v2066_v36  ;;  %v4093_v41 = vrot.slane %v4085_v47, 9  ;;  %v2077_v30 = vrot.slane %v5813_v25, 5 }
  0xd8   : > { %v4107_v50 = vcombine.low %v2064_v10, %v2067_v59  ;;  %v2071_v17 = vsel %vm5975_vm6, %v4092_v58, %v2070_v40  ;;  %v2072_v6 = vrot.slane %v2070_v40, 4  ;;  %v2080_v12 = vrot.slane %v5818_v31, 5  ;;  %v5127_v10 = vld [vmem:[#allocation5 + $0x60] sm:$0xff]   ;;  %v5134_v59 = vld [vmem:[#allocation5 + $0x130] sm:$0xff]  }
  0xd9   : > { %4953 = vmatprep.subr.msk.bf16.mxu0 %vm593_vm2, %v4073_v32  ;;  %v1907_v62 = vsel %vm593_vm2, %v4073_v32, 0  ;;  %v844_v39 = vsel %vm593_vm2, %v3946_v8, 0  ;;  %v3947_v49 = vcombine.low %v5721_v23, %v5731_v29  ;;  %v6028_v28 = vcombine.low %v5823_v38, %v5831_v53  ;;  %v5117_v38 = vld [vmem:[#allocation5 + $0x108] sm:$0xff]   ;;  %v5129_v58 = vld [vmem:[#allocation5 + $0x120] sm:$0xff]  }
  0xda   : > { %4625 = vmatpush3.bf16.xpose.msra.mxu0 %v1907_v62  ;;  %v2074_v46 = vsel %vm5975_vm6, %v2072_v6, %v2073_v3  ;;  %v2078_v25 = vsel %vm5975_vm6, %v4093_v41, %v2077_v30  ;;  %v2079_v31 = vrot.slane %v2077_v30, 4  ;;  %v4094_v44 = vrot.slane %v4086_v7, 9  ;;  %v968_v32 = vld [vmem:[%s5689_s20 + $0x30] sm:$0xe]  ;;  %v969_v3 = vld [vmem:[%s5689_s20 + $0x3c] sm:$0xe] }
  0xdb   : > { %4954 = vmatprep.subr.msk.bf16.mxu0 %vm593_vm2, %v4106_v26  ;;  %v4108_v18 = vcombine.low %v2071_v17, %v2074_v46  ;;  %v2084_v8 = vrot.slane %v5847_v14, 5  ;;  %v2087_v23 = vrot.slane %v5851_v19, 5  ;;  %v6038_v29 = vcombine.low %v5859_v34, %v5867_v57  ;;  %v5124_v19 = vld [vmem:[#allocation5 + $0x110] sm:$0xff]  }
  0xdc   : > { %4499 = vmatmul.mubr.msk.bf16.vlgmr.msra.gmra.mrb[0].mxu1 %vm593_vm2, %v5116_v63  ;;  %v2081_v0 = vsel %vm5975_vm6, %v2079_v31, %v2080_v12  ;;  %v2216_v36 = vsel %vm593_vm2, %v4106_v26, 0  ;;  %v6051_v34 = vcombine.low %v5890_v22, %v5900_v45  ;;  %v847_v56 = vsel %vm593_vm2, %v3947_v49, 0  ;;  %v5126_v26 = vld [vmem:[#allocation5 + $0x118] sm:$0xff]   ;;  %v5131_v63 = vld [vmem:[#allocation5 + $0x128] sm:$0xff]  }
  0xdd   : > { %4515 = vmatpush3.bf16.xpose.msra.mxu1 %v844_v39  ;;  %4502 = vmatprep.mubr.msk.bf16.mxu1 %vm593_vm2, %v5122_v16  ;;  %v6044_v1 = vcombine.low %v2078_v25, %v2081_v0  ;;  %v2085_v14 = vsel %vm5975_vm6, %v4094_v44, %v2084_v8  ;;  %v2086_v33 = vrot.slane %v2084_v8, 4  ;;  %v3948_v54 = vcombine.low %v5759_v2, %v5765_v13  ;;  %v5130_v13 = vld [vmem:[#allocation5 + $0x68] sm:$0xff]   ;;  %v970_v17 = vld [vmem:[%s5689_s20 + $0x48] sm:$0xe]  ;;  %v5137_v16 = vld [vmem:[#allocation5] sm:$0xff]  }
  0xde   : > { %4923 = vmatprep.subr.msk.bf16.mxu1 %vm593_vm2, %v3947_v49  ;;  %v6064_v22 = vcombine.low %v5927_v43, %v5938_v11  ;;  %v2219_v2 = vsel %vm593_vm2, %v4107_v50, 0  ;;  %v5132_v43 = vld [vmem:[#allocation5 + $0x70] sm:$0xff]   ;;  %v3949_v47 = vcombine.low %v5790_v51, %v5798_v4  ;;  %v3966_v7 = vrot.slane %v968_v32, 9  ;;  %v5135_v51 = vld [vmem:[#allocation5 + $0x78] sm:$0xff]  }
  0xdf   : > { %v2088_v9 = vsel %vm5975_vm6, %v2086_v33, %v2087_v23  ;;  %v850_v40 = vsel %vm593_vm2, %v3948_v54, 0  ;;  %v1024_v4 = vrot.slane %v5837_v61, 5  ;;  %v2222_v6 = vsel %vm593_vm2, %v4108_v18, 0  ;;  %v971_v49 = vld [vmem:[%s5689_s20 + $0x54] sm:$0xe] }
  0xe0   : > { %v6056_v35 = vcombine.low %v2085_v14, %v2088_v9  ;;  %v3967_v30 = vrot.slane %v969_v3, 9  ;;  %v1028_v12 = vrot.slane %v5867_v57, 5  ;;  %v1031_v39 = vrot.slane %v5875_v5, 5  ;;  %v5136_v23 = vld [vmem:[#allocation5 + $0x138] sm:$0xff]  }
  0xe1   : > { %4627 = vmatmul.mubr.msk.bf16.vlgmr.msra.gmra.mrb[0].mxu0 %vm593_vm2, %v5117_v38  ;;  %v3968_v46 = vrot.slane %v970_v17, 9  ;;  %v1035_v5 = vrot.slane %v5900_v45, 5  ;;  %v1038_v31 = vrot.slane %v5904_v52, 5  ;;  %v3969_v44 = vrot.slane %v971_v49, 9  ;;  %v4087_v45 = vld [vmem:[%s5689_s20 + $0x48] sm:$0xe] }
  0xe2   : > { %4643 = vmatpush3.bf16.xpose.msra.mxu0 %v2216_v36  ;;  %4630 = vmatprep.mubr.msk.bf16.mxu0 %vm593_vm2, %v5124_v19  ;;  %v1029_v57 = vsel %vm5975_vm6, %v3967_v30, %v1028_v12  ;;  %v1030_v25 = vrot.slane %v1028_v12, 4  ;;  %v2091_v8 = vrot.slane %v5882_v15, 5  ;;  %v1042_v52 = vrot.slane %v5938_v11, 5  ;;  %v5138_v19 = vld [vmem:[#allocation5 + $0x140] sm:$0xff]  }
  0xe3   : > { %4955 = vmatprep.subr.msk.bf16.mxu0 %vm593_vm2, %v4107_v50  ;;  %v1021_v50 = vrot.slane %v5831_v53, 5  ;;  %v853_v53 = vsel %vm593_vm2, %v3949_v47, 0  ;;  %v1036_v0 = vsel %vm5975_vm6, %v3968_v46, %v1035_v5  ;;  %v1037_v14 = vrot.slane %v1035_v5, 4 }
  0xe4   : > { %4503 = vmatmul.mubr.msk.bf16.gmra.mrb[4].mxu1 %vm593_vm2, %v5125_v48  ;;  %v1032_v38 = vsel %vm5975_vm6, %v1030_v25, %v1031_v39  ;;  %v1045_v15 = vrot.slane %v5942_v20, 5  ;;  %v2225_v9 = vsel %vm593_vm2, %v6044_v1, 0  ;;  %v4095_v11 = vrot.slane %v4087_v45, 9  ;;  %v965_v25 = vld [vmem:[%s5689_s20 + $0xc] sm:$0xe] }
  0xe5   : > { %4517 = vmatpush3.bf16.xpose.msra.mxu1 %v847_v56  ;;  %4506 = vmatprep.mubr.msk.bf16.mxu1 %vm593_vm2, %v5127_v10  ;;  %v1022_v62 = vsel %vm5975_vm6, %v3966_v7, %v1021_v50  ;;  %v1023_v41 = vrot.slane %v1021_v50, 4  ;;  %v6112_v33 = vcombine.low %v1029_v57, %v1032_v38  ;;  %v1039_v36 = vsel %vm5975_vm6, %v1037_v14, %v1038_v31 }
  0xe6   : > { %4924 = vmatprep.subr.msk.bf16.mxu1 %vm593_vm2, %v3948_v54  ;;  %v6122_v48 = vcombine.low %v1036_v0, %v1039_v36  ;;  %v1043_v10 = vsel %vm5975_vm6, %v3969_v44, %v1042_v52  ;;  %v1044_v56 = vrot.slane %v1042_v52, 4  ;;  %v2093_v54 = vrot.slane %v2091_v8, 4  ;;  %v5139_v0 = vld [vmem:[%s5689_s20 + $0x18] sm:$0xff]  }
  0xe7   : > { %v1025_v61 = vsel %vm5975_vm6, %v1023_v41, %v1024_v4  ;;  %v2094_v20 = vrot.slane %v5887_v21, 5  ;;  %v2105_v7 = vrot.slane %v5954_v55, 5  ;;  %v5210_v55 = vld [vmem:[%s5689_s20 + $0x8] sm:$0x1]  ;;  %v865_v5 = vsel %vm593_vm2, %v6064_v22, 0  ;;  %v5140_v36 = vld [vmem:[#allocation5 + $0x8] sm:$0xff]  }
  0xe8   : > { %v996_v41 = vrot.slane %v5210_v55, 5  ;;  %v3963_v44 = vrot.slane %v965_v25, 9  ;;  %v966_v52 = vld [vmem:[%s5689_s20 + $0x18] sm:$0xe]  ;;  %v5156_v55 = vld [vmem:[#allocation5 + $0x30] sm:$0xff]   ;;  %vm3495_vm7 = vcmask 7168  }
  0xe9   : > { %4631 = vmatmul.mubr.msk.bf16.gmra.mrb[4].mxu0 %vm593_vm2, %v5126_v26  ;;  %v1046_v26 = vsel %vm5975_vm6, %v1044_v56, %v1045_v15  ;;  %v2095_v21 = vsel %vm5975_vm6, %v2093_v54, %v2094_v20  ;;  %v5213_v15 = vld [vmem:[%s5689_s20 + $0x1c] sm:$0xf]  ;;  %v5214_v20 = vld [vmem:[%s5689_s20 + $0x20] sm:$0x1]  ;;  %vm3512_vm8 = vcmask 15360  }
  0xea   : > { %4645 = vmatpush3.bf16.xpose.msra.mxu0 %v2219_v2  ;;  %4634 = vmatprep.mubr.msk.bf16.mxu0 %vm593_vm2, %v5129_v58  ;;  %v6133_v58 = vcombine.low %v1043_v10, %v1046_v26  ;;  %v2092_v2 = vsel %vm5975_vm6, %v4095_v11, %v2091_v8  ;;  %v3964_v11 = vrot.slane %v966_v52, 9  ;;  %v1010_v26 = vrot.slane %v5214_v20, 5  ;;  %v5163_v25 = vld [vmem:[#allocation5 + $0x180] sm:$0xff]  }
  0xeb   : > { %4956 = vmatprep.subr.msk.bf16.mxu0 %vm593_vm2, %v4108_v18  ;;  %v6096_v18 = vcombine.low %v1022_v62, %v1025_v61  ;;  %v862_v62 = vsel %vm593_vm2, %v6051_v34, 0 }
  0xec   : > { %4507 = vmatmul.mubr.msk.bf16.gmra.mrb[8].mxu1 %vm593_vm2, %v5130_v13  ;;  %v2098_v13 = vrot.slane %v5919_v27, 5 }
  0xed   : > { %4519 = vmatpush3.bf16.xpose.msra.mxu1 %v850_v40  ;;  %4510 = vmatprep.mubr.msk.bf16.mxu1 %vm593_vm2, %v5132_v43  ;;  %v4088_v40 = vld [vmem:[%s5689_s20 + $0x54] sm:$0xe]  ;;  %v4111_v43 = vcombine.low %v2092_v2, %v2095_v21  ;;  %v5147_v2 = vld [vmem:[#allocation5 + $0x150] sm:$0xff]   ;;  %v2491_v21 = vsel %vm593_vm2, %v5139_v0, 0 }
  0xee   : > { %4925 = vmatprep.subr.msk.bf16.mxu1 %vm593_vm2, %v3949_v47  ;;  %v4096_v47 = vrot.slane %v4088_v40, 9  ;;  %v2100_v32 = vrot.slane %v2098_v13, 4 }
  0xef   : > { %v2231_v50 = vsel %vm593_vm2, %v4111_v43, 0 }
  0xf0   : > { %v2099_v27 = vsel %vm5975_vm6, %v4096_v47, %v2098_v13  ;;  %v5142_v13 = vld [vmem:[%s5689_s20 + $0x24] sm:$0xff]  }
  0xf1   : > { %4635 = vmatmul.mubr.msk.bf16.gmra.mrb[8].mxu0 %vm593_vm2, %v5131_v63  ;;  %v2101_v63 = vrot.slane %v5924_v37, 5  ;;  %v964_v37 = vld [vmem:[%s5689_s20] sm:$0xe]  ;;  %v5215_v47 = vld [vmem:[%s5689_s20 + $0x28] sm:$0xf] }
  0xf2   : > { %4647 = vmatpush3.bf16.xpose.msra.mxu0 %v2222_v6  ;;  %4638 = vmatprep.mubr.msk.bf16.mxu0 %vm593_vm2, %v5134_v59  ;;  %v859_v59 = vsel %vm593_vm2, %v6038_v29, 0  ;;  %v2107_v6 = vrot.slane %v2105_v7, 4  ;;  %v3962_v30 = vrot.slane %v964_v37, 9  ;;  %v5216_v37 = vld [vmem:[%s5689_s20 + $0x2c] sm:$0x1] }
  0xf3   : > { %4957 = vmatprep.subr.msk.bf16.mxu0 %vm593_vm2, %v6044_v1  ;;  %v856_v1 = vsel %vm593_vm2, %v6028_v28, 0  ;;  %v2102_v3 = vsel %vm5975_vm6, %v2100_v32, %v2101_v63  ;;  %v1014_v32 = vrot.slane %v5215_v47, 5  ;;  %v5149_v63 = vld [vmem:[#allocation5 + $0x18] sm:$0xff]  }
  0xf4   : > { %4511 = vmatmul.mubr.msk.bf16.gmra.mrb[12].mxu1 %vm593_vm2, %v5135_v51  ;;  %v5209_v51 = vld [vmem:[%s5689_s20 + $0x4] sm:$0xf] }
  0xf5   : > { %4521 = vmatpush3.bf16.xpose.msra.mxu1 %v853_v53  ;;  %4530 = vmatprep.mubr.msk.bf16.mxu1 %vm593_vm2, %v5137_v16  ;;  %v993_v4 = vrot.slane %v5209_v51, 5  ;;  %v2108_v16 = vrot.slane %v5959_v42, 5  ;;  %v5211_v42 = vld [vmem:[%s5689_s20 + $0x10] sm:$0xf]  ;;  %v2494_v51 = vsel %vm593_vm2, %v5142_v13, 0 }
  0xf6   : > { %4926 = vmatprep.subr.msk.bf16.mxu1 %vm593_vm2, %v6028_v28  ;;  %v2228_v28 = vsel %vm593_vm2, %v6056_v35, 0 }
  0xf7   : > { %v995_v12 = vrot.slane %v993_v4, 4  ;;  %v2109_v49 = vsel %vm5975_vm6, %v2107_v6, %v2108_v16  ;;  %v994_v46 = vsel %vm5975_vm6, %v3962_v30, %v993_v4  ;;  %v5143_v4 = vld [vmem:[%s5689_s20 + $0x30] sm:$0xff]  }
  0xf9   : > { %4639 = vmatmul.mubr.msk.bf16.gmra.mrb[12].mxu0 %vm593_vm2, %v5136_v23  ;;  %v997_v57 = vsel %vm5975_vm6, %v995_v12, %v996_v41  ;;  %v5212_v23 = vld [vmem:[%s5689_s20 + $0x14] sm:$0x1]  ;;  %v5144_v12 = vld [vmem:[%s5689_s20 + $0x3c] sm:$0xff]  }
  0xfa   : > { %4649 = vmatpush3.bf16.xpose.msra.mxu0 %v2225_v9  ;;  %4658 = vmatprep.mubr.msk.bf16.mxu0 %vm593_vm2, %v5138_v19  ;;  %v3978_v31 = vcombine.low %v994_v46, %v997_v57  ;;  %v1003_v38 = vrot.slane %v5212_v23, 5  ;;  %v1007_v19 = vrot.slane %v5213_v15, 5  ;;  %v5146_v9 = vld [vmem:[#allocation5 + $0x10] sm:$0xff]   ;;  %v2500_v46 = vsel %vm593_vm2, %v5144_v12, 0  ;;  %v5160_v57 = vld [vmem:[#allocation5 + $0x178] sm:$0xff]  }
  0xfb   : > { %4958 = vmatprep.subr.msk.bf16.mxu0 %vm593_vm2, %v6056_v35  ;;  %v4089_v35 = vld [vmem:[%s5689_s20 + $0x60] sm:$0xe]  ;;  %v5148_v23 = vld [vmem:[%s5689_s20 + $0x54] sm:$0xff]  }
  0xfc   : > { %v4097_v17 = vrot.slane %v4089_v35, 9  ;;  %v1153_v10 = vsel %vm593_vm2, %v3978_v31, 0  ;;  %v1009_v54 = vrot.slane %v1007_v19, 4  ;;  %v1008_v40 = vsel %vm5975_vm6, %v3964_v11, %v1007_v19  ;;  %v6267_v11 = vld [vmem:[%s5689_s20 + $0x20] sm:$0x1] }
  0xfd   : > { %4523 = vmatpush3.bf16.xpose.msra.mxu1 %v856_v1  ;;  %v5141_v1 = vld [vmem:[#allocation5 + $0x148] sm:$0xff]   ;;  %v2506_v19 = vsel %vm593_vm2, %v5148_v23, 0 }
  0xfe   : > { %4927 = vmatprep.subr.msk.bf16.mxu1 %vm593_vm2, %v6038_v29  ;;  %v4112_v29 = vcombine.low %v2099_v27, %v2102_v3  ;;  %v2106_v39 = vsel %vm5975_vm6, %v4097_v17, %v2105_v7  ;;  %v1016_v7 = vrot.slane %v1014_v32, 4  ;;  %v5152_v17 = vld [vmem:[#allocation5 + $0x160] sm:$0xff]  }
  0xff   : > { %v4113_v61 = vcombine.low %v2106_v39, %v2109_v49  ;;  %v5155_v39 = vld [vmem:[#allocation5 + $0x168] sm:$0xff]   ;;  %v5157_v49 = vld [vmem:[#allocation5 + $0x170] sm:$0xff]  }
 0x100   : > { %v2234_v53 = vsel %vm593_vm2, %v4112_v29, 0 }
 0x101   : > { %v2237_v14 = vsel %vm593_vm2, %v4113_v61, 0 }
 0x102   : > { %4651 = vmatpush3.bf16.xpose.msra.mxu0 %v2228_v28  ;;  %v1011_v28 = vsel %vm5975_vm6, %v1009_v54, %v1010_v26  ;;  %v1171_v54 = vsel %vm593_vm2, %v6122_v48, 0 }
 0x103   : > { %4959 = vmatprep.subr.msk.bf16.mxu0 %vm593_vm2, %v4111_v43  ;;  %v967_v43 = vld [vmem:[%s5689_s20 + $0x24] sm:$0xe]  ;;  %v3980_v3 = vcombine.low %v1008_v40, %v1011_v28  ;;  %v2671_v40 = vshll.u32 %v6267_v11, 16 }
 0x104   : > { %v3965_v35 = vrot.slane %v967_v43, 9 }
 0x105   : > { %4525 = vmatpush3.bf16.xpose.msra.mxu1 %v859_v59  ;;  %v5151_v59 = vld [vmem:[#allocation5 + $0x20] sm:$0xff]   ;;  %v1159_v41 = vsel %vm593_vm2, %v3980_v3, 0 }
 0x106   : > { %4928 = vmatprep.subr.msk.bf16.mxu1 %vm593_vm2, %v6051_v34  ;;  %v1000_v34 = vrot.slane %v5211_v42, 5  ;;  %v1015_v6 = vsel %vm5975_vm6, %v3965_v35, %v1014_v32  ;;  %v5159_v42 = vld [vmem:[#allocation5 + $0x38] sm:$0xff]   ;;  %v2673_v35 = vrot.slane %v2671_v40, 5 }
 0x108   : > { %v1002_v8 = vrot.slane %v1000_v34, 4  ;;  %v1001_v45 = vsel %vm5975_vm6, %v3963_v44, %v1000_v34  ;;  %v2497_v34 = vsel %vm593_vm2, %v5143_v4, 0  ;;  %v4162_v44 = vld [vmem:[%s5689_s20 + $0x18] sm:$0xf] }
 0x10a   : > { %4653 = vmatpush3.bf16.xpose.msra.mxu0 %v2231_v50  ;;  %v1017_v50 = vrot.slane %v5216_v37, 5  ;;  %v6284_v37 = vld [vmem:[%s5689_s20 + $0x34] sm:$0xf] }
 0x10b   : > { %4960 = vmatprep.subr.msk.bf16.mxu0 %vm593_vm2, %v4112_v29  ;;  %v5150_v29 = vld [vmem:[#allocation5 + $0x158] sm:$0xff]  }
 0x10c   : > { %v1018_v16 = vsel %vm5975_vm6, %v1016_v7, %v1017_v50  ;;  %v4168_v7 = vld [vmem:[%s5689_s20 + $0x30] sm:$0xf]  ;;  %v1174_v50 = vsel %vm593_vm2, %v6133_v58, 0 }
 0x10d   : > { %4527 = vmatpush3.bf16.xpose.msra.mxu1 %v862_v62  ;;  %v5154_v62 = vld [vmem:[#allocation5 + $0x28] sm:$0xff]   ;;  %v3981_v30 = vcombine.low %v1015_v6, %v1018_v16  ;;  %v2700_v16 = vshrl.u32 %v4168_v7, 16 }
 0x10e   : > { %4929 = vmatprep.subr.msk.bf16.mxu1 %vm593_vm2, %v6064_v22  ;;  %v1004_v22 = vsel %vm5975_vm6, %v1002_v8, %v1003_v38  ;;  %v6251_v38 = vld [vmem:[%s5689_s20 + $0x1c] sm:$0xf] }
 0x10f   : > { %v3979_v56 = vcombine.low %v1001_v45, %v1004_v22  ;;  %v2661_v45 = vshll.u32 %v6251_v38, 16  ;;  %v2665_v22 = vshrl.u32 %v6251_v38, 16 }
 0x111   : > { %v1156_v27 = vsel %vm593_vm2, %v3979_v56, 0 }
 0x112   : > { %4655 = vmatpush3.bf16.xpose.msra.mxu0 %v2234_v53  ;;  %v5161_v53 = vld [vmem:[#allocation5 + $0x80] sm:$0xff]  }
 0x113   : > { %4961 = vmatprep.subr.msk.bf16.mxu0 %vm593_vm2, %v4113_v61  ;;  %v1162_v61 = vsel %vm593_vm2, %v3981_v30, 0 }
 0x115   : > { %4529 = vmatpush3.bf16.xpose.msra.mxu1 %v865_v5  ;;  %v5145_v5 = vld [vmem:[%s5689_s20 + $0x48] sm:$0xff]  }
 0x116   : > { %4930 = vmatprep.subr.msk.bf16.mxu1 %vm593_vm2, %v3978_v31  ;;  %v1165_v31 = vsel %vm593_vm2, %v6096_v18, 0  ;;  %v2503_v8 = vsel %vm593_vm2, %v5145_v5, 0 }
 0x11a   : > { %4657 = vmatpush3.bf16.xpose.msra.mxu0 %v2237_v14  ;;  %v2655_v14 = vshll.u32 %v4162_v44, 16 }
 0x11b   : > { %4962 = vmatprep.subr.msk.bf16.mxu0 %vm593_vm2, %v5139_v0  ;;  %v2652_v0 = vshrl.u32 %v4162_v44, 16  ;;  %v5170_v44 = vld [vmem:[#allocation5 + $0x90] sm:$0xff]  }
 0x11c   : > { %4531 = vmatmul.mubr.msk.bf16.vlgmr.msra.gmra.mrb[0].mxu1 %vm593_vm2, %v5140_v36  ;;  %v2657_v15 = vrot.slane %v2655_v14, 5  ;;  %v5153_v36 = vld [vmem:[%s5689_s20 + $0x60] sm:$0xff]  }
 0x11d   : > { %4547 = vmatpush3.bf16.xpose.msra.mxu1 %v1153_v10  ;;  %4534 = vmatprep.mubr.msk.bf16.mxu1 %vm593_vm2, %v5146_v9  ;;  %v2654_v52 = vrot.slane %v2652_v0, 4  ;;  %v2663_v9 = vrot.slane %v2661_v45, 5  ;;  %v2667_v10 = vrot.slane %v2665_v22, 4 }
 0x11e   : > { %4931 = vmatprep.subr.msk.bf16.mxu1 %vm593_vm2, %v3979_v56  ;;  %v4165_v56 = vld [vmem:[%s5689_s20 + $0x24] sm:$0xf] }
 0x11f   : > { %v2658_v20 = vor.u32 %v2657_v15, %v2654_v52  ;;  %v2676_v26 = vshrl.u32 %v4165_v56, 16 }
 0x121   : > { %4659 = vmatmul.mubr.msk.bf16.vlgmr.msra.gmra.mrb[0].mxu0 %vm593_vm2, %v5141_v1  ;;  %v2679_v1 = vshll.u32 %v4165_v56, 16  ;;  %v2659_v28 = vrot.slane %v2658_v20, 4  ;;  %v2678_v43 = vrot.slane %v2676_v26, 4  ;;  %v4174_v56 = vld [vmem:[%s5689_s20 + $0x48] sm:$0xf] }
 0x122   : > { %4675 = vmatpush3.bf16.xpose.msra.mxu0 %v2491_v21  ;;  %4662 = vmatprep.mubr.msk.bf16.mxu0 %vm593_vm2, %v5147_v2  ;;  %v5171_v20 = vld [vmem:[#allocation5 + $0x190] sm:$0xff]  }
 0x123   : > { %4963 = vmatprep.subr.msk.bf16.mxu0 %vm593_vm2, %v5142_v13  ;;  %v2668_v13 = vor.u32 %v2667_v10, %v2663_v9  ;;  %v2681_v47 = vrot.slane %v2679_v1, 5 }
 0x124   : > { %4535 = vmatmul.mubr.msk.bf16.gmra.mrb[4].mxu1 %vm593_vm2, %v5149_v63 }
 0x125   : > { %4549 = vmatpush3.bf16.xpose.msra.mxu1 %v1156_v27  ;;  %4538 = vmatprep.mubr.msk.bf16.mxu1 %vm593_vm2, %v5151_v59  ;;  %v2509_v59 = vsel %vm593_vm2, %v5153_v36, 0  ;;  %v5158_v27 = vld [vmem:[%s5689_s20 + $0x6c] sm:$0xff]  }
 0x126   : > { %4932 = vmatprep.subr.msk.bf16.mxu1 %vm593_vm2, %v3980_v3  ;;  %v2669_v3 = vrot.slane %v2668_v13, 4  ;;  %v6328_v13 = vld [vmem:[%s5689_s20 + $0x44] sm:$0x1] }
 0x129   : > { %4663 = vmatmul.mubr.msk.bf16.gmra.mrb[4].mxu0 %vm593_vm2, %v5150_v29 }
 0x12a   : > { %4677 = vmatpush3.bf16.xpose.msra.mxu0 %v2494_v51  ;;  %4666 = vmatprep.mubr.msk.bf16.mxu0 %vm593_vm2, %v5152_v17  ;;  %v5162_v17 = vld [vmem:[%s5689_s20 + $0xc] sm:$0xff]   ;;  %v2664_v51 = vsel %vm5725_vm3, %v2659_v28, %v2663_v9  ;;  %v5165_v9 = vld [vmem:[#allocation5 + $0x188] sm:$0xff]  }
 0x12b   : > { %4964 = vmatprep.subr.msk.bf16.mxu0 %vm593_vm2, %v5143_v4  ;;  %v2682_v4 = vor.u32 %v2681_v47, %v2678_v43 }
 0x12c   : > { %4539 = vmatmul.mubr.msk.bf16.gmra.mrb[8].mxu1 %vm593_vm2, %v5154_v62  ;;  %v2674_v62 = vsel %vm5725_vm3, %v2669_v3, %v2673_v35  ;;  %v5175_v35 = vld [vmem:[#allocation5 + $0xa0] sm:$0xff]  }
 0x12d   : > { %4551 = vmatpush3.bf16.xpose.msra.mxu1 %v1159_v41  ;;  %4542 = vmatprep.mubr.msk.bf16.mxu1 %vm593_vm2, %v5156_v55  ;;  %v2703_v55 = vshll.u32 %v4168_v7, 16  ;;  %v2713_v41 = vshrl.u32 %v6284_v37, 16 }
 0x12e   : > { %4933 = vmatprep.subr.msk.bf16.mxu1 %vm593_vm2, %v3981_v30  ;;  %v2512_v30 = vsel %vm593_vm2, %v5158_v27, 0 }
 0x131   : > { %4667 = vmatmul.mubr.msk.bf16.gmra.mrb[8].mxu0 %vm593_vm2, %v5155_v39  ;;  %v2683_v39 = vrot.slane %v2682_v4, 4 }
 0x132   : > { %4679 = vmatpush3.bf16.xpose.msra.mxu0 %v2497_v34  ;;  %4670 = vmatprep.mubr.msk.bf16.mxu0 %vm593_vm2, %v5157_v49  ;;  %v6300_v34 = vld [vmem:[%s5689_s20 + $0x38] sm:$0x1] }
 0x133   : > { %4965 = vmatprep.subr.msk.bf16.mxu0 %vm593_vm2, %v5144_v12  ;;  %v4194_v12 = vcombine.low %v2664_v51, %v2674_v62  ;;  %v2719_v0 = vshll.u32 %v6300_v34, 16 }
 0x134   : > { %4543 = vmatmul.mubr.msk.bf16.gmra.mrb[12].mxu1 %vm593_vm2, %v5159_v42 }
 0x135   : > { %4553 = vmatpush3.bf16.xpose.msra.mxu1 %v1162_v61  ;;  %4562 = vmatprep.mubr.msk.bf16.mxu1 %vm593_vm2, %v5161_v53  ;;  %v2702_v53 = vrot.slane %v2700_v16, 4  ;;  %v2705_v61 = vrot.slane %v2703_v55, 5  ;;  %v2949_v10 = vsel %vm593_vm2, %v4194_v12, 0 }
 0x136   : > { %4934 = vmatprep.subr.msk.bf16.mxu1 %vm593_vm2, %v6096_v18  ;;  %v1168_v18 = vsel %vm593_vm2, %v6112_v33, 0 }
 0x137   : > { %v2706_v45 = vor.u32 %v2705_v61, %v2702_v53  ;;  %v6357_v53 = vld [vmem:[%s5689_s20 + $0x58] sm:$0xf] }
 0x139   : > { %4671 = vmatmul.mubr.msk.bf16.gmra.mrb[12].mxu0 %vm593_vm2, %v5160_v57  ;;  %v2715_v57 = vrot.slane %v2713_v41, 4  ;;  %v2707_v1 = vrot.slane %v2706_v45, 4  ;;  %v5174_v41 = vld [vmem:[#allocation5 + $0x198] sm:$0xff]  }
 0x13a   : > { %4681 = vmatpush3.bf16.xpose.msra.mxu0 %v2500_v46  ;;  %4690 = vmatprep.mubr.msk.bf16.mxu0 %vm593_vm2, %v5163_v25  ;;  %v5164_v25 = vld [vmem:[#allocation5 + $0x88] sm:$0xff]  }
 0x13b   : > { %4966 = vmatprep.subr.msk.bf16.mxu0 %vm593_vm2, %v5145_v5  ;;  %v4171_v5 = vld [vmem:[%s5689_s20 + $0x3c] sm:$0xf] }
 0x13c   : > { %v2724_v52 = vshrl.u32 %v4171_v5, 16  ;;  %v2727_v15 = vshll.u32 %v4171_v5, 16  ;;  %v5177_v5 = vld [vmem:[#allocation5 + $0xa8] sm:$0xff]  }
 0x13d   : > { %4555 = vmatpush3.bf16.xpose.msra.mxu1 %v1165_v31  ;;  %v6306_v31 = vld [vmem:[%s5689_s20 + $0x40] sm:$0xf] }
 0x13e   : > { %4935 = vmatprep.subr.msk.bf16.mxu1 %vm593_vm2, %v6112_v33  ;;  %v6264_v33 = vld [vmem:[%s5689_s20 + $0x28] sm:$0xf]  ;;  %v2726_v40 = vrot.slane %v2724_v52, 4  ;;  %v2729_v28 = vrot.slane %v2727_v15, 5  ;;  %v2781_v52 = vshll.u32 %v6357_v53, 16  ;;  %v2785_v15 = vshrl.u32 %v6357_v53, 16 }
 0x13f   : > { %v2685_v2 = vshll.u32 %v6264_v33, 16  ;;  %v2689_v21 = vshrl.u32 %v6264_v33, 16 }
 0x140   : > { %v2730_v4 = vor.u32 %v2729_v28, %v2726_v40  ;;  %v6376_v28 = vrot.slane %v2781_v52, 5  ;;  %v4183_v52 = vld [vmem:[%s5689_s20 + $0x6c] sm:$0xf] }
 0x141   : > { %v2687_v32 = vrot.slane %v2685_v2, 5  ;;  %v2691_v63 = vrot.slane %v2689_v21, 4  ;;  %v2721_v21 = vrot.slane %v2719_v0, 5  ;;  %v5180_v0 = vld [vmem:[#allocation5 + $0xb0] sm:$0xff]  }
 0x142   : > { %4683 = vmatpush3.bf16.xpose.msra.mxu0 %v2503_v8  ;;  %v1428_v8 = vsel %vm593_vm2, %v5162_v17, 0 }
 0x143   : > { %4967 = vmatprep.subr.msk.bf16.mxu0 %vm593_vm2, %v5148_v23  ;;  %v2692_v6 = vor.u32 %v2691_v63, %v2687_v32  ;;  %v5166_v23 = vld [vmem:[%s5689_s20 + $0x18] sm:$0xff]   ;;  %v2688_v14 = vsel %vm5725_vm3, %v2683_v39, %v2687_v32  ;;  %v5172_v32 = vld [vmem:[#allocation5 + $0x98] sm:$0xff]   ;;  %v2748_v63 = vshrl.u32 %v4174_v56, 16 }
 0x144   : > { %v1431_v7 = vsel %vm593_vm2, %v5166_v23, 0 }
 0x145   : > { %4557 = vmatpush3.bf16.xpose.msra.mxu1 %v1168_v18  ;;  %v2693_v49 = vrot.slane %v2692_v6, 4  ;;  %v2750_v16 = vrot.slane %v2748_v63, 4 }
 0x146   : > { %4936 = vmatprep.subr.msk.bf16.mxu1 %vm593_vm2, %v6122_v48  ;;  %v6278_v48 = vld [vmem:[%s5689_s20 + $0x2c] sm:$0x1] }
 0x147   : > { %v2695_v29 = vshll.u32 %v6278_v48, 16 }
 0x149   : > { %v2697_v42 = vrot.slane %v2695_v29, 5  ;;  %v2743_v29 = vshll.u32 %v6328_v13, 16 }
 0x14a   : > { %4685 = vmatpush3.bf16.xpose.msra.mxu0 %v2506_v19  ;;  %v2733_v19 = vshll.u32 %v6306_v31, 16 }
 0x14b   : > { %4968 = vmatprep.subr.msk.bf16.mxu0 %vm593_vm2, %v5153_v36  ;;  %v2698_v18 = vsel %vm5725_vm3, %v2693_v49, %v2697_v42  ;;  %v2737_v36 = vshrl.u32 %v6306_v31, 16  ;;  %v4177_v42 = vld [vmem:[%s5689_s20 + $0x54] sm:$0xf] }
 0x14c   : > { %v4195_v26 = vcombine.low %v2688_v14, %v2698_v18  ;;  %v6330_v43 = vrot.slane %v2733_v19, 5  ;;  %v3530_v14 = vld [vmem:[#allocation7 + $0x8] sm:$0xff]  ;;  %v5168_v18 = vld [vmem:[%s5689_s20 + $0x30] sm:$0xff]   ;;  %v2772_v45 = vshrl.u32 %v4177_v42, 16  ;;  %v5446_v19 = vmov 0  }
 0x14d   : > { %4559 = vmatpush3.bf16.xpose.msra.mxu1 %v1171_v54  ;;  %v6325_v54 = vld [vmem:[%s5689_s20 + $0x4c] sm:$0xf]  ;;  %v2739_v47 = vrot.slane %v2737_v36, 4  ;;  %5112 = vset.pattern.permute.xlu1 %v5446_v19 }
 0x14e   : > { %4937 = vmatprep.subr.msk.bf16.mxu1 %vm593_vm2, %v6133_v58  ;;  %v2709_v58 = vshll.u32 %v6284_v37, 16  ;;  %v2761_v3 = vshrl.u32 %v6325_v54, 16  ;;  %v2952_v39 = vsel %vm593_vm2, %v4195_v26, 0  ;;  %3552 = vperm.xlu1 %5112, %v3530_v14  }
 0x14f   : > { %v2740_v6 = vor.u32 %v2739_v47, %v6330_v43  ;;  %v5181_v47 = vld [vmem:[#allocation5 + $0x1b0] sm:$0xff]   ;;  %5111 = vset.pattern.permute.xlu0 %v5446_v19  ;;  %v3534_v19 = vld [vmem:[#allocation7 + $0x28] sm:$0xff] }
 0x150   : > { %v6302_v46 = vrot.slane %v2709_v58, 5  ;;  %v2763_v58 = vrot.slane %v2761_v3, 4  ;;  %v6384_v3 = vld [vmem:[%s5689_s20 + $0x64] sm:$0xf] }
 0x152   : > { %4687 = vmatpush3.bf16.xpose.msra.mxu0 %v2509_v59  ;;  %v2716_v22 = vor.u32 %v2715_v57, %v6302_v46  ;;  %v2751_v59 = vshll.u32 %v4174_v56, 16  ;;  %v2741_v57 = vrot.slane %v2740_v6, 4 }
 0x153   : > { %4969 = vmatprep.subr.msk.bf16.mxu0 %vm593_vm2, %v5158_v27  ;;  %v2757_v27 = vshll.u32 %v6325_v54, 16 }
 0x154   : > { %v2717_v2 = vrot.slane %v2716_v22, 4  ;;  %v2753_v62 = vrot.slane %v2751_v59, 5  ;;  %v2775_v22 = vshll.u32 %v4177_v42, 16  ;;  %v6380_v59 = vld [vmem:[%s5689_s20 + $0x5c] sm:$0x1] }
 0x155   : > { %4561 = vmatpush3.bf16.xpose.msra.mxu1 %v1174_v50  ;;  %v5167_v50 = vld [vmem:[%s5689_s20 + $0x24] sm:$0xff]   ;;  %v6347_v55 = vrot.slane %v2757_v27, 5  ;;  %v4180_v27 = vld [vmem:[%s5689_s20 + $0x60] sm:$0xf] }
 0x156   : > { %4938 = vmatprep.subr.msk.bf16.mxu1 %vm593_vm2, %v5162_v17  ;;  %v2712_v17 = vsel %vm5725_vm3, %v2707_v1, %v6302_v46  ;;  %v2722_v51 = vsel %vm5725_vm3, %v2717_v2, %v2721_v21  ;;  %v1434_v61 = vsel %vm593_vm2, %v5167_v50, 0  ;;  %v2731_v46 = vrot.slane %v2730_v4, 4  ;;  %v5179_v1 = vld [vmem:[#allocation5 + $0x1a8] sm:$0xff]   ;;  %v3531_v2 = vld [vmem:[#allocation7 + $0x10] sm:$0xff] }
 0x157   : > { %v4196_v49 = vcombine.low %v2712_v17, %v2722_v51  ;;  %v2774_v21 = vrot.slane %v2772_v45, 4  ;;  %v2777_v40 = vrot.slane %v2775_v22, 5  ;;  %3557 = vperm.xlu1 %5112, %v3531_v2   ;;  %v5185_v17 = vld [vmem:[#allocation5 + $0xc0] sm:$0xff]   ;;  %v3532_v51 = vld [vmem:[#allocation7 + $0x18] sm:$0xff]  ;;  %v3542_v22 = vld [vmem:[#allocation7 + $0x68] sm:$0xff]  ;;  %v2820_v2 = vshrl.u32 %v4183_v52, 16 }
 0x158   : > { %v2736_v36 = vsel %vm5725_vm3, %v2731_v46, %v6330_v43  ;;  %v2787_v43 = vrot.slane %v2785_v15, 4  ;;  %v5169_v4 = vld [vmem:[%s5689_s20 + $0x3c] sm:$0xff]   ;;  %v6405_v45 = vld [vmem:[%s5689_s20 + $0x68] sm:$0x1]  ;;  %v6410_v15 = vld [vmem:[%s5689_s20 + $0x70] sm:$0xf] }
 0x159   : > { %v3533_v46 = vld [vmem:[#allocation7 + $0x20] sm:$0xff] }
 0x15a   : > { %4689 = vmatpush3.bf16.xpose.msra.mxu0 %v2512_v30  ;;  %v6352_v30 = vld [vmem:[%s5689_s20 + $0x50] sm:$0x1] }
 0x15b   : > { %4970 = vmatprep.subr.msk.bf16.mxu0 %vm593_vm2, %v4194_v12  ;;  %v5176_v12 = vld [vmem:[#allocation5 + $0x1a0] sm:$0xff]   ;;  %3562 = vperm.xlu1 %5112, %v3532_v51  }
 0x15c   : > { %4563 = vmatmul.mubr.msk.bf16.vlgmr.msra.gmra.mrb[0].mxu1 %vm593_vm2, %v5164_v25  ;;  %v2745_v25 = vrot.slane %v2743_v29, 5  ;;  %v6427_v51 = vld [vmem:[%s5689_s20 + $0x74] sm:$0x1] }
 0x15d   : > { %4579 = vmatpush3.bf16.xpose.msra.mxu1 %v1428_v8  ;;  %4566 = vmatprep.mubr.msk.bf16.mxu1 %vm593_vm2, %v5170_v44  ;;  %v2754_v44 = vor.u32 %v2753_v62, %v2750_v16  ;;  %v2764_v8 = vor.u32 %v2763_v58, %v6347_v55  ;;  %v2778_v16 = vor.u32 %v2777_v40, %v2774_v21  ;;  %v2791_v58 = vshll.u32 %v6380_v59, 16 }
 0x15e   : > { %4939 = vmatprep.subr.msk.bf16.mxu1 %vm593_vm2, %v5166_v23  ;;  %v2767_v23 = vshll.u32 %v6352_v30, 16  ;;  %v2788_v62 = vor.u32 %v2787_v43, %v6376_v28  ;;  %v2823_v21 = vshll.u32 %v4183_v52, 16  ;;  %v2829_v40 = vshll.u32 %v6410_v15, 16  ;;  %v3541_v52 = vld [vmem:[#allocation7 + $0x60] sm:$0xff] }
 0x15f   : > { %v2755_v56 = vrot.slane %v2754_v44, 4  ;;  %v2793_v44 = vrot.slane %v2791_v58, 5  ;;  %3567 = vperm.xlu1 %5112, %v3533_v46   ;;  %v2833_v43 = vshrl.u32 %v6410_v15, 16 }
 0x161   : > { %4691 = vmatmul.mubr.msk.bf16.vlgmr.msra.gmra.mrb[0].mxu0 %vm593_vm2, %v5165_v9  ;;  %v2746_v9 = vsel %vm5725_vm3, %v2741_v57, %v2745_v25  ;;  %v2760_v29 = vsel %vm5725_vm3, %v2755_v56, %v6347_v55  ;;  %v2799_v55 = vshll.u32 %v4180_v27, 16  ;;  %v2779_v25 = vrot.slane %v2778_v16, 4  ;;  %v5178_v16 = vld [vmem:[%s5689_s20 + $0x54] sm:$0xff]  }
 0x162   : > { %4707 = vmatpush3.bf16.xpose.msra.mxu0 %v2949_v10  ;;  %4694 = vmatprep.mubr.msk.bf16.mxu0 %vm593_vm2, %v5171_v20  ;;  %v3529_v10 = vld [vmem:[#allocation7] sm:$0xff]  ;;  %v2765_v20 = vrot.slane %v2764_v8, 4  ;;  %v4197_v63 = vcombine.low %v2736_v36, %v2746_v9  ;;  %v1440_v36 = vsel %vm593_vm2, %v5169_v4, 0  ;;  %v5173_v9 = vld [vmem:[%s5689_s20 + $0x48] sm:$0xff]  }
 0x163   : > { %4971 = vmatprep.subr.msk.bf16.mxu0 %vm593_vm2, %v4195_v26  ;;  %v2769_v26 = vrot.slane %v2767_v23, 5  ;;  %3547 = vperm.xlu0 %5111, %v3529_v10   ;;  %v5186_v8 = vld [vmem:[#allocation5 + $0x1c0] sm:$0xff]   ;;  %v2784_v10 = vsel %vm5725_vm3, %v2779_v25, %v6376_v28  ;;  %v3535_v28 = vld [vmem:[#allocation7 + $0x30] sm:$0xff] }
 0x164   : > { %4567 = vmatmul.mubr.msk.bf16.gmra.mrb[4].mxu1 %vm593_vm2, %v5172_v32  ;;  %v2955_v32 = vsel %vm593_vm2, %v4196_v49, 0  ;;  %v2958_v42 = vsel %vm593_vm2, %v4197_v63, 0  ;;  %3572 = vperm.xlu1 %5112, %v3534_v19  }
 0x165   : > { %4581 = vmatpush3.bf16.xpose.msra.mxu1 %v1431_v7  ;;  %4570 = vmatprep.mubr.msk.bf16.mxu1 %vm593_vm2, %v5175_v35  ;;  %v5182_v35 = vld [vmem:[#allocation5 + $0xb8] sm:$0xff]   ;;  %v3538_v7 = vld [vmem:[#allocation7 + $0x48] sm:$0xff]  ;;  %v2770_v6 = vsel %vm5725_vm3, %v2765_v20, %v2769_v26 }
 0x166   : > { %4940 = vmatprep.subr.msk.bf16.mxu1 %vm593_vm2, %v5167_v50  ;;  %v1437_v50 = vsel %vm593_vm2, %v5168_v18, 0  ;;  %v4198_v57 = vcombine.low %v2760_v29, %v2770_v6  ;;  %v2831_v29 = vrot.slane %v2829_v40, 5  ;;  %v1443_v6 = vsel %vm593_vm2, %v5173_v9, 0 }
 0x167   : > { %3592 = vperm.xlu0 %5111, %v3538_v7   ;;  %v2822_v7 = vrot.slane %v2820_v2, 4  ;;  %v3129_v2 = vrot.slane %v6278_v48, 5 }
 0x168   : > { %3577 = vperm.xlu1 %5112, %v3535_v28   ;;  %v5187_v28 = vld [vmem:[#allocation5 + $0xc8] sm:$0xff]  }
 0x169   : > { %4695 = vmatmul.mubr.msk.bf16.gmra.mrb[4].mxu0 %vm593_vm2, %v5174_v41  ;;  %v2796_v41 = vshrl.u32 %v4180_v27, 16 }
 0x16a   : > { %4709 = vmatpush3.bf16.xpose.msra.mxu0 %v2952_v39  ;;  %4698 = vmatprep.mubr.msk.bf16.mxu0 %vm593_vm2, %v5176_v12  ;;  %v2805_v12 = vshll.u32 %v6384_v3, 16  ;;  %v2809_v39 = vshrl.u32 %v6384_v3, 16 }
 0x16b   : > { %4972 = vmatprep.subr.msk.bf16.mxu0 %vm593_vm2, %v4196_v49  ;;  %v3540_v49 = vld [vmem:[#allocation7 + $0x58] sm:$0xff]  ;;  %v2798_v23 = vrot.slane %v2796_v41, 4 }
 0x16c   : > { %4571 = vmatmul.mubr.msk.bf16.gmra.mrb[8].mxu1 %vm593_vm2, %v5177_v5  ;;  %v2789_v5 = vrot.slane %v2788_v62, 4  ;;  %v2807_v14 = vrot.slane %v2805_v12, 5  ;;  %3602 = vperm.xlu0 %5111, %v3540_v49   ;;  %v2839_v12 = vshll.u32 %v6427_v51, 16 }
 0x16d   : > { %4583 = vmatpush3.bf16.xpose.msra.mxu1 %v1434_v61  ;;  %4574 = vmatprep.mubr.msk.bf16.mxu1 %vm593_vm2, %v5180_v0  ;;  %v5184_v61 = vld [vmem:[#allocation5 + $0x1b8] sm:$0xff]   ;;  %v2801_v0 = vrot.slane %v2799_v55, 5 }
 0x16e   : > { %4941 = vmatprep.subr.msk.bf16.mxu1 %vm593_vm2, %v5168_v18  ;;  %v2811_v18 = vrot.slane %v2809_v39, 4  ;;  %v2794_v56 = vsel %vm5725_vm3, %v2789_v5, %v2793_v44  ;;  %v3537_v39 = vld [vmem:[#allocation7 + $0x40] sm:$0xff]  ;;  %v2841_v25 = vrot.slane %v2839_v12, 5  ;;  %v3539_v44 = vld [vmem:[#allocation7 + $0x50] sm:$0xff]  ;;  %v3143_v12 = vrot.slane %v6328_v13, 5 }
 0x16f   : > { %v2802_v20 = vor.u32 %v2801_v0, %v2798_v23  ;;  %v4210_v5 = vld [vmem:[%s5689_s20 + $0x18] sm:$0xe]  ;;  %v5183_v23 = vld [vmem:[%s5689_s20 + $0x60] sm:$0xff]  }
 0x170   : > { %v2812_v26 = vor.u32 %v2811_v18, %v2807_v14  ;;  %3612 = vperm.xlu0 %5111, %v3542_v22   ;;  %v4218_v0 = vrot.slane %v4210_v5, 9  ;;  %v3122_v18 = vrot.slane %v6267_v11, 5  ;;  %v1449_v24 = vsel %vm593_vm2, %v5183_v23, 0  ;;  %v5197_v13 = vld [vmem:[#allocation5 + $0xf0] sm:$0xff]  }
 0x171   : > { %4699 = vmatmul.mubr.msk.bf16.gmra.mrb[8].mxu0 %vm593_vm2, %v5179_v1  ;;  %v2815_v1 = vshll.u32 %v6405_v45, 16 }
 0x172   : > { %4711 = vmatpush3.bf16.xpose.msra.mxu0 %v2955_v32  ;;  %4702 = vmatprep.mubr.msk.bf16.mxu0 %vm593_vm2, %v5181_v47  ;;  %v2961_v47 = vsel %vm593_vm2, %v4198_v57, 0  ;;  %v4199_v32 = vcombine.low %v2784_v10, %v2794_v56  ;;  %v2813_v27 = vrot.slane %v2812_v26, 4  ;;  %v3126_v10 = vrot.slane %v6264_v33, 5  ;;  %v4211_v56 = vld [vmem:[%s5689_s20 + $0x24] sm:$0xe] }
 0x173   : > { %4973 = vmatprep.subr.msk.bf16.mxu0 %vm593_vm2, %v4197_v63  ;;  %v2803_v63 = vrot.slane %v2802_v20, 4  ;;  %v4219_v26 = vrot.slane %v4211_v56, 9  ;;  %v5201_v56 = vld [vmem:[#allocation5 + $0x200] sm:$0xff]  }
 0x174   : > { %4575 = vmatmul.mubr.msk.bf16.gmra.mrb[12].mxu1 %vm593_vm2, %v5182_v35  ;;  %v2817_v35 = vrot.slane %v2815_v1, 5  ;;  %v2964_v49 = vsel %vm593_vm2, %v4199_v32, 0  ;;  %v3128_v1 = vrot.slane %v3126_v10, 4 }
 0x175   : > { %4585 = vmatpush3.bf16.xpose.msra.mxu1 %v1437_v50  ;;  %4594 = vmatprep.mubr.msk.bf16.mxu1 %vm593_vm2, %v5185_v17  ;;  %v2825_v50 = vrot.slane %v2823_v21, 5  ;;  %v2835_v17 = vrot.slane %v2833_v43, 4  ;;  %v2808_v62 = vsel %vm5725_vm3, %v2803_v63, %v2807_v14  ;;  %v3127_v33 = vsel %vm5975_vm6, %v4219_v26, %v3126_v10 }
 0x176   : > { %4942 = vmatprep.subr.msk.bf16.mxu1 %vm593_vm2, %v5169_v4  ;;  %v3536_v4 = vld [vmem:[#allocation7 + $0x38] sm:$0xff]  ;;  %v2818_v58 = vsel %vm5725_vm3, %v2813_v27, %v2817_v35  ;;  %v3130_v40 = vsel %vm5975_vm6, %v3128_v1, %v3129_v2  ;;  %v3133_v43 = vrot.slane %v6284_v37, 5  ;;  %v5190_v37 = vld [vmem:[#allocation5 + $0x1d0] sm:$0xff]   ;;  %v3157_v10 = vrot.slane %v6380_v59, 5 }
 0x177   : > { %v2826_v41 = vor.u32 %v2825_v50, %v2822_v7  ;;  %v2836_v55 = vor.u32 %v2835_v17, %v2831_v29  ;;  %3582 = vperm.xlu1 %5112, %v3536_v4   ;;  %v4235_v48 = vcombine.low %v3127_v33, %v3130_v40  ;;  %v3136_v7 = vrot.slane %v6300_v34, 5  ;;  %v5188_v50 = vld [vmem:[#allocation5 + $0x1c8] sm:$0xff]   ;;  %v5193_v34 = vld [vmem:[#allocation5 + $0xe0] sm:$0xff]  }
 0x178   : > { %v3135_v35 = vrot.slane %v3133_v43, 4  ;;  %v3140_v4 = vrot.slane %v6306_v31, 5  ;;  %v5192_v31 = vld [vmem:[#allocation5 + $0x1d8] sm:$0xff]   ;;  %v3161_v26 = vrot.slane %v6384_v3, 5  ;;  %v4216_v1 = vld [vmem:[%s5689_s20 + $0x60] sm:$0xe] }
 0x179   : > { %4703 = vmatmul.mubr.msk.bf16.gmra.mrb[12].mxu0 %vm593_vm2, %v5184_v61  ;;  %v3119_v61 = vrot.slane %v6251_v38, 5  ;;  %v2827_v46 = vrot.slane %v2826_v41, 4  ;;  %v3164_v40 = vrot.slane %v6405_v45, 5 }
 0x17a   : > { %4713 = vmatpush3.bf16.xpose.msra.mxu0 %v2958_v42  ;;  %4722 = vmatprep.mubr.msk.bf16.mxu0 %vm593_vm2, %v5186_v8  ;;  %v4200_v42 = vcombine.low %v2808_v62, %v2818_v58  ;;  %v1446_v8 = vsel %vm593_vm2, %v5178_v16, 0  ;;  %v3137_v17 = vsel %vm5975_vm6, %v3135_v35, %v3136_v7  ;;  %v3282_v62 = vsel %vm593_vm2, %v4235_v48, 0 }
 0x17b   : > { %4974 = vmatprep.subr.msk.bf16.mxu0 %vm593_vm2, %v4198_v57  ;;  %v2837_v57 = vrot.slane %v2836_v55, 4  ;;  %3587 = vperm.xlu1 %5112, %v3537_v39   ;;  %v3121_v14 = vrot.slane %v3119_v61, 4  ;;  %v2832_v38 = vsel %vm5725_vm3, %v2827_v46, %v2831_v29  ;;  %v3142_v55 = vrot.slane %v3140_v4, 4  ;;  %v5194_v39 = vld [vmem:[#allocation5 + $0x1e0] sm:$0xff]   ;;  %v5195_v46 = vld [vmem:[#allocation5 + $0xe8] sm:$0xff]  }
 0x17c   : > { %v2967_v19 = vsel %vm593_vm2, %v4200_v42, 0  ;;  %v3163_v33 = vrot.slane %v3161_v26, 4 }
 0x17d   : > { %4587 = vmatpush3.bf16.xpose.msra.mxu1 %v1440_v36  ;;  %v2842_v22 = vsel %vm5725_vm3, %v2837_v57, %v2841_v25  ;;  %v3123_v11 = vsel %vm5975_vm6, %v3121_v14, %v3122_v18  ;;  %v4214_v57 = vld [vmem:[%s5689_s20 + $0x48] sm:$0xe] }
 0x17e   : > { %4943 = vmatprep.subr.msk.bf16.mxu1 %vm593_vm2, %v5173_v9  ;;  %v4201_v36 = vcombine.low %v2832_v38, %v2842_v22  ;;  %v3120_v9 = vsel %vm5975_vm6, %v4218_v0, %v3119_v61  ;;  %v3147_v61 = vrot.slane %v6325_v54, 5  ;;  %v5196_v54 = vld [vmem:[#allocation5 + $0x1e8] sm:$0xff]   ;;  %v5198_v0 = vld [vmem:[#allocation5 + $0x1f0] sm:$0xff]   ;;  %v3154_v38 = vrot.slane %v6357_v53, 5  ;;  %v5199_v22 = vld [vmem:[#allocation5 + $0xf8] sm:$0xff]  }
 0x17f   : > { %3597 = vperm.xlu1 %5112, %v3539_v44   ;;  %v4234_v20 = vcombine.low %v3120_v9, %v3123_v11  ;;  %v4222_v44 = vrot.slane %v4214_v57, 9  ;;  %v5200_v53 = vld [vmem:[#allocation5 + $0x1f8] sm:$0xff]  }
 0x180   : > { %v2970_v21 = vsel %vm593_vm2, %v4201_v36, 0  ;;  %v3156_v11 = vrot.slane %v3154_v38, 4 }
 0x181   : > { %v3279_v63 = vsel %vm593_vm2, %v4234_v20, 0  ;;  %v3148_v14 = vsel %vm5975_vm6, %v4222_v44, %v3147_v61 }
 0x182   : > { %4715 = vmatpush3.bf16.xpose.msra.mxu0 %v2961_v47  ;;  %v4212_v47 = vld [vmem:[%s5689_s20 + $0x30] sm:$0xe] }
 0x183   : > { %4975 = vmatprep.subr.msk.bf16.mxu0 %vm593_vm2, %v4199_v32  ;;  %3607 = vperm.xlu1 %5112, %v3541_v52   ;;  %v5189_v32 = vld [vmem:[#allocation5 + $0xd0] sm:$0xff]   ;;  %v4220_v27 = vrot.slane %v4212_v47, 9  ;;  %v4215_v52 = vld [vmem:[%s5689_s20 + $0x54] sm:$0xe] }
 0x184   : > { %v4223_v9 = vrot.slane %v4215_v52, 9  ;;  %v4217_v47 = vld [vmem:[%s5689_s20 + $0x6c] sm:$0xe] }
 0x185   : > { %4589 = vmatpush3.bf16.xpose.msra.mxu1 %v1443_v6  ;;  %v3134_v29 = vsel %vm5975_vm6, %v4220_v27, %v3133_v43  ;;  %v5191_v6 = vld [vmem:[#allocation5 + $0xd8] sm:$0xff]   ;;  %v3165_v43 = vsel %vm5975_vm6, %v3163_v33, %v3164_v40  ;;  %v3171_v27 = vrot.slane %v6427_v51, 5 }
 0x186   : > { %4944 = vmatprep.subr.msk.bf16.mxu1 %vm593_vm2, %v5178_v16  ;;  %v4213_v16 = vld [vmem:[%s5689_s20 + $0x3c] sm:$0xe]  ;;  %v4236_v58 = vcombine.low %v3134_v29, %v3137_v17  ;;  %v5206_v29 = vld [vmem:[#allocation5 + $0x230] sm:$0xff]   ;;  %s5309_s20 = scalar_lea.vmem %s5308_s14, 4096 }
 0x187   : > { %v4221_v41 = vrot.slane %v4213_v16, 9  ;;  %v5205_v17 = vld [vmem:[#allocation5 + $0x210] sm:$0xff]   ;;  %p5311_p13 = scmp.lt.s32.totalorder %s5309_s20, %s5303_s11 }
 0x188   : > { %v3285_v25 = vsel %vm593_vm2, %v4236_v58, 0 }
 0x189   : > { %p5312_p3 = por %p5311_p13, %p5310_p11 }
 0x18a   : > { %4717 = vmatpush3.bf16.xpose.msra.mxu0 %v2964_v49  ;;  %v3141_v49 = vsel %vm5975_vm6, %v4221_v41, %v3140_v4  ;;  %v5208_v4 = vld [vmem:[#allocation5 + $0x238] sm:$0xff]  }
 0x18b   : > { %4976 = vmatprep.subr.msk.bf16.mxu0 %vm593_vm2, %v4200_v42  ;;  %v3144_v42 = vsel %vm5975_vm6, %v3142_v55, %v3143_v12  ;;  %p5313_p7 = pnand %p5312_p3, %p5306_p6 }
 0x18c   : > { %v4237_v5 = vcombine.low %v3141_v49, %v3144_v42 }
 0x18d   : > { %4591 = vmatpush3.bf16.xpose.msra.mxu1 %v1446_v8  ;;  %v3149_v8 = vrot.slane %v3147_v61, 4 }
 0x18e   : > { %4945 = vmatprep.subr.msk.bf16.mxu1 %vm593_vm2, %v5183_v23  ;;  %v3150_v23 = vrot.slane %v6352_v30, 5  ;;  %v5202_v30 = vld [vmem:[#allocation5 + $0x220] sm:$0xff]  }
 0x190   : > { %v3151_v18 = vsel %vm5975_vm6, %v3149_v8, %v3150_v23 }
 0x192   : > { %4719 = vmatpush3.bf16.xpose.msra.mxu0 %v2967_v19  ;;  %v3288_v19 = vsel %vm593_vm2, %v4237_v5, 0 }
 0x193   : > { %4977 = vmatprep.subr.msk.bf16.mxu0 %vm593_vm2, %v4201_v36  ;;  %v4238_v36 = vcombine.low %v3148_v14, %v3151_v18 }
 0x195   : > { %4593 = vmatpush3.bf16.xpose.msra.mxu1 %v1449_v24  ;;  %v3155_v24 = vsel %vm5975_vm6, %v4223_v9, %v3154_v38  ;;  %v3291_v59 = vsel %vm593_vm2, %v4238_v36, 0 }
 0x196   : > { %4979 = vmatprep.subr.msk.bf16.mxu1 %vm593_vm2, %v4234_v20 }
 0x19a   : > { %4721 = vmatpush3.bf16.xpose.msra.mxu0 %v2970_v21  ;;  %v4224_v21 = vrot.slane %v4216_v1, 9 }
 0x19b   : > { %4978 = vmatprep.subr.msk.bf16.mxu0 %vm593_vm2, %v4234_v20  ;;  %v3158_v20 = vsel %vm5975_vm6, %v3156_v11, %v3157_v10 }
 0x19c   : > { %4595 = vmatmul.mubr.msk.bf16.vlgmr.msra.gmra.mrb[0].mxu1 %vm593_vm2, %v5187_v28  ;;  %v4239_v2 = vcombine.low %v3155_v24, %v3158_v20  ;;  %v3162_v3 = vsel %vm5975_vm6, %v4224_v21, %v3161_v26  ;;  %v3168_v28 = vrot.slane %v6410_v15, 5 }
 0x19d   : > { %4778 = vmatpush3.bf16.xpose.msra.mxu1 %v3279_v63  ;;  %4598 = vmatprep.mubr.msk.bf16.mxu1 %vm593_vm2, %v5189_v32 }
 0x19e   : > { %4981 = vmatprep.subr.msk.bf16.mxu1 %vm593_vm2, %v4235_v48  ;;  %v3294_v32 = vsel %vm593_vm2, %v4239_v2, 0  ;;  %v3170_v45 = vrot.slane %v3168_v28, 4 }
 0x1a0   : > { %v3172_v15 = vsel %vm5975_vm6, %v3170_v45, %v3171_v27 }
 0x1a1   : > { %4723 = vmatmul.mubr.msk.bf16.vlgmr.msra.gmra.mrb[0].mxu0 %vm593_vm2, %v5188_v50 }
 0x1a2   : > { %4739 = vmatpush3.bf16.xpose.msra.mxu0 %v3279_v63  ;;  %4726 = vmatprep.mubr.msk.bf16.mxu0 %vm593_vm2, %v5190_v37  ;;  %v4240_v63 = vcombine.low %v3162_v3, %v3165_v43  ;;  %v5204_v37 = vld [vmem:[#allocation5 + $0x228] sm:$0xff]  }
 0x1a3   : > { %4980 = vmatprep.subr.msk.bf16.mxu0 %vm593_vm2, %v4235_v48  ;;  %v4225_v48 = vrot.slane %v4217_v47, 9 }
 0x1a4   : > { %4599 = vmatmul.mubr.msk.bf16.gmra.mrb[4].mxu1 %vm593_vm2, %v5191_v6  ;;  %v3297_v7 = vsel %vm593_vm2, %v4240_v63, 0  ;;  %v5207_v6 = vld [vmem:[#allocation5 + $0x218] sm:$0xff]  }
 0x1a5   : > { %4779 = vmatpush3.bf16.xpose.msra.mxu1 %v3282_v62  ;;  %4602 = vmatprep.mubr.msk.bf16.mxu1 %vm593_vm2, %v5193_v34  ;;  %v3169_v35 = vsel %vm5975_vm6, %v4225_v48, %v3168_v28 }
 0x1a6   : > { %4983 = vmatprep.subr.msk.bf16.mxu1 %vm593_vm2, %v4236_v58  ;;  %v4241_v50 = vcombine.low %v3169_v35, %v3172_v15 }
 0x1a8   : > { %v3300_v51 = vsel %vm593_vm2, %v4241_v50, 0 }
 0x1a9   : > { %4727 = vmatmul.mubr.msk.bf16.gmra.mrb[4].mxu0 %vm593_vm2, %v5192_v31 }
 0x1aa   : > { %4741 = vmatpush3.bf16.xpose.msra.mxu0 %v3282_v62  ;;  %4730 = vmatprep.mubr.msk.bf16.mxu0 %vm593_vm2, %v5194_v39 }
 0x1ab   : > { %4982 = vmatprep.subr.msk.bf16.mxu0 %vm593_vm2, %v4236_v58 }
 0x1ac   : > { %4603 = vmatmul.mubr.msk.bf16.gmra.mrb[8].mxu1 %vm593_vm2, %v5195_v46 }
 0x1ad   : > { %4780 = vmatpush3.bf16.xpose.msra.mxu1 %v3285_v25  ;;  %4606 = vmatprep.mubr.msk.bf16.mxu1 %vm593_vm2, %v5197_v13 }
 0x1ae   : > { %4985 = vmatprep.subr.msk.bf16.mxu1 %vm593_vm2, %v4237_v5 }
 0x1b1   : > { %4731 = vmatmul.mubr.msk.bf16.gmra.mrb[8].mxu0 %vm593_vm2, %v5196_v54 }
 0x1b2   : > { %4743 = vmatpush3.bf16.xpose.msra.mxu0 %v3285_v25  ;;  %4734 = vmatprep.mubr.msk.bf16.mxu0 %vm593_vm2, %v5198_v0 }
 0x1b3   : > { %4984 = vmatprep.subr.msk.bf16.mxu0 %vm593_vm2, %v4237_v5 }
 0x1b4   : > { %4607 = vmatmul.mubr.msk.bf16.gmra.mrb[12].mxu1 %vm593_vm2, %v5199_v22 }
 0x1b5   : > { %4781 = vmatpush3.bf16.xpose.msra.mxu1 %v3288_v19  ;;  %4762 = vmatprep.mubr.msk.bf16.mxu1 %vm593_vm2, %v5202_v30 }
 0x1b6   : > { %4987 = vmatprep.subr.msk.bf16.mxu1 %vm593_vm2, %v4238_v36 }
 0x1b9   : > { %4735 = vmatmul.mubr.msk.bf16.gmra.mrb[12].mxu0 %vm593_vm2, %v5200_v53 }
 0x1ba   : > { %4745 = vmatpush3.bf16.xpose.msra.mxu0 %v3288_v19  ;;  %4754 = vmatprep.mubr.msk.bf16.mxu0 %vm593_vm2, %v5201_v56 }
 0x1bb   : > { %4986 = vmatprep.subr.msk.bf16.mxu0 %vm593_vm2, %v4238_v36 }
 0x1bd   : > { %4782 = vmatpush3.bf16.xpose.msra.mxu1 %v3291_v59 }
 0x1be   : > { %4989 = vmatprep.subr.msk.bf16.mxu1 %vm593_vm2, %v4239_v2 }
 0x1c2   : > { %4747 = vmatpush3.bf16.xpose.msra.mxu0 %v3291_v59 }
 0x1c3   : > { %4988 = vmatprep.subr.msk.bf16.mxu0 %vm593_vm2, %v4239_v2 }
 0x1c5   : > { %4783 = vmatpush3.bf16.xpose.msra.mxu1 %v3294_v32 }
 0x1c6   : > { %4991 = vmatprep.subr.msk.bf16.mxu1 %vm593_vm2, %v4240_v63 }
 0x1ca   : > { %4749 = vmatpush3.bf16.xpose.msra.mxu0 %v3294_v32 }
 0x1cb   : > { %4990 = vmatprep.subr.msk.bf16.mxu0 %vm593_vm2, %v4240_v63 }
 0x1cd   : > { %4784 = vmatpush3.bf16.xpose.msra.mxu1 %v3297_v7  ;;  %v6563_v42 = vpop.permute.xlu1 %3552 }
 0x1ce   : > { %4993 = vmatprep.subr.msk.bf16.mxu1 %vm593_vm2, %v4241_v50 }
 0x1d2   : > { %4751 = vmatpush3.bf16.xpose.msra.mxu0 %v3297_v7 }
 0x1d3   : > { %4992 = vmatprep.subr.msk.bf16.mxu0 %vm593_vm2, %v4241_v50 }
 0x1d5   : > { %4785 = vmatpush3.bf16.xpose.msra.mxu1 %v3300_v51 }
 0x1d6   : > { %v3558_v8 = vpop.permute.xlu1 %3557 }
 0x1da   : > { %4753 = vmatpush3.bf16.xpose.msra.mxu0 %v3300_v51  ;;  %v3563_v30 = vpop.permute.xlu1 %3562 }
 0x1dc   : > { %4763 = vmatmul.mubr.msk.bf16.vlgmr.msra.gmra.mrb[16].mxu1 %vm593_vm2, %v5204_v37 }
 0x1dd   : > { %4766 = vmatprep.mubr.msk.bf16.mxu1 %vm593_vm2, %v5206_v29 }
 0x1de   : > { %v6565_v24 = vpop.permute.xlu1 %3567 }
 0x1e1   : > { %4755 = vmatmul.mubr.msk.bf16.vlgmr.msra.gmra.mrb[0].mxu0 %vm593_vm2, %v5203_v60 }
 0x1e2   : > { %4758 = vmatprep.mubr.msk.bf16.mxu0 %vm593_vm2, %v5205_v17  ;;  %v3548_v59 = vpop.permute.xlu0 %3547 }
 0x1e3   : > { %v6567_v20 = vpop.permute.xlu1 %3572 }
 0x1e4   : > { %4767 = vmatmul.mubr.msk.bf16.gmra.mrb[20].mxu1 %vm593_vm2, %v5208_v4 }
 0x1e6   : > { %v3593_v21 = vpop.permute.xlu0 %3592 }
 0x1e7   : > { %v6569_v26 = vpop.permute.xlu1 %3577 }
 0x1e9   : > { %4759 = vmatmul.mubr.msk.bf16.gmra.mrb[4].mxu0 %vm593_vm2, %v5207_v6 }
 0x1eb   : > { %v3603_v32 = vpop.permute.xlu0 %3602 }
 0x1f6   : > { %v6571_v1 = vpop.permute.xlu1 %3582 }
 0x1fa   : > { %v3588_v2 = vpop.permute.xlu1 %3587 }
 0x1fe   : > { %v3598_v43 = vpop.permute.xlu1 %3597 }
 0x26f   : > { %v4596_v16 = vpop.f32.mrb[0].mxu1 }
 0x270   : > { %v1485_v34 = vpop.f32.mrb[1].mxu1 }
 0x271   : > { %v4597_v62 = vpop.f32.mrb[2].mxu1 }
 0x272   : > { %v6553_v58 = vpop.f32.mrb[3].mxu1 }
 0x277   : > { %v6555_v41 = vpop.f32.mrb[4].mxu1 }
 0x278   : > { %v6557_v55 = vpop.f32.mrb[5].mxu1 }
 0x279   : > { %v6559_v12 = vpop.f32.mrb[6].mxu1 }
 0x27a   : > { %v6561_v31 = vpop.f32.mrb[7].mxu1 }
 0x27f   : > { %v4604_v39 = vpop.f32.mrb[8].mxu1 }
 0x280   : > { %v1517_v49 = vpop.f32.mrb[9].mxu1 }
 0x281   : > { %v4605_v61 = vpop.f32.mrb[10].mxu1 }
 0x282   : > { %v1520_v46 = vpop.f32.mrb[11].mxu1 }
 0x284   : > { %v4732_v57 = vpop.f32.mrb[8].mxu0 }
 0x285   : > { %v4794_v13 = vadd.f32 %v4732_v57, %v4604_v39  ;;  %v3038_v25 = vpop.f32.mrb[9].mxu0 }
 0x286   : > { %v4796_v5 = vadd.f32 %v3038_v25, %v1517_v49  ;;  %v4733_v44 = vpop.f32.mrb[10].mxu0  ;;  %v3608_v25 = vpop.permute.xlu1 %3607 }
 0x287   : > { %v4798_v23 = vadd.f32 %v4733_v44, %v4605_v61  ;;  %v3041_v54 = vpop.f32.mrb[11].mxu0  ;;  %v4608_v0 = vpop.f32.mrb[12].mxu1 }
 0x288   : > { %v4800_v14 = vadd.f32 %v3041_v54, %v1520_v46  ;;  %v1533_v18 = vpop.f32.mrb[13].mxu1  ;;  %v3613_v54 = vpop.permute.xlu0 %3612 }
 0x289   : > { %v4609_v38 = vpop.f32.mrb[14].mxu1 }
 0x28a   : > { %v1536_v22 = vpop.f32.mrb[15].mxu1 }
 0x28c   : > { %v4736_v52 = vpop.f32.mrb[12].mxu0 }
 0x28d   : > { %v4802_v19 = vadd.f32 %v4736_v52, %v4608_v0  ;;  %v3054_v36 = vpop.f32.mrb[13].mxu0 }
 0x28e   : > { %v4804_v9 = vadd.f32 %v3054_v36, %v1533_v18  ;;  %v4737_v11 = vpop.f32.mrb[14].mxu0 }
 0x28f   : > { %v4806_v10 = vadd.f32 %v4737_v11, %v4609_v38  ;;  %v3057_v53 = vpop.f32.mrb[15].mxu0 }
 0x290   : > { %v4808_v56 = vadd.f32 %v3057_v53, %v1536_v22 }
 0x2af   : > { %v4764_v33 = vpop.f32.mrb[16].mxu1 }
 0x2b0   : > { %v6573_v40 = vadd.f32 %v4794_v13, %v4764_v33  ;;  %v3368_v3 = vpop.f32.mrb[17].mxu1 }
 0x2b1   : > { %v6575_v28 = vadd.f32 %v4796_v5, %v3368_v3  ;;  %v4765_v47 = vpop.f32.mrb[18].mxu1 }
 0x2b2   : > { %v6578_v63 = vadd.f32 %v4798_v23, %v4765_v47  ;;  %3435 = vadd.xlane.f32.xlu0 %v6573_v40  ;;  %v3371_v48 = vpop.f32.mrb[19].mxu1  ;;  %v3635_v35 = vadd.f32 %v6573_v40, %v3598_v43 }
 0x2b3   : > { %v6581_v45 = vadd.f32 %v4800_v14, %v3371_v48  ;;  %v3633_v51 = vadd.f32 %v6575_v28, %v3588_v2 }
 0x2b4   : > { %v4756_v27 = vpop.f32.mrb[0].mxu0  ;;  %v3636_v15 = vadd.f32 %v6578_v63, %v3603_v32 }
 0x2b5   : > { %v4786_v7 = vadd.f32 %v4756_v27, %v4596_v16  ;;  %v3336_v50 = vpop.f32.mrb[1].mxu0  ;;  %v3634_v37 = vadd.f32 %v6581_v45, %v3593_v21  ;;  %v3456_v33 = vmul.f32 %v6581_v45, %v6581_v45  ;;  %v3544_v27 = vld [vmem:[#allocation7 + $0x78] sm:$0xff] }
 0x2b6   : > { %v4787_v29 = vadd.f32 %v3336_v50, %v1485_v34  ;;  %v4757_v60 = vpop.f32.mrb[2].mxu0  ;;  %v4319_v17 = vpack.c.bf16 %v3636_v15, %v3635_v35 }
 0x2b7   : > { %v4788_v4 = vadd.f32 %v4757_v60, %v4597_v62  ;;  %v3339_v6 = vpop.f32.mrb[3].mxu0  ;;  %3419 = vadd.xlane.f32.xlu1 %v4786_v7  ;;  %v4314_v39 = vpack.c.bf16 %v3634_v37, %v3633_v51  ;;  %v4768_v49 = vpop.f32.mrb[20].mxu1  ;;  %v3627_v57 = vadd.f32 %v4786_v7, %v3558_v8  ;;  %v3449_v36 = vmul.f32 %v4786_v7, %v4786_v7 }
 0x2b8   : > { %v4789_v61 = vadd.f32 %v3339_v6, %v6553_v58  ;;  %4335 = vst [vmem:[%s6588_s27 + $0x28] sm:$0xff] %v4319_v17   ;;  %3415 = vadd.xlane.f32.xlu0 %v4787_v29  ;;  %v6591_v16 = vadd.f32 %v4802_v19, %v4768_v49  ;;  %v3384_v46 = vpop.f32.mrb[21].mxu1  ;;  %v3625_v5 = vadd.f32 %v4787_v29, %v3548_v59 }
 0x2b9   : > { %v3628_v34 = vadd.f32 %v4788_v4, %v3563_v30  ;;  %4334 = vst [vmem:[%s6588_s27 + $0x20] sm:$0xff] %v4314_v39   ;;  %v6594_v62 = vadd.f32 %v4804_v9, %v3384_v46  ;;  %v4769_v13 = vpop.f32.mrb[22].mxu1 }
 0x2ba   : > { %v3626_v58 = vadd.f32 %v4789_v61, %v6563_v42  ;;  %v6597_v44 = vadd.f32 %v4806_v10, %v4769_v13  ;;  %v3387_v23 = vpop.f32.mrb[23].mxu1  ;;  %v3461_v43 = vmul.f32 %v6591_v16, %v6591_v16 }
 0x2bb   : > { %v4299_v0 = vpack.c.bf16 %v3628_v34, %v3627_v57  ;;  %3421 = vadd.xlane.f32.xlu1 %v4788_v4  ;;  %v6599_v14 = vadd.f32 %v4808_v56, %v3387_v23  ;;  %v3637_v52 = vadd.f32 %v6594_v62, %v3608_v25 }
 0x2bc   : > { %v4294_v8 = vpack.c.bf16 %v3626_v58, %v3625_v5  ;;  %v4760_v18 = vpop.f32.mrb[4].mxu0  ;;  %3431 = vadd.xlane.f32.xlu0 %v6575_v28 }
 0x2bd   : > { %4331 = vst [vmem:[%s6588_s27 + $0x8] sm:$0xff] %v4299_v0   ;;  %v4790_v38 = vadd.f32 %v4760_v18, %v6555_v41  ;;  %v3352_v22 = vpop.f32.mrb[5].mxu0  ;;  %v3638_v42 = vadd.f32 %v6599_v14, %v3613_v54  ;;  %v3460_v48 = vmul.f32 %v6599_v14, %v6599_v14 }
 0x2be   : > { %4295 = vst [vmem:[%s6588_s27] sm:$0xff] %v4294_v8   ;;  %v4791_v30 = vadd.f32 %v3352_v22, %v6557_v55  ;;  %v4761_v19 = vpop.f32.mrb[6].mxu0 }
 0x2bf   : > { %v4792_v9 = vadd.f32 %v4761_v19, %v6559_v12  ;;  %v3355_v11 = vpop.f32.mrb[7].mxu0  ;;  %3437 = vadd.xlane.f32.xlu1 %v6578_v63  ;;  %v4324_v10 = vpack.c.bf16 %v3638_v42, %v3637_v52  ;;  %v3631_v53 = vadd.f32 %v4790_v38, %v6569_v26  ;;  %v3457_v12 = vmul.f32 %v6573_v40, %v6573_v40 }
 0x2c0   : > { %v4793_v41 = vadd.f32 %v3355_v11, %v6561_v31  ;;  %3467 = vadd.xlane.f32.xlu0 %v3449_v36  ;;  %v3629_v55 = vadd.f32 %v4791_v30, %v6565_v24  ;;  %v3450_v31 = vmul.f32 %v4788_v4, %v4788_v4  ;;  %v3458_v26 = vmul.f32 %v6578_v63, %v6578_v63 }
 0x2c1   : > { %v3632_v56 = vadd.f32 %v4792_v9, %v6571_v1  ;;  %4336 = vst [vmem:[%s6588_s27 + $0x30] sm:$0xff] %v4324_v10   ;;  %v3447_v1 = vmul.f32 %v4787_v29, %v4787_v29  ;;  %v3448_v24 = vmul.f32 %v4789_v61, %v4789_v61  ;;  %v3453_v40 = vmul.f32 %v4790_v38, %v4790_v38 }
 0x2c2   : > { %v3630_v59 = vadd.f32 %v4793_v41, %v6567_v20  ;;  %v3455_v20 = vmul.f32 %v6575_v28, %v6575_v28  ;;  %v3454_v3 = vmul.f32 %v4792_v9, %v4792_v9  ;;  %v3462_v28 = vmul.f32 %v6597_v44, %v6597_v44 }
 0x2c3   : > { %v4309_v2 = vpack.c.bf16 %v3632_v56, %v3631_v53  ;;  %3433 = vadd.xlane.f32.xlu1 %v6581_v45  ;;  %v3451_v47 = vmul.f32 %v4791_v30, %v4791_v30  ;;  %v3452_v32 = vmul.f32 %v4793_v41, %v4793_v41  ;;  %v3459_v63 = vmul.f32 %v6594_v62, %v6594_v62  ;;  %v3543_v45 = vld [vmem:[#allocation7 + $0x70] sm:$0xff] }
 0x2c4   : > { %v4304_v21 = vpack.c.bf16 %v3630_v59, %v3629_v55  ;;  %3483 = vadd.xlane.f32.xlu0 %v3457_v12 }
 0x2c5   : > { %4333 = vst [vmem:[%s6588_s27 + $0x18] sm:$0xff] %v4309_v2  }
 0x2c6   : > { %4332 = vst [vmem:[%s6588_s27 + $0x10] sm:$0xff] %v4304_v21  }
 0x2c7   : > { %3469 = vadd.xlane.f32.xlu1 %v3450_v31 }
 0x2c8   : > { %3417 = vadd.xlane.f32.xlu0 %v4789_v61 }
 0x2cb   : > { %3485 = vadd.xlane.f32.xlu1 %v3458_v26 }
 0x2cc   : > { %3463 = vadd.xlane.f32.xlu0 %v3447_v1 }
 0x2cf   : > { %3465 = vadd.xlane.f32.xlu1 %v3448_v24 }
 0x2d0   : > { %3479 = vadd.xlane.f32.xlu0 %v3455_v20 }
 0x2d3   : > { %3481 = vadd.xlane.f32.xlu1 %v3456_v33 }
 0x2d4   : > { %3427 = vadd.xlane.f32.xlu0 %v4790_v38 }
 0x2d7   : > { %3429 = vadd.xlane.f32.xlu1 %v4792_v9 }
 0x2d8   : > { %3443 = vadd.xlane.f32.xlu0 %v6591_v16 }
 0x2db   : > { %3445 = vadd.xlane.f32.xlu1 %v6597_v44 }
 0x2dc   : > { %3423 = vadd.xlane.f32.xlu0 %v4791_v30 }
 0x2df   : > { %3425 = vadd.xlane.f32.xlu1 %v4793_v41 }
 0x2e0   : > { %3439 = vadd.xlane.f32.xlu0 %v6594_v62 }
 0x2e3   : > { %3441 = vadd.xlane.f32.xlu1 %v6599_v14 }
 0x2e4   : > { %3475 = vadd.xlane.f32.xlu0 %v3453_v40 }
 0x2e7   : > { %3477 = vadd.xlane.f32.xlu1 %v3454_v3 }
 0x2e8   : > { %3491 = vadd.xlane.f32.xlu0 %v3461_v43 }
 0x2eb   : > { %3493 = vadd.xlane.f32.xlu1 %v3462_v28 }
 0x2ec   : > { %3471 = vadd.xlane.f32.xlu0 %v3451_v47 }
 0x2ef   : > { %3473 = vadd.xlane.f32.xlu1 %v3452_v32 }
 0x2f0   : > { %3487 = vadd.xlane.f32.xlu0 %v3459_v63 }
 0x2f3   : > { %3489 = vadd.xlane.f32.xlu1 %v3460_v48 }
 0x304   : > { %3617 = vperm.xlu1 %5112, %v3543_v45  }
 0x306   : > { %3622 = vperm.xlu0 %5111, %v3544_v27  }
 0x33f   : > { %v3436_v35 = vpop.xlane.xlu0 %3435 }
 0x344   : > { %v3420_v15 = vpop.xlane.xlu1 %3419 }
 0x345   : > { %v3416_v7 = vpop.xlane.xlu0 %3415 }
 0x348   : > { %v3422_v50 = vpop.xlane.xlu1 %3421 }
 0x349   : > { %v3432_v51 = vpop.xlane.xlu0 %3431 }
 0x34c   : > { %v3438_v37 = vpop.xlane.xlu1 %3437 }
 0x34d   : > { %v3468_v29 = vpop.xlane.xlu0 %3467 }
 0x34e   : > { %v3498_v60 = vsel %vm3495_vm7, %v3420_v15, %v3468_v29 }
 0x34f   : > { %3515 = vst.msk [vmem:[%s6641_s7 + $0x10] sm:$0xff] %vm3512_vm8, %v3498_v60 }
 0x350   : > { %v3434_v17 = vpop.xlane.xlu1 %3433 }
 0x351   : > { %v3484_v4 = vpop.xlane.xlu0 %3483 }
 0x352   : > { %v3506_v6 = vsel %vm3495_vm7, %v3436_v35, %v3484_v4 }
 0x353   : > { %3523 = vst.msk [vmem:[%s6641_s7 + $0x50] sm:$0xff] %vm3512_vm8, %v3506_v6 }
 0x354   : > { %v3470_v39 = vpop.xlane.xlu1 %3469 }
 0x355   : > { %v3499_v49 = vsel %vm3495_vm7, %v3422_v50, %v3470_v39  ;;  %v3418_v61 = vpop.xlane.xlu0 %3417 }
 0x356   : > { %3516 = vst.msk [vmem:[%s6641_s7 + $0x18] sm:$0xff] %vm3512_vm8, %v3499_v49 }
 0x358   : > { %v3486_v46 = vpop.xlane.xlu1 %3485 }
 0x359   : > { %v3507_v57 = vsel %vm3495_vm7, %v3438_v37, %v3486_v46  ;;  %v3464_v34 = vpop.xlane.xlu0 %3463 }
 0x35a   : > { %3524 = vst.msk [vmem:[%s6641_s7 + $0x58] sm:$0xff] %vm3512_vm8, %v3507_v57  ;;  %v3496_v62 = vsel %vm3495_vm7, %v3416_v7, %v3464_v34 }
 0x35b   : > { %3513 = vst.msk [vmem:[%s6641_s7] sm:$0xff] %vm3512_vm8, %v3496_v62 }
 0x35c   : > { %v3466_v13 = vpop.xlane.xlu1 %3465 }
 0x35d   : > { %v3497_v25 = vsel %vm3495_vm7, %v3418_v61, %v3466_v13  ;;  %v3480_v5 = vpop.xlane.xlu0 %3479 }
 0x35e   : > { %3514 = vst.msk [vmem:[%s6641_s7 + $0x8] sm:$0xff] %vm3512_vm8, %v3497_v25  ;;  %v3504_v58 = vsel %vm3495_vm7, %v3432_v51, %v3480_v5 }
 0x35f   : > { %3521 = vst.msk [vmem:[%s6641_s7 + $0x40] sm:$0xff] %vm3512_vm8, %v3504_v58 }
 0x360   : > { %v3482_v23 = vpop.xlane.xlu1 %3481 }
 0x361   : > { %v3505_v54 = vsel %vm3495_vm7, %v3434_v17, %v3482_v23  ;;  %v3428_v0 = vpop.xlane.xlu0 %3427 }
 0x362   : > { %3522 = vst.msk [vmem:[%s6641_s7 + $0x48] sm:$0xff] %vm3512_vm8, %v3505_v54 }
 0x364   : > { %v3430_v14 = vpop.xlane.xlu1 %3429 }
 0x365   : > { %v3444_v8 = vpop.xlane.xlu0 %3443 }
 0x368   : > { %v3446_v18 = vpop.xlane.xlu1 %3445 }
 0x369   : > { %v3424_v38 = vpop.xlane.xlu0 %3423 }
 0x36c   : > { %v3426_v22 = vpop.xlane.xlu1 %3425 }
 0x36d   : > { %v3440_v52 = vpop.xlane.xlu0 %3439 }
 0x370   : > { %v3442_v42 = vpop.xlane.xlu1 %3441 }
 0x371   : > { %v3476_v30 = vpop.xlane.xlu0 %3475 }
 0x372   : > { %v3502_v19 = vsel %vm3495_vm7, %v3428_v0, %v3476_v30 }
 0x373   : > { %3519 = vst.msk [vmem:[%s6641_s7 + $0x30] sm:$0xff] %vm3512_vm8, %v3502_v19 }
 0x374   : > { %v3478_v36 = vpop.xlane.xlu1 %3477 }
 0x375   : > { %v3503_v9 = vsel %vm3495_vm7, %v3430_v14, %v3478_v36  ;;  %v3492_v11 = vpop.xlane.xlu0 %3491 }
 0x376   : > { %3520 = vst.msk [vmem:[%s6641_s7 + $0x38] sm:$0xff] %vm3512_vm8, %v3503_v9  ;;  %v3510_v10 = vsel %vm3495_vm7, %v3444_v8, %v3492_v11 }
 0x377   : > { %3527 = vst.msk [vmem:[%s6641_s7 + $0x70] sm:$0xff] %vm3512_vm8, %v3510_v10 }
 0x378   : > { %v3494_v41 = vpop.xlane.xlu1 %3493 }
 0x379   : > { %v3511_v53 = vsel %vm3495_vm7, %v3446_v18, %v3494_v41  ;;  %v3472_v56 = vpop.xlane.xlu0 %3471 }
 0x37a   : > { %3528 = vst.msk [vmem:[%s6641_s7 + $0x78] sm:$0xff] %vm3512_vm8, %v3511_v53  ;;  %v3500_v55 = vsel %vm3495_vm7, %v3424_v38, %v3472_v56 }
 0x37b   : > { %3517 = vst.msk [vmem:[%s6641_s7 + $0x20] sm:$0xff] %vm3512_vm8, %v3500_v55 }
 0x37c   : > { %v3474_v59 = vpop.xlane.xlu1 %3473 }
 0x37d   : > { %v3501_v12 = vsel %vm3495_vm7, %v3426_v22, %v3474_v59  ;;  %v3488_v2 = vpop.xlane.xlu0 %3487 }
 0x37e   : > { %3518 = vst.msk [vmem:[%s6641_s7 + $0x28] sm:$0xff] %vm3512_vm8, %v3501_v12  ;;  %v3508_v21 = vsel %vm3495_vm7, %v3440_v52, %v3488_v2 }
 0x37f   : > { %3525 = vst.msk [vmem:[%s6641_s7 + $0x60] sm:$0xff] %vm3512_vm8, %v3508_v21 }
 0x380   : > { %v3490_v31 = vpop.xlane.xlu1 %3489 }
 0x381   : > { %v3509_v26 = vsel %vm3495_vm7, %v3442_v42, %v3490_v31 }
 0x382   : > { %3526 = vst.msk [vmem:[%s6641_s7 + $0x68] sm:$0xff] %vm3512_vm8, %v3509_v26 }
 0x383   : > { %5316 = shalt.err (!%p5313_p7)
}
 0x384   : > { %s5317_s18 = scalar_lea.hbm %s6695_s5, 2048  ;;  %s5321_s7 = scalar_lea.hbm %s6800_s4, 8192 }
 0x385   : > { %p5318_p12 = scmp.ne.s32.totalorder %s6695_s5, %s5317_s18  ;;  %p5322_p5 = scmp.lt.u32.totalorder %s6695_s5, %s6800_s4 }
 0x386   : > { %p5323_p9 = scmp.lt.u32.totalorder %s5321_s7, %s5317_s18  ;;  %p5325_p4 = scmp.lt.u32.totalorder %s5317_s18, %s6695_s5 }
 0x387   : > { %p5319_p1 = pnand %p5318_p12, %p5623_p8 }
 0x388   : > { %p5324_p0 = por %p5323_p9, %p5322_p5 }
 0x389   : > { %p5320_p2 = pneg %p5319_p1 }
 0x38a   : > { %p5326_p10 = por %p5325_p4, %p5324_p0 }
 0x38c   : > { %p5327_p6 = pnand %p5326_p10, %p5320_p2 }
 0x38e   : > { %5330 = shalt.err (!%p5327_p6)
}
 0x38f   : > { %s5448_s30 = smov 128   ;;  %s5449_s19 = smov 8   ;;  %v3618_v1 = vpop.permute.xlu1 %3617  ;;  %v3623_v24 = vpop.permute.xlu0 %3622 }
 0x390   : > { %5009 = dma.vmem_to_hbm [thread:$0]  (%p5623_p8), %s6690_s12, 2048, %s6695_s5, %s3727_s10, %s5448_s30, %s5448_s30, %s5449_s19   ;;  %v3639_v20 = vadd.f32 %v6591_v16, %v3618_v1  ;;  %v3640_v33 = vadd.f32 %v6597_v44, %v3623_v24 }
 0x391   : > { %s4269_s13 = sshll.u32 %s6702_s9, 6  ;;  %s3722_s12 = scalar_lea.sflag [#allocation4], %s5685_s6 }
 0x392   : > { %v4329_v40 = vpack.c.bf16 %v3640_v33, %v3639_v20  ;;  %s6740_s2 = scalar_lea.hbm %s6799_s3, %s4269_s13  ;;  %s5331_s5 = scalar_lea.vmem %s6733_s28, 1024 }
 0x393   : > { %p5332_p11 = scmp.ne.s32.totalorder %s6733_s28, %s5331_s5  ;;  %s5450_s9 = smov [#allocation8]  }
 0x394   : > { %4337 = vst [vmem:[%s6588_s27 + $0x38] sm:$0xff] %v4329_v40   ;;  %s5335_s10 = sshll.u32 %s5450_s9, 4  ;;  %s5336_s10 = int_to_ptr.vmem [resolvable:$false] %s5335_s10 }
 0x395   : > { %p5333_p13 = pnand %p5332_p11, %p5623_p8  ;;  %s5337_s14 = scalar_lea.vmem %s5336_s10, 2048 }
 0x396   : > { %p5338_p7 = scmp.lt.s32.totalorder %s6733_s28, %s5336_s10  ;;  %p5339_p12 = scmp.lt.s32.totalorder %s5337_s14, %s5331_s5 }
 0x397   : > { %p5334_p3 = pneg %p5333_p13 }
 0x398   : > { %p5340_p1 = por %p5339_p12, %p5338_p7 }
 0x39a   : > { %p5341_p2 = pnand %p5340_p1, %p5334_p3 }
 0x39c   : > { %5344 = shalt.err (!%p5341_p2)
}
 0x39d   : > { %s5345_s27 = scalar_lea.hbm %s6740_s2, 1024  ;;  %s5349_s25 = scalar_lea.hbm %s6799_s3, 4096 }
 0x39e   : > { %p5346_p5 = scmp.ne.s32.totalorder %s6740_s2, %s5345_s27  ;;  %p5350_p4 = scmp.lt.u32.totalorder %s6740_s2, %s6799_s3 }
 0x39f   : > { %p5351_p10 = scmp.lt.u32.totalorder %s5349_s25, %s5345_s27  ;;  %p5353_p11 = scmp.lt.u32.totalorder %s5345_s27, %s6740_s2 }
 0x3a0   : > { %p5347_p9 = pnand %p5346_p5, %p5623_p8 }
 0x3a1   : > { %p5352_p6 = por %p5351_p10, %p5350_p4 }
 0x3a2   : > { %p5348_p0 = pneg %p5347_p9 }
 0x3a3   : > { %p5354_p13 = por %p5353_p11, %p5352_p6 }
 0x3a5   : > { %p5355_p3 = pnand %p5354_p13, %p5348_p0 }
 0x3a7   : > { %5358 = shalt.err (!%p5355_p3)
}
 0x3a8   : > { %s5451_s26 = smov 64   ;;  %s5452_s23 = smov 4  }
 0x3a9   : > { %5008 = dma.vmem_to_hbm [thread:$0]  (%p5623_p8), %s6733_s28, 1024, %s6740_s2, %s3722_s12, %s5451_s26, %s5448_s30, %s5452_s23  }
 0x3aa PF: > { %s6841_s19 = sld [smem:[#allocation16_spill]]  ;;  %p5035_p7 = scmp.ge.s32.totalorder %s5437_s22, 2 }
 0x3ab   : > { %s3774_s13 = sand.u32 1, %s5409_s15  }
 0x3ac   : > { %s3775_s24 = scalar_lea.sflag [#allocation4], %s3774_s13 }
 0x3b0   : > { %p6842_p12 = scmp.ne.s32.totalorder %s6841_s19, 0 }
 0x3b2   : > { %p5024_p1 = pnand %p5035_p7, %p6842_p12 }
 0x3b4   : > { %5400 = dma.done.wait (!%p5024_p1), %s3775_s24, 1024  }
 0x3b5   : > { %5402 = vsyncadd (!%p5024_p1), %s3775_s24, 4294966272  ;;  %s3784_s11 = scalar_lea.sflag [#allocation10], %s3774_s13 }
 0x3b6   : > { %5404 = dma.done.wait (!%p5024_p1), %s3784_s11, 2048  }
 0x3b7   : > { %5406 = vsyncadd (!%p5024_p1), %s3784_s11, 4294965248  ;;  %s25_s22 = sadd.s32 1, %s5437_s22   ;;  %s6843_s18 = sld [smem:[#allocation15_spill]] }
 0x3b8   : > { %p22_p2 = scmp.ge.s32.totalorder %s25_s22, 6   ;;  %s6844_s20 = sld [smem:[#allocation17_spill]] }
 0x3b9   : > { %s6845_s8 = sld [smem:[#allocation18_spill]]  ;;  %s6846_s15 = smov %s5413_s16 }
 0x3ba   : > { %s6847_s16 = smov %s5417_s17  ;;  %s6848_s17 = smov %s5642_s1 }
 0x3bb   : > { %s6849_s19 = smov %s5433_s21  ;;  %24 = sbr.rel (!%p22_p2) target bundleno = 13 (0xd), region = 112 }
 0x3bf   : > { %s6850_s21 = smov %s6845_s8 }
 0x3c2   :  { %3789 = vsyncpa [#allocation3], 1 }
 0x3c3   :  { %3791 = vsyncpa [#allocation3 + $0x1], 1 }
 0x3c4   :  { %3792 = vsyncpa [#allocation6], 1 }
 0x3c5   :  { %3793 = vsyncpa [#allocation4], 1 }
 0x3c6   :  { %3795 = vsyncpa [#allocation4 + $0x1], 1 }
 0x3c7   :  { %3796 = vsyncpa [#allocation10], 1 }
 0x3c8   :  { %3798 = vsyncpa [#allocation10 + $0x1], 1 }

</bundles_post_ra>
